<compile_context>
chip_gen: v7x
topology: tpu7x:2x2x1
jax: 0.10.0
libtpu: 0.0.40
codegen_flags: <defaults>
</compile_context>

<pallas_src>
import functools

import jax
import jax.numpy as jnp
from jax.experimental import pallas as pl
from jax.experimental.pallas import tpu as pltpu


def _round_up(x, m):
    return (x + m - 1) // m * m


def _lstm_cell(gates, c, hid_pad):
    """PyTorch gate order i, f, g, o; every slice is 128-lane aligned.

    sigmoid(x) == 0.5*(1 + tanh(0.5*x)): one EUP push per gate (vs exp+div).
    Padded gate columns have pre-activation 0 => i=f=o=0.5, g=0, so padded
    hidden/cell columns stay exactly 0 (c starts at 0).
    """
    i = 0.5 * (1.0 + jnp.tanh(0.5 * gates[:, 0 * hid_pad:1 * hid_pad]))
    f = 0.5 * (1.0 + jnp.tanh(0.5 * gates[:, 1 * hid_pad:2 * hid_pad]))
    g = jnp.tanh(gates[:, 2 * hid_pad:3 * hid_pad])
    o = 0.5 * (1.0 + jnp.tanh(0.5 * gates[:, 3 * hid_pad:4 * hid_pad]))
    c_new = f * c + i * g
    h_new = o * jnp.tanh(c_new)
    return h_new, c_new


def _encoder_kernel(x_ref, w1x_ref, w1h_ref, b1_ref, b2_ref, w2_hbm,
                    out_ref, xw1_ref, w2_ref, sem, *, seq_len):
    """Fused 2-layer LSTM encoder, single invocation (no grid).

    x_ref   : (T*Bp, Fp)          time-major input, flattened, VMEM
    w1x_ref : (Fp, 4*H1p)         layer-1 input->gates, VMEM
    w1h_ref : (H1p, 4*H1p)        layer-1 hidden->gates, VMEM
    b1_ref  : (1, 4*H1p)          layer-1 b_ih + b_hh, VMEM
    b2_ref  : (1, 4*H2p)          layer-2 b_ih + b_hh, VMEM
    w2_hbm  : (H1p+H2p, 4*H2p)    stacked [W2x; W2h], memory_space=ANY (HBM)
    out_ref : (Bp, H2p)           final hidden state of layer 2 (== hidden_n)
    xw1_ref : (T*Bp, 4*H1p)       VMEM scratch for hoisted input projection
    w2_ref  : (H1p+H2p, 4*H2p)    VMEM scratch for layer-2 weights
    sem     : DMA semaphore (1,)
    """
    t_bp, _ = x_ref.shape
    bp = t_bp // seq_len
    h1p = w1h_ref.shape[0]
    h2p = out_ref.shape[1]

    # Kick off the layer-2 weight DMA; it overlaps the hoisted input
    # projection and layer-1 step 0 below.
    w2_copy = pltpu.make_async_copy(w2_hbm, w2_ref, sem.at[0])
    w2_copy.start()

    # Recurrence-independent layer-1 input projection for ALL timesteps in one
    # matmul, spilled to scratch so only a (Bp, 4H) slab is live per step.
    xw1_ref[...] = jnp.dot(x_ref[...], w1x_ref[...],
                           preferred_element_type=jnp.float32) + b1_ref[...]

    def l1_step(t, h1, c1):
        gates = xw1_ref[t * bp:(t + 1) * bp, :] + jnp.dot(
            h1, w1h_ref[...], preferred_element_type=jnp.float32)
        return _lstm_cell(gates, c1, h1p)

    def l2_step(h1_in, h2, c2):
        # Single fused gate matmul: [h1_{t}, h2_{t-1}] @ [W2x; W2h] + b2.
        lhs = jnp.concatenate([h1_in, h2], axis=1)          # lane-aligned concat
        gates = jnp.dot(lhs, w2_ref[...],
                        preferred_element_type=jnp.float32) + b2_ref[...]
        return _lstm_cell(gates, c2, h2p)

    # ---- prologue: layer-1 step 0 (layer 2 has nothing to do yet) ----
    zeros1 = jnp.zeros((bp, h1p), jnp.float32)
    h1, c1 = l1_step(0, zeros1, zeros1)

    # Layer-2 weights must be resident before the first layer-2 step.
    w2_copy.wait()

    h2 = jnp.zeros((bp, h2p), jnp.float32)
    c2 = jnp.zeros((bp, h2p), jnp.float32)
    h1_prev = h1

    # ---- skewed steady state: layer-1 step t || layer-2 step t-1 ----
    # (static unroll is fine at T=8; see TODO for large T)
    for t in range(1, seq_len):
        h1, c1 = l1_step(t, h1_prev, c1)       # uses h1_{t-1}
        h2, c2 = l2_step(h1_prev, h2, c2)      # uses h1_{t-1}, h2_{t-2} -> independent
        h1_prev = h1

    # ---- epilogue: layer-2 step T-1 ----
    h2, c2 = l2_step(h1_prev, h2, c2)

    out_ref[...] = h2                          # lane-dense (Bp, H2p) store


def _pack_lstm_weights(w_ih, w_hh, b_ih, b_hh, in_pad, hid_pad):
    """PyTorch-layout LSTM params -> kernel layout.

    w_ih: (4H, F), w_hh: (4H, H), b_*: (4H,)
    Returns  Wx: (in_pad, 4*hid_pad),  Wh: (hid_pad, 4*hid_pad),  b: (1, 4*hid_pad)
    Each gate block is zero-padded to hid_pad columns, so padded hidden
    columns get pre-activation 0 and stay exactly 0 through the recurrence.
    """
    four_h = w_ih.shape[0]
    hid = four_h // 4

    def pad_cols(w_t, rows_pad):
        rows = w_t.shape[0]
        w_t = w_t.reshape(rows, 4, hid)
        w_t = jnp.pad(w_t, ((0, rows_pad - rows), (0, 0), (0, hid_pad - hid)))
        return w_t.reshape(rows_pad, 4 * hid_pad)

    wx = pad_cols(jnp.transpose(w_ih), in_pad)
    wh = pad_cols(jnp.transpose(w_hh), hid_pad)
    b = (b_ih + b_hh).reshape(1, 4, hid)
    b = jnp.pad(b, ((0, 0), (0, 0), (0, hid_pad - hid))).reshape(1, 4 * hid_pad)
    return wx, wh, b


def init_encoder_params(key, seq_len, n_features, embedding_dim=64):
    """Deterministic init matching PyTorch nn.LSTM parameter shapes."""
    hidden_dim = 2 * embedding_dim

    def init_lstm(key, in_dim, hid_dim):
        k = 1.0 / jnp.sqrt(jnp.float32(hid_dim))
        k1, k2, k3, k4 = jax.random.split(key, 4)
        return dict(
            w_ih=jax.random.uniform(k1, (4 * hid_dim, in_dim), jnp.float32, -k, k),
            w_hh=jax.random.uniform(k2, (4 * hid_dim, hid_dim), jnp.float32, -k, k),
            b_ih=jax.random.uniform(k3, (4 * hid_dim,), jnp.float32, -k, k),
            b_hh=jax.random.uniform(k4, (4 * hid_dim,), jnp.float32, -k, k),
        )

    k1, k2 = jax.random.split(key)
    return dict(
        rnn1=init_lstm(k1, n_features, hidden_dim),
        rnn2=init_lstm(k2, hidden_dim, embedding_dim),
    )


@jax.jit
def encoder_forward(x, params):
    """x: (B, T, F) batch-first like PyTorch. Returns (B, embedding_dim)."""
    b, t, f = x.shape
    p1, p2 = params["rnn1"], params["rnn2"]
    h1 = p1["w_hh"].shape[1]          # hidden_dim
    h2 = p2["w_hh"].shape[1]          # embedding_dim

    bp = _round_up(max(b, 8), 8)      # fp32 sublane count
    fp = _round_up(f, 128)
    h1p = _round_up(h1, 128)
    h2p = _round_up(h2, 128)

    # batch-first -> time-major, zero-pad batch/features, flatten to (T*Bp, Fp).
    x_tm = jnp.transpose(x, (1, 0, 2)).astype(jnp.float32)
    x_tm = jnp.pad(x_tm, ((0, 0), (0, bp - b), (0, fp - f)))
    x_flat = x_tm.reshape(t * bp, fp)

    w1x, w1h, b1 = _pack_lstm_weights(p1["w_ih"], p1["w_hh"], p1["b_ih"], p1["b_hh"], fp, h1p)
    w2x, w2h, b2 = _pack_lstm_weights(p2["w_ih"], p2["w_hh"], p2["b_ih"], p2["b_hh"], h1p, h2p)
    w2 = jnp.concatenate([w2x, w2h], axis=0)   # (H1p + H2p, 4*H2p) stacked layer-2 weights

    vmem_spec = pl.BlockSpec(memory_space=pltpu.MemorySpace.VMEM)
    hbm_spec = pl.BlockSpec(memory_space=pl.ANY)   # manually DMA'd inside the kernel

    out_p = pl.pallas_call(
        functools.partial(_encoder_kernel, seq_len=t),
        out_shape=jax.ShapeDtypeStruct((bp, h2p), jnp.float32),
        in_specs=[vmem_spec, vmem_spec, vmem_spec, vmem_spec, vmem_spec, hbm_spec],
        out_specs=vmem_spec,
        scratch_shapes=[
            pltpu.VMEM((t * bp, 4 * h1p), jnp.float32),   # hoisted xw1
            pltpu.VMEM((h1p + h2p, 4 * h2p), jnp.float32),  # layer-2 weights
            pltpu.SemaphoreType.DMA((1,)),
        ],
    )(x_flat, w1x, w1h, b1, b2, w2)

    # hidden_n.reshape((-1, embedding_dim)) == last-timestep h of layer 2.
    return out_p[:b, :h2].astype(x.dtype)


# ------------------------- pure-JAX reference ------------------------------
def _lstm_layer_ref(x_tm, w_ih, w_hh, b_ih, b_hh):
    t, b, _ = x_tm.shape
    hid = w_ih.shape[0] // 4

    def step(carry, x_t):
        h, c = carry
        gates = x_t @ w_ih.T + h @ w_hh.T + b_ih + b_hh
        i = jax.nn.sigmoid(gates[:, 0 * hid:1 * hid])
        f = jax.nn.sigmoid(gates[:, 1 * hid:2 * hid])
        g = jnp.tanh(gates[:, 2 * hid:3 * hid])
        o = jax.nn.sigmoid(gates[:, 3 * hid:4 * hid])
        c = f * c + i * g
        h = o * jnp.tanh(c)
        return (h, c), h

    init = (jnp.zeros((b, hid), jnp.float32), jnp.zeros((b, hid), jnp.float32))
    _, hs = jax.lax.scan(step, init, x_tm)
    return hs


def encoder_forward_ref(x, params):
    x_tm = jnp.transpose(x, (1, 0, 2))
    p1, p2 = params["rnn1"], params["rnn2"]
    h1 = _lstm_layer_ref(x_tm, p1["w_ih"], p1["w_hh"], p1["b_ih"], p1["b_hh"])
    h2 = _lstm_layer_ref(h1, p2["w_ih"], p2["w_hh"], p2["b_ih"], p2["b_hh"])
    return h2[-1]


if __name__ == "__main__":
    batch, seq_len, n_features, embedding_dim = 2, 8, 4, 32

    key = jax.random.PRNGKey(0)
    kx, kp = jax.random.split(key)
    x = jax.random.normal(kx, (batch, seq_len, n_features), jnp.float32)
    params = init_encoder_params(kp, seq_len, n_features, embedding_dim)

    out = jax.block_until_ready(encoder_forward(x, params))
    assert out.shape == (batch, embedding_dim), out.shape

    ref = encoder_forward_ref(x, params)
    # tolerance relaxed slightly vs 1e-5 because of the tanh-based sigmoid
    # (mathematically exact, differs only in f32 rounding).
    assert jnp.allclose(out, ref, atol=1e-4, rtol=1e-4), (
        float(jnp.max(jnp.abs(out - ref))))

    print("KERNEL_OK")
</pallas_src>

<mosaic_0001>
module attributes {stable_mosaic.version = 11 : i64} {
  func.func @_encoder_kernel(%arg0: memref<64x128xf32, #tpu.memory_space<vmem>>, %arg1: memref<128x512xf32, #tpu.memory_space<vmem>>, %arg2: memref<128x512xf32, #tpu.memory_space<vmem>>, %arg3: memref<1x512xf32, #tpu.memory_space<vmem>>, %arg4: memref<1x512xf32, #tpu.memory_space<vmem>>, %arg5: memref<256x512xf32, #tpu.memory_space<any>>, %arg6: memref<8x128xf32, #tpu.memory_space<vmem>>, %arg7: memref<64x512xf32, #tpu.memory_space<vmem>>, %arg8: memref<256x512xf32, #tpu.memory_space<vmem>>, %arg9: memref<1x!tpu.dma_semaphore, #tpu.memory_space<semaphore_mem>>) attributes {dimension_semantics = [], scalar_prefetch = 0 : i64, scratch_operands = 3 : i64, tpu.core_type = #tpu.core_type<tc>} {
    %c0_i32 = arith.constant 0 : i32
    %0 = tpu.memref_slice %arg9[%c0_i32] : memref<1x!tpu.dma_semaphore, #tpu.memory_space<semaphore_mem>> -> memref<1x!tpu.dma_semaphore, #tpu.memory_space<semaphore_mem>>
    %1 = tpu.memref_squeeze %0 : memref<1x!tpu.dma_semaphore, #tpu.memory_space<semaphore_mem>> -> memref<!tpu.dma_semaphore, #tpu.memory_space<semaphore_mem>>
    tpu.enqueue_dma source(%arg5 : memref<256x512xf32, #tpu.memory_space<any>>) target(%arg8 : memref<256x512xf32, #tpu.memory_space<vmem>>) target_semaphore(%1 : memref<!tpu.dma_semaphore, #tpu.memory_space<semaphore_mem>>)
    %c0 = arith.constant 0 : index
    %c0_0 = arith.constant 0 : index
    %2 = vector.load %arg0[%c0, %c0_0] : memref<64x128xf32, #tpu.memory_space<vmem>>, vector<64x128xf32>
    %c0_1 = arith.constant 0 : index
    %c0_2 = arith.constant 0 : index
    %3 = vector.load %arg1[%c0_1, %c0_2] : memref<128x512xf32, #tpu.memory_space<vmem>>, vector<128x512xf32>
    %cst = arith.constant dense<0.000000e+00> : vector<64x512xf32>
    %4 = tpu.matmul %2, %3, %cst {dimension_numbers = #tpu.dot_dimension_numbers<[1], [0], [0], [1], [0, 0, 1, 1], [], []>} : vector<64x128xf32>, vector<128x512xf32>, vector<64x512xf32> -> vector<64x512xf32>
    %c0_3 = arith.constant 0 : index
    %c0_4 = arith.constant 0 : index
    %5 = vector.load %arg3[%c0_3, %c0_4] : memref<1x512xf32, #tpu.memory_space<vmem>>, vector<1x512xf32>
    %6 = vector.broadcast %5 : vector<1x512xf32> to vector<64x512xf32>
    %7 = arith.addf %4, %6 : vector<64x512xf32>
    %c0_5 = arith.constant 0 : index
    %c0_6 = arith.constant 0 : index
    %8 = vector.load %arg7[%c0_5, %c0_6] : memref<64x512xf32, #tpu.memory_space<vmem>>, vector<64x512xf32>
    tpu.vector_store %arg7[%c0_5, %c0_6], %7 {strides = array<i32>} : memref<64x512xf32, #tpu.memory_space<vmem>>, vector<64x512xf32>,
    %cst_7 = arith.constant 0.000000e+00 : f32
    %9 = vector.broadcast %cst_7 : f32 to vector<8x128xf32>
    %c0_8 = arith.constant 0 : index
    %c0_9 = arith.constant 0 : index
    %10 = vector.load %arg7[%c0_8, %c0_9] : memref<64x512xf32, #tpu.memory_space<vmem>>, vector<8x512xf32>
    %c0_10 = arith.constant 0 : index
    %c0_11 = arith.constant 0 : index
    %11 = vector.load %arg2[%c0_10, %c0_11] : memref<128x512xf32, #tpu.memory_space<vmem>>, vector<128x512xf32>
    %cst_12 = arith.constant dense<0.000000e+00> : vector<8x512xf32>
    %12 = tpu.matmul %9, %11, %cst_12 {dimension_numbers = #tpu.dot_dimension_numbers<[1], [0], [0], [1], [0, 0, 1, 1], [], []>} : vector<8x128xf32>, vector<128x512xf32>, vector<8x512xf32> -> vector<8x512xf32>
    %13 = arith.addf %10, %12 : vector<8x512xf32>
    %14 = vector.extract_strided_slice %13 {offsets = [0, 0], sizes = [8, 128], strides = [1, 1]} : vector<8x512xf32> to vector<8x128xf32>
    %cst_13 = arith.constant 5.000000e-01 : f32
    %15 = vector.broadcast %cst_13 : f32 to vector<8x128xf32>
    %16 = arith.mulf %15, %14 : vector<8x128xf32>
    %17 = math.tanh %16 : vector<8x128xf32>
    %cst_14 = arith.constant 1.000000e+00 : f32
    %18 = vector.broadcast %cst_14 : f32 to vector<8x128xf32>
    %19 = arith.addf %18, %17 : vector<8x128xf32>
    %cst_15 = arith.constant 5.000000e-01 : f32
    %20 = vector.broadcast %cst_15 : f32 to vector<8x128xf32>
    %21 = arith.mulf %20, %19 : vector<8x128xf32>
    %22 = vector.extract_strided_slice %13 {offsets = [0, 128], sizes = [8, 128], strides = [1, 1]} : vector<8x512xf32> to vector<8x128xf32>
    %cst_16 = arith.constant 5.000000e-01 : f32
    %23 = vector.broadcast %cst_16 : f32 to vector<8x128xf32>
    %24 = arith.mulf %23, %22 : vector<8x128xf32>
    %25 = math.tanh %24 : vector<8x128xf32>
    %cst_17 = arith.constant 1.000000e+00 : f32
    %26 = vector.broadcast %cst_17 : f32 to vector<8x128xf32>
    %27 = arith.addf %26, %25 : vector<8x128xf32>
    %cst_18 = arith.constant 5.000000e-01 : f32
    %28 = vector.broadcast %cst_18 : f32 to vector<8x128xf32>
    %29 = arith.mulf %28, %27 : vector<8x128xf32>
    %30 = vector.extract_strided_slice %13 {offsets = [0, 256], sizes = [8, 128], strides = [1, 1]} : vector<8x512xf32> to vector<8x128xf32>
    %31 = math.tanh %30 : vector<8x128xf32>
    %32 = vector.extract_strided_slice %13 {offsets = [0, 384], sizes = [8, 128], strides = [1, 1]} : vector<8x512xf32> to vector<8x128xf32>
    %cst_19 = arith.constant 5.000000e-01 : f32
    %33 = vector.broadcast %cst_19 : f32 to vector<8x128xf32>
    %34 = arith.mulf %33, %32 : vector<8x128xf32>
    %35 = math.tanh %34 : vector<8x128xf32>
    %cst_20 = arith.constant 1.000000e+00 : f32
    %36 = vector.broadcast %cst_20 : f32 to vector<8x128xf32>
    %37 = arith.addf %36, %35 : vector<8x128xf32>
    %cst_21 = arith.constant 5.000000e-01 : f32
    %38 = vector.broadcast %cst_21 : f32 to vector<8x128xf32>
    %39 = arith.mulf %38, %37 : vector<8x128xf32>
    %40 = arith.mulf %29, %9 : vector<8x128xf32>
    %41 = arith.mulf %21, %31 : vector<8x128xf32>
    %42 = arith.addf %40, %41 : vector<8x128xf32>
    %43 = math.tanh %42 : vector<8x128xf32>
    %44 = arith.mulf %39, %43 : vector<8x128xf32>
    %c0_i32_22 = arith.constant 0 : i32
    %45 = tpu.memref_slice %arg9[%c0_i32_22] : memref<1x!tpu.dma_semaphore, #tpu.memory_space<semaphore_mem>> -> memref<1x!tpu.dma_semaphore, #tpu.memory_space<semaphore_mem>>
    %46 = tpu.memref_squeeze %45 : memref<1x!tpu.dma_semaphore, #tpu.memory_space<semaphore_mem>> -> memref<!tpu.dma_semaphore, #tpu.memory_space<semaphore_mem>>
    tpu.wait_dma2 semaphore(%46 : memref<!tpu.dma_semaphore, #tpu.memory_space<semaphore_mem>>) src(%arg5 : memref<256x512xf32, #tpu.memory_space<any>>) dst(%arg8 : memref<256x512xf32, #tpu.memory_space<vmem>>)
    %cst_23 = arith.constant 0.000000e+00 : f32
    %47 = vector.broadcast %cst_23 : f32 to vector<8x128xf32>
    %cst_24 = arith.constant 0.000000e+00 : f32
    %48 = vector.broadcast %cst_24 : f32 to vector<8x128xf32>
    %c8 = arith.constant 8 : index
    %c0_25 = arith.constant 0 : index
    %49 = vector.load %arg7[%c8, %c0_25] : memref<64x512xf32, #tpu.memory_space<vmem>>, vector<8x512xf32>
    %c0_26 = arith.constant 0 : index
    %c0_27 = arith.constant 0 : index
    %50 = vector.load %arg2[%c0_26, %c0_27] : memref<128x512xf32, #tpu.memory_space<vmem>>, vector<128x512xf32>
    %cst_28 = arith.constant dense<0.000000e+00> : vector<8x512xf32>
    %51 = tpu.matmul %44, %50, %cst_28 {dimension_numbers = #tpu.dot_dimension_numbers<[1], [0], [0], [1], [0, 0, 1, 1], [], []>} : vector<8x128xf32>, vector<128x512xf32>, vector<8x512xf32> -> vector<8x512xf32>
    %52 = arith.addf %49, %51 : vector<8x512xf32>
    %53 = vector.extract_strided_slice %52 {offsets = [0, 0], sizes = [8, 128], strides = [1, 1]} : vector<8x512xf32> to vector<8x128xf32>
    %cst_29 = arith.constant 5.000000e-01 : f32
    %54 = vector.broadcast %cst_29 : f32 to vector<8x128xf32>
    %55 = arith.mulf %54, %53 : vector<8x128xf32>
    %56 = math.tanh %55 : vector<8x128xf32>
    %cst_30 = arith.constant 1.000000e+00 : f32
    %57 = vector.broadcast %cst_30 : f32 to vector<8x128xf32>
    %58 = arith.addf %57, %56 : vector<8x128xf32>
    %cst_31 = arith.constant 5.000000e-01 : f32
    %59 = vector.broadcast %cst_31 : f32 to vector<8x128xf32>
    %60 = arith.mulf %59, %58 : vector<8x128xf32>
    %61 = vector.extract_strided_slice %52 {offsets = [0, 128], sizes = [8, 128], strides = [1, 1]} : vector<8x512xf32> to vector<8x128xf32>
    %cst_32 = arith.constant 5.000000e-01 : f32
    %62 = vector.broadcast %cst_32 : f32 to vector<8x128xf32>
    %63 = arith.mulf %62, %61 : vector<8x128xf32>
    %64 = math.tanh %63 : vector<8x128xf32>
    %cst_33 = arith.constant 1.000000e+00 : f32
    %65 = vector.broadcast %cst_33 : f32 to vector<8x128xf32>
    %66 = arith.addf %65, %64 : vector<8x128xf32>
    %cst_34 = arith.constant 5.000000e-01 : f32
    %67 = vector.broadcast %cst_34 : f32 to vector<8x128xf32>
    %68 = arith.mulf %67, %66 : vector<8x128xf32>
    %69 = vector.extract_strided_slice %52 {offsets = [0, 256], sizes = [8, 128], strides = [1, 1]} : vector<8x512xf32> to vector<8x128xf32>
    %70 = math.tanh %69 : vector<8x128xf32>
    %71 = vector.extract_strided_slice %52 {offsets = [0, 384], sizes = [8, 128], strides = [1, 1]} : vector<8x512xf32> to vector<8x128xf32>
    %cst_35 = arith.constant 5.000000e-01 : f32
    %72 = vector.broadcast %cst_35 : f32 to vector<8x128xf32>
    %73 = arith.mulf %72, %71 : vector<8x128xf32>
    %74 = math.tanh %73 : vector<8x128xf32>
    %cst_36 = arith.constant 1.000000e+00 : f32
    %75 = vector.broadcast %cst_36 : f32 to vector<8x128xf32>
    %76 = arith.addf %75, %74 : vector<8x128xf32>
    %cst_37 = arith.constant 5.000000e-01 : f32
    %77 = vector.broadcast %cst_37 : f32 to vector<8x128xf32>
    %78 = arith.mulf %77, %76 : vector<8x128xf32>
    %79 = arith.mulf %68, %42 : vector<8x128xf32>
    %80 = arith.mulf %60, %70 : vector<8x128xf32>
    %81 = arith.addf %79, %80 : vector<8x128xf32>
    %82 = math.tanh %81 : vector<8x128xf32>
    %83 = arith.mulf %78, %82 : vector<8x128xf32>
    %84 = tpu.concatenate %44, %47 in 1 : vector<8x128xf32>, vector<8x128xf32> -> vector<8x256xf32>
    %c0_38 = arith.constant 0 : index
    %c0_39 = arith.constant 0 : index
    %85 = vector.load %arg8[%c0_38, %c0_39] : memref<256x512xf32, #tpu.memory_space<vmem>>, vector<256x512xf32>
    %cst_40 = arith.constant dense<0.000000e+00> : vector<8x512xf32>
    %86 = tpu.matmul %84, %85, %cst_40 {dimension_numbers = #tpu.dot_dimension_numbers<[1], [0], [0], [1], [0, 0, 1, 1], [], []>} : vector<8x256xf32>, vector<256x512xf32>, vector<8x512xf32> -> vector<8x512xf32>
    %c0_41 = arith.constant 0 : index
    %c0_42 = arith.constant 0 : index
    %87 = vector.load %arg4[%c0_41, %c0_42] : memref<1x512xf32, #tpu.memory_space<vmem>>, vector<1x512xf32>
    %88 = vector.broadcast %87 : vector<1x512xf32> to vector<8x512xf32>
    %89 = arith.addf %86, %88 : vector<8x512xf32>
    %90 = vector.extract_strided_slice %89 {offsets = [0, 0], sizes = [8, 128], strides = [1, 1]} : vector<8x512xf32> to vector<8x128xf32>
    %cst_43 = arith.constant 5.000000e-01 : f32
    %91 = vector.broadcast %cst_43 : f32 to vector<8x128xf32>
    %92 = arith.mulf %91, %90 : vector<8x128xf32>
    %93 = math.tanh %92 : vector<8x128xf32>
    %cst_44 = arith.constant 1.000000e+00 : f32
    %94 = vector.broadcast %cst_44 : f32 to vector<8x128xf32>
    %95 = arith.addf %94, %93 : vector<8x128xf32>
    %cst_45 = arith.constant 5.000000e-01 : f32
    %96 = vector.broadcast %cst_45 : f32 to vector<8x128xf32>
    %97 = arith.mulf %96, %95 : vector<8x128xf32>
    %98 = vector.extract_strided_slice %89 {offsets = [0, 128], sizes = [8, 128], strides = [1, 1]} : vector<8x512xf32> to vector<8x128xf32>
    %cst_46 = arith.constant 5.000000e-01 : f32
    %99 = vector.broadcast %cst_46 : f32 to vector<8x128xf32>
    %100 = arith.mulf %99, %98 : vector<8x128xf32>
    %101 = math.tanh %100 : vector<8x128xf32>
    %cst_47 = arith.constant 1.000000e+00 : f32
    %102 = vector.broadcast %cst_47 : f32 to vector<8x128xf32>
    %103 = arith.addf %102, %101 : vector<8x128xf32>
    %cst_48 = arith.constant 5.000000e-01 : f32
    %104 = vector.broadcast %cst_48 : f32 to vector<8x128xf32>
    %105 = arith.mulf %104, %103 : vector<8x128xf32>
    %106 = vector.extract_strided_slice %89 {offsets = [0, 256], sizes = [8, 128], strides = [1, 1]} : vector<8x512xf32> to vector<8x128xf32>
    %107 = math.tanh %106 : vector<8x128xf32>
    %108 = vector.extract_strided_slice %89 {offsets = [0, 384], sizes = [8, 128], strides = [1, 1]} : vector<8x512xf32> to vector<8x128xf32>
    %cst_49 = arith.constant 5.000000e-01 : f32
    %109 = vector.broadcast %cst_49 : f32 to vector<8x128xf32>
    %110 = arith.mulf %109, %108 : vector<8x128xf32>
    %111 = math.tanh %110 : vector<8x128xf32>
    %cst_50 = arith.constant 1.000000e+00 : f32
    %112 = vector.broadcast %cst_50 : f32 to vector<8x128xf32>
    %113 = arith.addf %112, %111 : vector<8x128xf32>
    %cst_51 = arith.constant 5.000000e-01 : f32
    %114 = vector.broadcast %cst_51 : f32 to vector<8x128xf32>
    %115 = arith.mulf %114, %113 : vector<8x128xf32>
    %116 = arith.mulf %105, %48 : vector<8x128xf32>
    %117 = arith.mulf %97, %107 : vector<8x128xf32>
    %118 = arith.addf %116, %117 : vector<8x128xf32>
    %119 = math.tanh %118 : vector<8x128xf32>
    %120 = arith.mulf %115, %119 : vector<8x128xf32>
    %c16 = arith.constant 16 : index
    %c0_52 = arith.constant 0 : index
    %121 = vector.load %arg7[%c16, %c0_52] : memref<64x512xf32, #tpu.memory_space<vmem>>, vector<8x512xf32>
    %c0_53 = arith.constant 0 : index
    %c0_54 = arith.constant 0 : index
    %122 = vector.load %arg2[%c0_53, %c0_54] : memref<128x512xf32, #tpu.memory_space<vmem>>, vector<128x512xf32>
    %cst_55 = arith.constant dense<0.000000e+00> : vector<8x512xf32>
    %123 = tpu.matmul %83, %122, %cst_55 {dimension_numbers = #tpu.dot_dimension_numbers<[1], [0], [0], [1], [0, 0, 1, 1], [], []>} : vector<8x128xf32>, vector<128x512xf32>, vector<8x512xf32> -> vector<8x512xf32>
    %124 = arith.addf %121, %123 : vector<8x512xf32>
    %125 = vector.extract_strided_slice %124 {offsets = [0, 0], sizes = [8, 128], strides = [1, 1]} : vector<8x512xf32> to vector<8x128xf32>
    %cst_56 = arith.constant 5.000000e-01 : f32
    %126 = vector.broadcast %cst_56 : f32 to vector<8x128xf32>
    %127 = arith.mulf %126, %125 : vector<8x128xf32>
    %128 = math.tanh %127 : vector<8x128xf32>
    %cst_57 = arith.constant 1.000000e+00 : f32
    %129 = vector.broadcast %cst_57 : f32 to vector<8x128xf32>
    %130 = arith.addf %129, %128 : vector<8x128xf32>
    %cst_58 = arith.constant 5.000000e-01 : f32
    %131 = vector.broadcast %cst_58 : f32 to vector<8x128xf32>
    %132 = arith.mulf %131, %130 : vector<8x128xf32>
    %133 = vector.extract_strided_slice %124 {offsets = [0, 128], sizes = [8, 128], strides = [1, 1]} : vector<8x512xf32> to vector<8x128xf32>
    %cst_59 = arith.constant 5.000000e-01 : f32
    %134 = vector.broadcast %cst_59 : f32 to vector<8x128xf32>
    %135 = arith.mulf %134, %133 : vector<8x128xf32>
    %136 = math.tanh %135 : vector<8x128xf32>
    %cst_60 = arith.constant 1.000000e+00 : f32
    %137 = vector.broadcast %cst_60 : f32 to vector<8x128xf32>
    %138 = arith.addf %137, %136 : vector<8x128xf32>
    %cst_61 = arith.constant 5.000000e-01 : f32
    %139 = vector.broadcast %cst_61 : f32 to vector<8x128xf32>
    %140 = arith.mulf %139, %138 : vector<8x128xf32>
    %141 = vector.extract_strided_slice %124 {offsets = [0, 256], sizes = [8, 128], strides = [1, 1]} : vector<8x512xf32> to vector<8x128xf32>
    %142 = math.tanh %141 : vector<8x128xf32>
    %143 = vector.extract_strided_slice %124 {offsets = [0, 384], sizes = [8, 128], strides = [1, 1]} : vector<8x512xf32> to vector<8x128xf32>
    %cst_62 = arith.constant 5.000000e-01 : f32
    %144 = vector.broadcast %cst_62 : f32 to vector<8x128xf32>
    %145 = arith.mulf %144, %143 : vector<8x128xf32>
    %146 = math.tanh %145 : vector<8x128xf32>
    %cst_63 = arith.constant 1.000000e+00 : f32
    %147 = vector.broadcast %cst_63 : f32 to vector<8x128xf32>
    %148 = arith.addf %147, %146 : vector<8x128xf32>
    %cst_64 = arith.constant 5.000000e-01 : f32
    %149 = vector.broadcast %cst_64 : f32 to vector<8x128xf32>
    %150 = arith.mulf %149, %148 : vector<8x128xf32>
    %151 = arith.mulf %140, %81 : vector<8x128xf32>
    %152 = arith.mulf %132, %142 : vector<8x128xf32>
    %153 = arith.addf %151, %152 : vector<8x128xf32>
    %154 = math.tanh %153 : vector<8x128xf32>
    %155 = arith.mulf %150, %154 : vector<8x128xf32>
    %156 = tpu.concatenate %83, %120 in 1 : vector<8x128xf32>, vector<8x128xf32> -> vector<8x256xf32>
    %c0_65 = arith.constant 0 : index
    %c0_66 = arith.constant 0 : index
    %157 = vector.load %arg8[%c0_65, %c0_66] : memref<256x512xf32, #tpu.memory_space<vmem>>, vector<256x512xf32>
    %cst_67 = arith.constant dense<0.000000e+00> : vector<8x512xf32>
    %158 = tpu.matmul %156, %157, %cst_67 {dimension_numbers = #tpu.dot_dimension_numbers<[1], [0], [0], [1], [0, 0, 1, 1], [], []>} : vector<8x256xf32>, vector<256x512xf32>, vector<8x512xf32> -> vector<8x512xf32>
    %c0_68 = arith.constant 0 : index
    %c0_69 = arith.constant 0 : index
    %159 = vector.load %arg4[%c0_68, %c0_69] : memref<1x512xf32, #tpu.memory_space<vmem>>, vector<1x512xf32>
    %160 = vector.broadcast %159 : vector<1x512xf32> to vector<8x512xf32>
    %161 = arith.addf %158, %160 : vector<8x512xf32>
    %162 = vector.extract_strided_slice %161 {offsets = [0, 0], sizes = [8, 128], strides = [1, 1]} : vector<8x512xf32> to vector<8x128xf32>
    %cst_70 = arith.constant 5.000000e-01 : f32
    %163 = vector.broadcast %cst_70 : f32 to vector<8x128xf32>
    %164 = arith.mulf %163, %162 : vector<8x128xf32>
    %165 = math.tanh %164 : vector<8x128xf32>
    %cst_71 = arith.constant 1.000000e+00 : f32
    %166 = vector.broadcast %cst_71 : f32 to vector<8x128xf32>
    %167 = arith.addf %166, %165 : vector<8x128xf32>
    %cst_72 = arith.constant 5.000000e-01 : f32
    %168 = vector.broadcast %cst_72 : f32 to vector<8x128xf32>
    %169 = arith.mulf %168, %167 : vector<8x128xf32>
    %170 = vector.extract_strided_slice %161 {offsets = [0, 128], sizes = [8, 128], strides = [1, 1]} : vector<8x512xf32> to vector<8x128xf32>
    %cst_73 = arith.constant 5.000000e-01 : f32
    %171 = vector.broadcast %cst_73 : f32 to vector<8x128xf32>
    %172 = arith.mulf %171, %170 : vector<8x128xf32>
    %173 = math.tanh %172 : vector<8x128xf32>
    %cst_74 = arith.constant 1.000000e+00 : f32
    %174 = vector.broadcast %cst_74 : f32 to vector<8x128xf32>
    %175 = arith.addf %174, %173 : vector<8x128xf32>
    %cst_75 = arith.constant 5.000000e-01 : f32
    %176 = vector.broadcast %cst_75 : f32 to vector<8x128xf32>
    %177 = arith.mulf %176, %175 : vector<8x128xf32>
    %178 = vector.extract_strided_slice %161 {offsets = [0, 256], sizes = [8, 128], strides = [1, 1]} : vector<8x512xf32> to vector<8x128xf32>
    %179 = math.tanh %178 : vector<8x128xf32>
    %180 = vector.extract_strided_slice %161 {offsets = [0, 384], sizes = [8, 128], strides = [1, 1]} : vector<8x512xf32> to vector<8x128xf32>
    %cst_76 = arith.constant 5.000000e-01 : f32
    %181 = vector.broadcast %cst_76 : f32 to vector<8x128xf32>
    %182 = arith.mulf %181, %180 : vector<8x128xf32>
    %183 = math.tanh %182 : vector<8x128xf32>
    %cst_77 = arith.constant 1.000000e+00 : f32
    %184 = vector.broadcast %cst_77 : f32 to vector<8x128xf32>
    %185 = arith.addf %184, %183 : vector<8x128xf32>
    %cst_78 = arith.constant 5.000000e-01 : f32
    %186 = vector.broadcast %cst_78 : f32 to vector<8x128xf32>
    %187 = arith.mulf %186, %185 : vector<8x128xf32>
    %188 = arith.mulf %177, %118 : vector<8x128xf32>
    %189 = arith.mulf %169, %179 : vector<8x128xf32>
    %190 = arith.addf %188, %189 : vector<8x128xf32>
    %191 = math.tanh %190 : vector<8x128xf32>
    %192 = arith.mulf %187, %191 : vector<8x128xf32>
    %c24 = arith.constant 24 : index
    %c0_79 = arith.constant 0 : index
    %193 = vector.load %arg7[%c24, %c0_79] : memref<64x512xf32, #tpu.memory_space<vmem>>, vector<8x512xf32>
    %c0_80 = arith.constant 0 : index
    %c0_81 = arith.constant 0 : index
    %194 = vector.load %arg2[%c0_80, %c0_81] : memref<128x512xf32, #tpu.memory_space<vmem>>, vector<128x512xf32>
    %cst_82 = arith.constant dense<0.000000e+00> : vector<8x512xf32>
    %195 = tpu.matmul %155, %194, %cst_82 {dimension_numbers = #tpu.dot_dimension_numbers<[1], [0], [0], [1], [0, 0, 1, 1], [], []>} : vector<8x128xf32>, vector<128x512xf32>, vector<8x512xf32> -> vector<8x512xf32>
    %196 = arith.addf %193, %195 : vector<8x512xf32>
    %197 = vector.extract_strided_slice %196 {offsets = [0, 0], sizes = [8, 128], strides = [1, 1]} : vector<8x512xf32> to vector<8x128xf32>
    %cst_83 = arith.constant 5.000000e-01 : f32
    %198 = vector.broadcast %cst_83 : f32 to vector<8x128xf32>
    %199 = arith.mulf %198, %197 : vector<8x128xf32>
    %200 = math.tanh %199 : vector<8x128xf32>
    %cst_84 = arith.constant 1.000000e+00 : f32
    %201 = vector.broadcast %cst_84 : f32 to vector<8x128xf32>
    %202 = arith.addf %201, %200 : vector<8x128xf32>
    %cst_85 = arith.constant 5.000000e-01 : f32
    %203 = vector.broadcast %cst_85 : f32 to vector<8x128xf32>
    %204 = arith.mulf %203, %202 : vector<8x128xf32>
    %205 = vector.extract_strided_slice %196 {offsets = [0, 128], sizes = [8, 128], strides = [1, 1]} : vector<8x512xf32> to vector<8x128xf32>
    %cst_86 = arith.constant 5.000000e-01 : f32
    %206 = vector.broadcast %cst_86 : f32 to vector<8x128xf32>
    %207 = arith.mulf %206, %205 : vector<8x128xf32>
    %208 = math.tanh %207 : vector<8x128xf32>
    %cst_87 = arith.constant 1.000000e+00 : f32
    %209 = vector.broadcast %cst_87 : f32 to vector<8x128xf32>
    %210 = arith.addf %209, %208 : vector<8x128xf32>
    %cst_88 = arith.constant 5.000000e-01 : f32
    %211 = vector.broadcast %cst_88 : f32 to vector<8x128xf32>
    %212 = arith.mulf %211, %210 : vector<8x128xf32>
    %213 = vector.extract_strided_slice %196 {offsets = [0, 256], sizes = [8, 128], strides = [1, 1]} : vector<8x512xf32> to vector<8x128xf32>
    %214 = math.tanh %213 : vector<8x128xf32>
    %215 = vector.extract_strided_slice %196 {offsets = [0, 384], sizes = [8, 128], strides = [1, 1]} : vector<8x512xf32> to vector<8x128xf32>
    %cst_89 = arith.constant 5.000000e-01 : f32
    %216 = vector.broadcast %cst_89 : f32 to vector<8x128xf32>
    %217 = arith.mulf %216, %215 : vector<8x128xf32>
    %218 = math.tanh %217 : vector<8x128xf32>
    %cst_90 = arith.constant 1.000000e+00 : f32
    %219 = vector.broadcast %cst_90 : f32 to vector<8x128xf32>
    %220 = arith.addf %219, %218 : vector<8x128xf32>
    %cst_91 = arith.constant 5.000000e-01 : f32
    %221 = vector.broadcast %cst_91 : f32 to vector<8x128xf32>
    %222 = arith.mulf %221, %220 : vector<8x128xf32>
    %223 = arith.mulf %212, %153 : vector<8x128xf32>
    %224 = arith.mulf %204, %214 : vector<8x128xf32>
    %225 = arith.addf %223, %224 : vector<8x128xf32>
    %226 = math.tanh %225 : vector<8x128xf32>
    %227 = arith.mulf %222, %226 : vector<8x128xf32>
    %228 = tpu.concatenate %155, %192 in 1 : vector<8x128xf32>, vector<8x128xf32> -> vector<8x256xf32>
    %c0_92 = arith.constant 0 : index
    %c0_93 = arith.constant 0 : index
    %229 = vector.load %arg8[%c0_92, %c0_93] : memref<256x512xf32, #tpu.memory_space<vmem>>, vector<256x512xf32>
    %cst_94 = arith.constant dense<0.000000e+00> : vector<8x512xf32>
    %230 = tpu.matmul %228, %229, %cst_94 {dimension_numbers = #tpu.dot_dimension_numbers<[1], [0], [0], [1], [0, 0, 1, 1], [], []>} : vector<8x256xf32>, vector<256x512xf32>, vector<8x512xf32> -> vector<8x512xf32>
    %c0_95 = arith.constant 0 : index
    %c0_96 = arith.constant 0 : index
    %231 = vector.load %arg4[%c0_95, %c0_96] : memref<1x512xf32, #tpu.memory_space<vmem>>, vector<1x512xf32>
    %232 = vector.broadcast %231 : vector<1x512xf32> to vector<8x512xf32>
    %233 = arith.addf %230, %232 : vector<8x512xf32>
    %234 = vector.extract_strided_slice %233 {offsets = [0, 0], sizes = [8, 128], strides = [1, 1]} : vector<8x512xf32> to vector<8x128xf32>
    %cst_97 = arith.constant 5.000000e-01 : f32
    %235 = vector.broadcast %cst_97 : f32 to vector<8x128xf32>
    %236 = arith.mulf %235, %234 : vector<8x128xf32>
    %237 = math.tanh %236 : vector<8x128xf32>
    %cst_98 = arith.constant 1.000000e+00 : f32
    %238 = vector.broadcast %cst_98 : f32 to vector<8x128xf32>
    %239 = arith.addf %238, %237 : vector<8x128xf32>
    %cst_99 = arith.constant 5.000000e-01 : f32
    %240 = vector.broadcast %cst_99 : f32 to vector<8x128xf32>
    %241 = arith.mulf %240, %239 : vector<8x128xf32>
    %242 = vector.extract_strided_slice %233 {offsets = [0, 128], sizes = [8, 128], strides = [1, 1]} : vector<8x512xf32> to vector<8x128xf32>
    %cst_100 = arith.constant 5.000000e-01 : f32
    %243 = vector.broadcast %cst_100 : f32 to vector<8x128xf32>
    %244 = arith.mulf %243, %242 : vector<8x128xf32>
    %245 = math.tanh %244 : vector<8x128xf32>
    %cst_101 = arith.constant 1.000000e+00 : f32
    %246 = vector.broadcast %cst_101 : f32 to vector<8x128xf32>
    %247 = arith.addf %246, %245 : vector<8x128xf32>
    %cst_102 = arith.constant 5.000000e-01 : f32
    %248 = vector.broadcast %cst_102 : f32 to vector<8x128xf32>
    %249 = arith.mulf %248, %247 : vector<8x128xf32>
    %250 = vector.extract_strided_slice %233 {offsets = [0, 256], sizes = [8, 128], strides = [1, 1]} : vector<8x512xf32> to vector<8x128xf32>
    %251 = math.tanh %250 : vector<8x128xf32>
    %252 = vector.extract_strided_slice %233 {offsets = [0, 384], sizes = [8, 128], strides = [1, 1]} : vector<8x512xf32> to vector<8x128xf32>
    %cst_103 = arith.constant 5.000000e-01 : f32
    %253 = vector.broadcast %cst_103 : f32 to vector<8x128xf32>
    %254 = arith.mulf %253, %252 : vector<8x128xf32>
    %255 = math.tanh %254 : vector<8x128xf32>
    %cst_104 = arith.constant 1.000000e+00 : f32
    %256 = vector.broadcast %cst_104 : f32 to vector<8x128xf32>
    %257 = arith.addf %256, %255 : vector<8x128xf32>
    %cst_105 = arith.constant 5.000000e-01 : f32
    %258 = vector.broadcast %cst_105 : f32 to vector<8x128xf32>
    %259 = arith.mulf %258, %257 : vector<8x128xf32>
    %260 = arith.mulf %249, %190 : vector<8x128xf32>
    %261 = arith.mulf %241, %251 : vector<8x128xf32>
    %262 = arith.addf %260, %261 : vector<8x128xf32>
    %263 = math.tanh %262 : vector<8x128xf32>
    %264 = arith.mulf %259, %263 : vector<8x128xf32>
    %c32 = arith.constant 32 : index
    %c0_106 = arith.constant 0 : index
    %265 = vector.load %arg7[%c32, %c0_106] : memref<64x512xf32, #tpu.memory_space<vmem>>, vector<8x512xf32>
    %c0_107 = arith.constant 0 : index
    %c0_108 = arith.constant 0 : index
    %266 = vector.load %arg2[%c0_107, %c0_108] : memref<128x512xf32, #tpu.memory_space<vmem>>, vector<128x512xf32>
    %cst_109 = arith.constant dense<0.000000e+00> : vector<8x512xf32>
    %267 = tpu.matmul %227, %266, %cst_109 {dimension_numbers = #tpu.dot_dimension_numbers<[1], [0], [0], [1], [0, 0, 1, 1], [], []>} : vector<8x128xf32>, vector<128x512xf32>, vector<8x512xf32> -> vector<8x512xf32>
    %268 = arith.addf %265, %267 : vector<8x512xf32>
    %269 = vector.extract_strided_slice %268 {offsets = [0, 0], sizes = [8, 128], strides = [1, 1]} : vector<8x512xf32> to vector<8x128xf32>
    %cst_110 = arith.constant 5.000000e-01 : f32
    %270 = vector.broadcast %cst_110 : f32 to vector<8x128xf32>
    %271 = arith.mulf %270, %269 : vector<8x128xf32>
    %272 = math.tanh %271 : vector<8x128xf32>
    %cst_111 = arith.constant 1.000000e+00 : f32
    %273 = vector.broadcast %cst_111 : f32 to vector<8x128xf32>
    %274 = arith.addf %273, %272 : vector<8x128xf32>
    %cst_112 = arith.constant 5.000000e-01 : f32
    %275 = vector.broadcast %cst_112 : f32 to vector<8x128xf32>
    %276 = arith.mulf %275, %274 : vector<8x128xf32>
    %277 = vector.extract_strided_slice %268 {offsets = [0, 128], sizes = [8, 128], strides = [1, 1]} : vector<8x512xf32> to vector<8x128xf32>
    %cst_113 = arith.constant 5.000000e-01 : f32
    %278 = vector.broadcast %cst_113 : f32 to vector<8x128xf32>
    %279 = arith.mulf %278, %277 : vector<8x128xf32>
    %280 = math.tanh %279 : vector<8x128xf32>
    %cst_114 = arith.constant 1.000000e+00 : f32
    %281 = vector.broadcast %cst_114 : f32 to vector<8x128xf32>
    %282 = arith.addf %281, %280 : vector<8x128xf32>
    %cst_115 = arith.constant 5.000000e-01 : f32
    %283 = vector.broadcast %cst_115 : f32 to vector<8x128xf32>
    %284 = arith.mulf %283, %282 : vector<8x128xf32>
    %285 = vector.extract_strided_slice %268 {offsets = [0, 256], sizes = [8, 128], strides = [1, 1]} : vector<8x512xf32> to vector<8x128xf32>
    %286 = math.tanh %285 : vector<8x128xf32>
    %287 = vector.extract_strided_slice %268 {offsets = [0, 384], sizes = [8, 128], strides = [1, 1]} : vector<8x512xf32> to vector<8x128xf32>
    %cst_116 = arith.constant 5.000000e-01 : f32
    %288 = vector.broadcast %cst_116 : f32 to vector<8x128xf32>
    %289 = arith.mulf %288, %287 : vector<8x128xf32>
    %290 = math.tanh %289 : vector<8x128xf32>
    %cst_117 = arith.constant 1.000000e+00 : f32
    %291 = vector.broadcast %cst_117 : f32 to vector<8x128xf32>
    %292 = arith.addf %291, %290 : vector<8x128xf32>
    %cst_118 = arith.constant 5.000000e-01 : f32
    %293 = vector.broadcast %cst_118 : f32 to vector<8x128xf32>
    %294 = arith.mulf %293, %292 : vector<8x128xf32>
    %295 = arith.mulf %284, %225 : vector<8x128xf32>
    %296 = arith.mulf %276, %286 : vector<8x128xf32>
    %297 = arith.addf %295, %296 : vector<8x128xf32>
    %298 = math.tanh %297 : vector<8x128xf32>
    %299 = arith.mulf %294, %298 : vector<8x128xf32>
    %300 = tpu.concatenate %227, %264 in 1 : vector<8x128xf32>, vector<8x128xf32> -> vector<8x256xf32>
    %c0_119 = arith.constant 0 : index
    %c0_120 = arith.constant 0 : index
    %301 = vector.load %arg8[%c0_119, %c0_120] : memref<256x512xf32, #tpu.memory_space<vmem>>, vector<256x512xf32>
    %cst_121 = arith.constant dense<0.000000e+00> : vector<8x512xf32>
    %302 = tpu.matmul %300, %301, %cst_121 {dimension_numbers = #tpu.dot_dimension_numbers<[1], [0], [0], [1], [0, 0, 1, 1], [], []>} : vector<8x256xf32>, vector<256x512xf32>, vector<8x512xf32> -> vector<8x512xf32>
    %c0_122 = arith.constant 0 : index
    %c0_123 = arith.constant 0 : index
    %303 = vector.load %arg4[%c0_122, %c0_123] : memref<1x512xf32, #tpu.memory_space<vmem>>, vector<1x512xf32>
    %304 = vector.broadcast %303 : vector<1x512xf32> to vector<8x512xf32>
    %305 = arith.addf %302, %304 : vector<8x512xf32>
    %306 = vector.extract_strided_slice %305 {offsets = [0, 0], sizes = [8, 128], strides = [1, 1]} : vector<8x512xf32> to vector<8x128xf32>
    %cst_124 = arith.constant 5.000000e-01 : f32
    %307 = vector.broadcast %cst_124 : f32 to vector<8x128xf32>
    %308 = arith.mulf %307, %306 : vector<8x128xf32>
    %309 = math.tanh %308 : vector<8x128xf32>
    %cst_125 = arith.constant 1.000000e+00 : f32
    %310 = vector.broadcast %cst_125 : f32 to vector<8x128xf32>
    %311 = arith.addf %310, %309 : vector<8x128xf32>
    %cst_126 = arith.constant 5.000000e-01 : f32
    %312 = vector.broadcast %cst_126 : f32 to vector<8x128xf32>
    %313 = arith.mulf %312, %311 : vector<8x128xf32>
    %314 = vector.extract_strided_slice %305 {offsets = [0, 128], sizes = [8, 128], strides = [1, 1]} : vector<8x512xf32> to vector<8x128xf32>
    %cst_127 = arith.constant 5.000000e-01 : f32
    %315 = vector.broadcast %cst_127 : f32 to vector<8x128xf32>
    %316 = arith.mulf %315, %314 : vector<8x128xf32>
    %317 = math.tanh %316 : vector<8x128xf32>
    %cst_128 = arith.constant 1.000000e+00 : f32
    %318 = vector.broadcast %cst_128 : f32 to vector<8x128xf32>
    %319 = arith.addf %318, %317 : vector<8x128xf32>
    %cst_129 = arith.constant 5.000000e-01 : f32
    %320 = vector.broadcast %cst_129 : f32 to vector<8x128xf32>
    %321 = arith.mulf %320, %319 : vector<8x128xf32>
    %322 = vector.extract_strided_slice %305 {offsets = [0, 256], sizes = [8, 128], strides = [1, 1]} : vector<8x512xf32> to vector<8x128xf32>
    %323 = math.tanh %322 : vector<8x128xf32>
    %324 = vector.extract_strided_slice %305 {offsets = [0, 384], sizes = [8, 128], strides = [1, 1]} : vector<8x512xf32> to vector<8x128xf32>
    %cst_130 = arith.constant 5.000000e-01 : f32
    %325 = vector.broadcast %cst_130 : f32 to vector<8x128xf32>
    %326 = arith.mulf %325, %324 : vector<8x128xf32>
    %327 = math.tanh %326 : vector<8x128xf32>
    %cst_131 = arith.constant 1.000000e+00 : f32
    %328 = vector.broadcast %cst_131 : f32 to vector<8x128xf32>
    %329 = arith.addf %328, %327 : vector<8x128xf32>
    %cst_132 = arith.constant 5.000000e-01 : f32
    %330 = vector.broadcast %cst_132 : f32 to vector<8x128xf32>
    %331 = arith.mulf %330, %329 : vector<8x128xf32>
    %332 = arith.mulf %321, %262 : vector<8x128xf32>
    %333 = arith.mulf %313, %323 : vector<8x128xf32>
    %334 = arith.addf %332, %333 : vector<8x128xf32>
    %335 = math.tanh %334 : vector<8x128xf32>
    %336 = arith.mulf %331, %335 : vector<8x128xf32>
    %c40 = arith.constant 40 : index
    %c0_133 = arith.constant 0 : index
    %337 = vector.load %arg7[%c40, %c0_133] : memref<64x512xf32, #tpu.memory_space<vmem>>, vector<8x512xf32>
    %c0_134 = arith.constant 0 : index
    %c0_135 = arith.constant 0 : index
    %338 = vector.load %arg2[%c0_134, %c0_135] : memref<128x512xf32, #tpu.memory_space<vmem>>, vector<128x512xf32>
    %cst_136 = arith.constant dense<0.000000e+00> : vector<8x512xf32>
    %339 = tpu.matmul %299, %338, %cst_136 {dimension_numbers = #tpu.dot_dimension_numbers<[1], [0], [0], [1], [0, 0, 1, 1], [], []>} : vector<8x128xf32>, vector<128x512xf32>, vector<8x512xf32> -> vector<8x512xf32>
    %340 = arith.addf %337, %339 : vector<8x512xf32>
    %341 = vector.extract_strided_slice %340 {offsets = [0, 0], sizes = [8, 128], strides = [1, 1]} : vector<8x512xf32> to vector<8x128xf32>
    %cst_137 = arith.constant 5.000000e-01 : f32
    %342 = vector.broadcast %cst_137 : f32 to vector<8x128xf32>
    %343 = arith.mulf %342, %341 : vector<8x128xf32>
    %344 = math.tanh %343 : vector<8x128xf32>
    %cst_138 = arith.constant 1.000000e+00 : f32
    %345 = vector.broadcast %cst_138 : f32 to vector<8x128xf32>
    %346 = arith.addf %345, %344 : vector<8x128xf32>
    %cst_139 = arith.constant 5.000000e-01 : f32
    %347 = vector.broadcast %cst_139 : f32 to vector<8x128xf32>
    %348 = arith.mulf %347, %346 : vector<8x128xf32>
    %349 = vector.extract_strided_slice %340 {offsets = [0, 128], sizes = [8, 128], strides = [1, 1]} : vector<8x512xf32> to vector<8x128xf32>
    %cst_140 = arith.constant 5.000000e-01 : f32
    %350 = vector.broadcast %cst_140 : f32 to vector<8x128xf32>
    %351 = arith.mulf %350, %349 : vector<8x128xf32>
    %352 = math.tanh %351 : vector<8x128xf32>
    %cst_141 = arith.constant 1.000000e+00 : f32
    %353 = vector.broadcast %cst_141 : f32 to vector<8x128xf32>
    %354 = arith.addf %353, %352 : vector<8x128xf32>
    %cst_142 = arith.constant 5.000000e-01 : f32
    %355 = vector.broadcast %cst_142 : f32 to vector<8x128xf32>
    %356 = arith.mulf %355, %354 : vector<8x128xf32>
    %357 = vector.extract_strided_slice %340 {offsets = [0, 256], sizes = [8, 128], strides = [1, 1]} : vector<8x512xf32> to vector<8x128xf32>
    %358 = math.tanh %357 : vector<8x128xf32>
    %359 = vector.extract_strided_slice %340 {offsets = [0, 384], sizes = [8, 128], strides = [1, 1]} : vector<8x512xf32> to vector<8x128xf32>
    %cst_143 = arith.constant 5.000000e-01 : f32
    %360 = vector.broadcast %cst_143 : f32 to vector<8x128xf32>
    %361 = arith.mulf %360, %359 : vector<8x128xf32>
    %362 = math.tanh %361 : vector<8x128xf32>
    %cst_144 = arith.constant 1.000000e+00 : f32
    %363 = vector.broadcast %cst_144 : f32 to vector<8x128xf32>
    %364 = arith.addf %363, %362 : vector<8x128xf32>
    %cst_145 = arith.constant 5.000000e-01 : f32
    %365 = vector.broadcast %cst_145 : f32 to vector<8x128xf32>
    %366 = arith.mulf %365, %364 : vector<8x128xf32>
    %367 = arith.mulf %356, %297 : vector<8x128xf32>
    %368 = arith.mulf %348, %358 : vector<8x128xf32>
    %369 = arith.addf %367, %368 : vector<8x128xf32>
    %370 = math.tanh %369 : vector<8x128xf32>
    %371 = arith.mulf %366, %370 : vector<8x128xf32>
    %372 = tpu.concatenate %299, %336 in 1 : vector<8x128xf32>, vector<8x128xf32> -> vector<8x256xf32>
    %c0_146 = arith.constant 0 : index
    %c0_147 = arith.constant 0 : index
    %373 = vector.load %arg8[%c0_146, %c0_147] : memref<256x512xf32, #tpu.memory_space<vmem>>, vector<256x512xf32>
    %cst_148 = arith.constant dense<0.000000e+00> : vector<8x512xf32>
    %374 = tpu.matmul %372, %373, %cst_148 {dimension_numbers = #tpu.dot_dimension_numbers<[1], [0], [0], [1], [0, 0, 1, 1], [], []>} : vector<8x256xf32>, vector<256x512xf32>, vector<8x512xf32> -> vector<8x512xf32>
    %c0_149 = arith.constant 0 : index
    %c0_150 = arith.constant 0 : index
    %375 = vector.load %arg4[%c0_149, %c0_150] : memref<1x512xf32, #tpu.memory_space<vmem>>, vector<1x512xf32>
    %376 = vector.broadcast %375 : vector<1x512xf32> to vector<8x512xf32>
    %377 = arith.addf %374, %376 : vector<8x512xf32>
    %378 = vector.extract_strided_slice %377 {offsets = [0, 0], sizes = [8, 128], strides = [1, 1]} : vector<8x512xf32> to vector<8x128xf32>
    %cst_151 = arith.constant 5.000000e-01 : f32
    %379 = vector.broadcast %cst_151 : f32 to vector<8x128xf32>
    %380 = arith.mulf %379, %378 : vector<8x128xf32>
    %381 = math.tanh %380 : vector<8x128xf32>
    %cst_152 = arith.constant 1.000000e+00 : f32
    %382 = vector.broadcast %cst_152 : f32 to vector<8x128xf32>
    %383 = arith.addf %382, %381 : vector<8x128xf32>
    %cst_153 = arith.constant 5.000000e-01 : f32
    %384 = vector.broadcast %cst_153 : f32 to vector<8x128xf32>
    %385 = arith.mulf %384, %383 : vector<8x128xf32>
    %386 = vector.extract_strided_slice %377 {offsets = [0, 128], sizes = [8, 128], strides = [1, 1]} : vector<8x512xf32> to vector<8x128xf32>
    %cst_154 = arith.constant 5.000000e-01 : f32
    %387 = vector.broadcast %cst_154 : f32 to vector<8x128xf32>
    %388 = arith.mulf %387, %386 : vector<8x128xf32>
    %389 = math.tanh %388 : vector<8x128xf32>
    %cst_155 = arith.constant 1.000000e+00 : f32
    %390 = vector.broadcast %cst_155 : f32 to vector<8x128xf32>
    %391 = arith.addf %390, %389 : vector<8x128xf32>
    %cst_156 = arith.constant 5.000000e-01 : f32
    %392 = vector.broadcast %cst_156 : f32 to vector<8x128xf32>
    %393 = arith.mulf %392, %391 : vector<8x128xf32>
    %394 = vector.extract_strided_slice %377 {offsets = [0, 256], sizes = [8, 128], strides = [1, 1]} : vector<8x512xf32> to vector<8x128xf32>
    %395 = math.tanh %394 : vector<8x128xf32>
    %396 = vector.extract_strided_slice %377 {offsets = [0, 384], sizes = [8, 128], strides = [1, 1]} : vector<8x512xf32> to vector<8x128xf32>
    %cst_157 = arith.constant 5.000000e-01 : f32
    %397 = vector.broadcast %cst_157 : f32 to vector<8x128xf32>
    %398 = arith.mulf %397, %396 : vector<8x128xf32>
    %399 = math.tanh %398 : vector<8x128xf32>
    %cst_158 = arith.constant 1.000000e+00 : f32
    %400 = vector.broadcast %cst_158 : f32 to vector<8x128xf32>
    %401 = arith.addf %400, %399 : vector<8x128xf32>
    %cst_159 = arith.constant 5.000000e-01 : f32
    %402 = vector.broadcast %cst_159 : f32 to vector<8x128xf32>
    %403 = arith.mulf %402, %401 : vector<8x128xf32>
    %404 = arith.mulf %393, %334 : vector<8x128xf32>
    %405 = arith.mulf %385, %395 : vector<8x128xf32>
    %406 = arith.addf %404, %405 : vector<8x128xf32>
    %407 = math.tanh %406 : vector<8x128xf32>
    %408 = arith.mulf %403, %407 : vector<8x128xf32>
    %c48 = arith.constant 48 : index
    %c0_160 = arith.constant 0 : index
    %409 = vector.load %arg7[%c48, %c0_160] : memref<64x512xf32, #tpu.memory_space<vmem>>, vector<8x512xf32>
    %c0_161 = arith.constant 0 : index
    %c0_162 = arith.constant 0 : index
    %410 = vector.load %arg2[%c0_161, %c0_162] : memref<128x512xf32, #tpu.memory_space<vmem>>, vector<128x512xf32>
    %cst_163 = arith.constant dense<0.000000e+00> : vector<8x512xf32>
    %411 = tpu.matmul %371, %410, %cst_163 {dimension_numbers = #tpu.dot_dimension_numbers<[1], [0], [0], [1], [0, 0, 1, 1], [], []>} : vector<8x128xf32>, vector<128x512xf32>, vector<8x512xf32> -> vector<8x512xf32>
    %412 = arith.addf %409, %411 : vector<8x512xf32>
    %413 = vector.extract_strided_slice %412 {offsets = [0, 0], sizes = [8, 128], strides = [1, 1]} : vector<8x512xf32> to vector<8x128xf32>
    %cst_164 = arith.constant 5.000000e-01 : f32
    %414 = vector.broadcast %cst_164 : f32 to vector<8x128xf32>
    %415 = arith.mulf %414, %413 : vector<8x128xf32>
    %416 = math.tanh %415 : vector<8x128xf32>
    %cst_165 = arith.constant 1.000000e+00 : f32
    %417 = vector.broadcast %cst_165 : f32 to vector<8x128xf32>
    %418 = arith.addf %417, %416 : vector<8x128xf32>
    %cst_166 = arith.constant 5.000000e-01 : f32
    %419 = vector.broadcast %cst_166 : f32 to vector<8x128xf32>
    %420 = arith.mulf %419, %418 : vector<8x128xf32>
    %421 = vector.extract_strided_slice %412 {offsets = [0, 128], sizes = [8, 128], strides = [1, 1]} : vector<8x512xf32> to vector<8x128xf32>
    %cst_167 = arith.constant 5.000000e-01 : f32
    %422 = vector.broadcast %cst_167 : f32 to vector<8x128xf32>
    %423 = arith.mulf %422, %421 : vector<8x128xf32>
    %424 = math.tanh %423 : vector<8x128xf32>
    %cst_168 = arith.constant 1.000000e+00 : f32
    %425 = vector.broadcast %cst_168 : f32 to vector<8x128xf32>
    %426 = arith.addf %425, %424 : vector<8x128xf32>
    %cst_169 = arith.constant 5.000000e-01 : f32
    %427 = vector.broadcast %cst_169 : f32 to vector<8x128xf32>
    %428 = arith.mulf %427, %426 : vector<8x128xf32>
    %429 = vector.extract_strided_slice %412 {offsets = [0, 256], sizes = [8, 128], strides = [1, 1]} : vector<8x512xf32> to vector<8x128xf32>
    %430 = math.tanh %429 : vector<8x128xf32>
    %431 = vector.extract_strided_slice %412 {offsets = [0, 384], sizes = [8, 128], strides = [1, 1]} : vector<8x512xf32> to vector<8x128xf32>
    %cst_170 = arith.constant 5.000000e-01 : f32
    %432 = vector.broadcast %cst_170 : f32 to vector<8x128xf32>
    %433 = arith.mulf %432, %431 : vector<8x128xf32>
    %434 = math.tanh %433 : vector<8x128xf32>
    %cst_171 = arith.constant 1.000000e+00 : f32
    %435 = vector.broadcast %cst_171 : f32 to vector<8x128xf32>
    %436 = arith.addf %435, %434 : vector<8x128xf32>
    %cst_172 = arith.constant 5.000000e-01 : f32
    %437 = vector.broadcast %cst_172 : f32 to vector<8x128xf32>
    %438 = arith.mulf %437, %436 : vector<8x128xf32>
    %439 = arith.mulf %428, %369 : vector<8x128xf32>
    %440 = arith.mulf %420, %430 : vector<8x128xf32>
    %441 = arith.addf %439, %440 : vector<8x128xf32>
    %442 = math.tanh %441 : vector<8x128xf32>
    %443 = arith.mulf %438, %442 : vector<8x128xf32>
    %444 = tpu.concatenate %371, %408 in 1 : vector<8x128xf32>, vector<8x128xf32> -> vector<8x256xf32>
    %c0_173 = arith.constant 0 : index
    %c0_174 = arith.constant 0 : index
    %445 = vector.load %arg8[%c0_173, %c0_174] : memref<256x512xf32, #tpu.memory_space<vmem>>, vector<256x512xf32>
    %cst_175 = arith.constant dense<0.000000e+00> : vector<8x512xf32>
    %446 = tpu.matmul %444, %445, %cst_175 {dimension_numbers = #tpu.dot_dimension_numbers<[1], [0], [0], [1], [0, 0, 1, 1], [], []>} : vector<8x256xf32>, vector<256x512xf32>, vector<8x512xf32> -> vector<8x512xf32>
    %c0_176 = arith.constant 0 : index
    %c0_177 = arith.constant 0 : index
    %447 = vector.load %arg4[%c0_176, %c0_177] : memref<1x512xf32, #tpu.memory_space<vmem>>, vector<1x512xf32>
    %448 = vector.broadcast %447 : vector<1x512xf32> to vector<8x512xf32>
    %449 = arith.addf %446, %448 : vector<8x512xf32>
    %450 = vector.extract_strided_slice %449 {offsets = [0, 0], sizes = [8, 128], strides = [1, 1]} : vector<8x512xf32> to vector<8x128xf32>
    %cst_178 = arith.constant 5.000000e-01 : f32
    %451 = vector.broadcast %cst_178 : f32 to vector<8x128xf32>
    %452 = arith.mulf %451, %450 : vector<8x128xf32>
    %453 = math.tanh %452 : vector<8x128xf32>
    %cst_179 = arith.constant 1.000000e+00 : f32
    %454 = vector.broadcast %cst_179 : f32 to vector<8x128xf32>
    %455 = arith.addf %454, %453 : vector<8x128xf32>
    %cst_180 = arith.constant 5.000000e-01 : f32
    %456 = vector.broadcast %cst_180 : f32 to vector<8x128xf32>
    %457 = arith.mulf %456, %455 : vector<8x128xf32>
    %458 = vector.extract_strided_slice %449 {offsets = [0, 128], sizes = [8, 128], strides = [1, 1]} : vector<8x512xf32> to vector<8x128xf32>
    %cst_181 = arith.constant 5.000000e-01 : f32
    %459 = vector.broadcast %cst_181 : f32 to vector<8x128xf32>
    %460 = arith.mulf %459, %458 : vector<8x128xf32>
    %461 = math.tanh %460 : vector<8x128xf32>
    %cst_182 = arith.constant 1.000000e+00 : f32
    %462 = vector.broadcast %cst_182 : f32 to vector<8x128xf32>
    %463 = arith.addf %462, %461 : vector<8x128xf32>
    %cst_183 = arith.constant 5.000000e-01 : f32
    %464 = vector.broadcast %cst_183 : f32 to vector<8x128xf32>
    %465 = arith.mulf %464, %463 : vector<8x128xf32>
    %466 = vector.extract_strided_slice %449 {offsets = [0, 256], sizes = [8, 128], strides = [1, 1]} : vector<8x512xf32> to vector<8x128xf32>
    %467 = math.tanh %466 : vector<8x128xf32>
    %468 = vector.extract_strided_slice %449 {offsets = [0, 384], sizes = [8, 128], strides = [1, 1]} : vector<8x512xf32> to vector<8x128xf32>
    %cst_184 = arith.constant 5.000000e-01 : f32
    %469 = vector.broadcast %cst_184 : f32 to vector<8x128xf32>
    %470 = arith.mulf %469, %468 : vector<8x128xf32>
    %471 = math.tanh %470 : vector<8x128xf32>
    %cst_185 = arith.constant 1.000000e+00 : f32
    %472 = vector.broadcast %cst_185 : f32 to vector<8x128xf32>
    %473 = arith.addf %472, %471 : vector<8x128xf32>
    %cst_186 = arith.constant 5.000000e-01 : f32
    %474 = vector.broadcast %cst_186 : f32 to vector<8x128xf32>
    %475 = arith.mulf %474, %473 : vector<8x128xf32>
    %476 = arith.mulf %465, %406 : vector<8x128xf32>
    %477 = arith.mulf %457, %467 : vector<8x128xf32>
    %478 = arith.addf %476, %477 : vector<8x128xf32>
    %479 = math.tanh %478 : vector<8x128xf32>
    %480 = arith.mulf %475, %479 : vector<8x128xf32>
    %c56 = arith.constant 56 : index
    %c0_187 = arith.constant 0 : index
    %481 = vector.load %arg7[%c56, %c0_187] : memref<64x512xf32, #tpu.memory_space<vmem>>, vector<8x512xf32>
    %c0_188 = arith.constant 0 : index
    %c0_189 = arith.constant 0 : index
    %482 = vector.load %arg2[%c0_188, %c0_189] : memref<128x512xf32, #tpu.memory_space<vmem>>, vector<128x512xf32>
    %cst_190 = arith.constant dense<0.000000e+00> : vector<8x512xf32>
    %483 = tpu.matmul %443, %482, %cst_190 {dimension_numbers = #tpu.dot_dimension_numbers<[1], [0], [0], [1], [0, 0, 1, 1], [], []>} : vector<8x128xf32>, vector<128x512xf32>, vector<8x512xf32> -> vector<8x512xf32>
    %484 = arith.addf %481, %483 : vector<8x512xf32>
    %485 = vector.extract_strided_slice %484 {offsets = [0, 0], sizes = [8, 128], strides = [1, 1]} : vector<8x512xf32> to vector<8x128xf32>
    %cst_191 = arith.constant 5.000000e-01 : f32
    %486 = vector.broadcast %cst_191 : f32 to vector<8x128xf32>
    %487 = arith.mulf %486, %485 : vector<8x128xf32>
    %488 = math.tanh %487 : vector<8x128xf32>
    %cst_192 = arith.constant 1.000000e+00 : f32
    %489 = vector.broadcast %cst_192 : f32 to vector<8x128xf32>
    %490 = arith.addf %489, %488 : vector<8x128xf32>
    %cst_193 = arith.constant 5.000000e-01 : f32
    %491 = vector.broadcast %cst_193 : f32 to vector<8x128xf32>
    %492 = arith.mulf %491, %490 : vector<8x128xf32>
    %493 = vector.extract_strided_slice %484 {offsets = [0, 128], sizes = [8, 128], strides = [1, 1]} : vector<8x512xf32> to vector<8x128xf32>
    %cst_194 = arith.constant 5.000000e-01 : f32
    %494 = vector.broadcast %cst_194 : f32 to vector<8x128xf32>
    %495 = arith.mulf %494, %493 : vector<8x128xf32>
    %496 = math.tanh %495 : vector<8x128xf32>
    %cst_195 = arith.constant 1.000000e+00 : f32
    %497 = vector.broadcast %cst_195 : f32 to vector<8x128xf32>
    %498 = arith.addf %497, %496 : vector<8x128xf32>
    %cst_196 = arith.constant 5.000000e-01 : f32
    %499 = vector.broadcast %cst_196 : f32 to vector<8x128xf32>
    %500 = arith.mulf %499, %498 : vector<8x128xf32>
    %501 = vector.extract_strided_slice %484 {offsets = [0, 256], sizes = [8, 128], strides = [1, 1]} : vector<8x512xf32> to vector<8x128xf32>
    %502 = math.tanh %501 : vector<8x128xf32>
    %503 = vector.extract_strided_slice %484 {offsets = [0, 384], sizes = [8, 128], strides = [1, 1]} : vector<8x512xf32> to vector<8x128xf32>
    %cst_197 = arith.constant 5.000000e-01 : f32
    %504 = vector.broadcast %cst_197 : f32 to vector<8x128xf32>
    %505 = arith.mulf %504, %503 : vector<8x128xf32>
    %506 = math.tanh %505 : vector<8x128xf32>
    %cst_198 = arith.constant 1.000000e+00 : f32
    %507 = vector.broadcast %cst_198 : f32 to vector<8x128xf32>
    %508 = arith.addf %507, %506 : vector<8x128xf32>
    %cst_199 = arith.constant 5.000000e-01 : f32
    %509 = vector.broadcast %cst_199 : f32 to vector<8x128xf32>
    %510 = arith.mulf %509, %508 : vector<8x128xf32>
    %511 = arith.mulf %500, %441 : vector<8x128xf32>
    %512 = arith.mulf %492, %502 : vector<8x128xf32>
    %513 = arith.addf %511, %512 : vector<8x128xf32>
    %514 = math.tanh %513 : vector<8x128xf32>
    %515 = arith.mulf %510, %514 : vector<8x128xf32>
    %516 = tpu.concatenate %443, %480 in 1 : vector<8x128xf32>, vector<8x128xf32> -> vector<8x256xf32>
    %c0_200 = arith.constant 0 : index
    %c0_201 = arith.constant 0 : index
    %517 = vector.load %arg8[%c0_200, %c0_201] : memref<256x512xf32, #tpu.memory_space<vmem>>, vector<256x512xf32>
    %cst_202 = arith.constant dense<0.000000e+00> : vector<8x512xf32>
    %518 = tpu.matmul %516, %517, %cst_202 {dimension_numbers = #tpu.dot_dimension_numbers<[1], [0], [0], [1], [0, 0, 1, 1], [], []>} : vector<8x256xf32>, vector<256x512xf32>, vector<8x512xf32> -> vector<8x512xf32>
    %c0_203 = arith.constant 0 : index
    %c0_204 = arith.constant 0 : index
    %519 = vector.load %arg4[%c0_203, %c0_204] : memref<1x512xf32, #tpu.memory_space<vmem>>, vector<1x512xf32>
    %520 = vector.broadcast %519 : vector<1x512xf32> to vector<8x512xf32>
    %521 = arith.addf %518, %520 : vector<8x512xf32>
    %522 = vector.extract_strided_slice %521 {offsets = [0, 0], sizes = [8, 128], strides = [1, 1]} : vector<8x512xf32> to vector<8x128xf32>
    %cst_205 = arith.constant 5.000000e-01 : f32
    %523 = vector.broadcast %cst_205 : f32 to vector<8x128xf32>
    %524 = arith.mulf %523, %522 : vector<8x128xf32>
    %525 = math.tanh %524 : vector<8x128xf32>
    %cst_206 = arith.constant 1.000000e+00 : f32
    %526 = vector.broadcast %cst_206 : f32 to vector<8x128xf32>
    %527 = arith.addf %526, %525 : vector<8x128xf32>
    %cst_207 = arith.constant 5.000000e-01 : f32
    %528 = vector.broadcast %cst_207 : f32 to vector<8x128xf32>
    %529 = arith.mulf %528, %527 : vector<8x128xf32>
    %530 = vector.extract_strided_slice %521 {offsets = [0, 128], sizes = [8, 128], strides = [1, 1]} : vector<8x512xf32> to vector<8x128xf32>
    %cst_208 = arith.constant 5.000000e-01 : f32
    %531 = vector.broadcast %cst_208 : f32 to vector<8x128xf32>
    %532 = arith.mulf %531, %530 : vector<8x128xf32>
    %533 = math.tanh %532 : vector<8x128xf32>
    %cst_209 = arith.constant 1.000000e+00 : f32
    %534 = vector.broadcast %cst_209 : f32 to vector<8x128xf32>
    %535 = arith.addf %534, %533 : vector<8x128xf32>
    %cst_210 = arith.constant 5.000000e-01 : f32
    %536 = vector.broadcast %cst_210 : f32 to vector<8x128xf32>
    %537 = arith.mulf %536, %535 : vector<8x128xf32>
    %538 = vector.extract_strided_slice %521 {offsets = [0, 256], sizes = [8, 128], strides = [1, 1]} : vector<8x512xf32> to vector<8x128xf32>
    %539 = math.tanh %538 : vector<8x128xf32>
    %540 = vector.extract_strided_slice %521 {offsets = [0, 384], sizes = [8, 128], strides = [1, 1]} : vector<8x512xf32> to vector<8x128xf32>
    %cst_211 = arith.constant 5.000000e-01 : f32
    %541 = vector.broadcast %cst_211 : f32 to vector<8x128xf32>
    %542 = arith.mulf %541, %540 : vector<8x128xf32>
    %543 = math.tanh %542 : vector<8x128xf32>
    %cst_212 = arith.constant 1.000000e+00 : f32
    %544 = vector.broadcast %cst_212 : f32 to vector<8x128xf32>
    %545 = arith.addf %544, %543 : vector<8x128xf32>
    %cst_213 = arith.constant 5.000000e-01 : f32
    %546 = vector.broadcast %cst_213 : f32 to vector<8x128xf32>
    %547 = arith.mulf %546, %545 : vector<8x128xf32>
    %548 = arith.mulf %537, %478 : vector<8x128xf32>
    %549 = arith.mulf %529, %539 : vector<8x128xf32>
    %550 = arith.addf %548, %549 : vector<8x128xf32>
    %551 = math.tanh %550 : vector<8x128xf32>
    %552 = arith.mulf %547, %551 : vector<8x128xf32>
    %553 = tpu.concatenate %515, %552 in 1 : vector<8x128xf32>, vector<8x128xf32> -> vector<8x256xf32>
    %c0_214 = arith.constant 0 : index
    %c0_215 = arith.constant 0 : index
    %554 = vector.load %arg8[%c0_214, %c0_215] : memref<256x512xf32, #tpu.memory_space<vmem>>, vector<256x512xf32>
    %cst_216 = arith.constant dense<0.000000e+00> : vector<8x512xf32>
    %555 = tpu.matmul %553, %554, %cst_216 {dimension_numbers = #tpu.dot_dimension_numbers<[1], [0], [0], [1], [0, 0, 1, 1], [], []>} : vector<8x256xf32>, vector<256x512xf32>, vector<8x512xf32> -> vector<8x512xf32>
    %c0_217 = arith.constant 0 : index
    %c0_218 = arith.constant 0 : index
    %556 = vector.load %arg4[%c0_217, %c0_218] : memref<1x512xf32, #tpu.memory_space<vmem>>, vector<1x512xf32>
    %557 = vector.broadcast %556 : vector<1x512xf32> to vector<8x512xf32>
    %558 = arith.addf %555, %557 : vector<8x512xf32>
    %559 = vector.extract_strided_slice %558 {offsets = [0, 0], sizes = [8, 128], strides = [1, 1]} : vector<8x512xf32> to vector<8x128xf32>
    %cst_219 = arith.constant 5.000000e-01 : f32
    %560 = vector.broadcast %cst_219 : f32 to vector<8x128xf32>
    %561 = arith.mulf %560, %559 : vector<8x128xf32>
    %562 = math.tanh %561 : vector<8x128xf32>
    %cst_220 = arith.constant 1.000000e+00 : f32
    %563 = vector.broadcast %cst_220 : f32 to vector<8x128xf32>
    %564 = arith.addf %563, %562 : vector<8x128xf32>
    %cst_221 = arith.constant 5.000000e-01 : f32
    %565 = vector.broadcast %cst_221 : f32 to vector<8x128xf32>
    %566 = arith.mulf %565, %564 : vector<8x128xf32>
    %567 = vector.extract_strided_slice %558 {offsets = [0, 128], sizes = [8, 128], strides = [1, 1]} : vector<8x512xf32> to vector<8x128xf32>
    %cst_222 = arith.constant 5.000000e-01 : f32
    %568 = vector.broadcast %cst_222 : f32 to vector<8x128xf32>
    %569 = arith.mulf %568, %567 : vector<8x128xf32>
    %570 = math.tanh %569 : vector<8x128xf32>
    %cst_223 = arith.constant 1.000000e+00 : f32
    %571 = vector.broadcast %cst_223 : f32 to vector<8x128xf32>
    %572 = arith.addf %571, %570 : vector<8x128xf32>
    %cst_224 = arith.constant 5.000000e-01 : f32
    %573 = vector.broadcast %cst_224 : f32 to vector<8x128xf32>
    %574 = arith.mulf %573, %572 : vector<8x128xf32>
    %575 = vector.extract_strided_slice %558 {offsets = [0, 256], sizes = [8, 128], strides = [1, 1]} : vector<8x512xf32> to vector<8x128xf32>
    %576 = math.tanh %575 : vector<8x128xf32>
    %577 = vector.extract_strided_slice %558 {offsets = [0, 384], sizes = [8, 128], strides = [1, 1]} : vector<8x512xf32> to vector<8x128xf32>
    %cst_225 = arith.constant 5.000000e-01 : f32
    %578 = vector.broadcast %cst_225 : f32 to vector<8x128xf32>
    %579 = arith.mulf %578, %577 : vector<8x128xf32>
    %580 = math.tanh %579 : vector<8x128xf32>
    %cst_226 = arith.constant 1.000000e+00 : f32
    %581 = vector.broadcast %cst_226 : f32 to vector<8x128xf32>
    %582 = arith.addf %581, %580 : vector<8x128xf32>
    %cst_227 = arith.constant 5.000000e-01 : f32
    %583 = vector.broadcast %cst_227 : f32 to vector<8x128xf32>
    %584 = arith.mulf %583, %582 : vector<8x128xf32>
    %585 = arith.mulf %574, %550 : vector<8x128xf32>
    %586 = arith.mulf %566, %576 : vector<8x128xf32>
    %587 = arith.addf %585, %586 : vector<8x128xf32>
    %588 = math.tanh %587 : vector<8x128xf32>
    %589 = arith.mulf %584, %588 : vector<8x128xf32>
    %c0_228 = arith.constant 0 : index
    %c0_229 = arith.constant 0 : index
    %590 = vector.load %arg6[%c0_228, %c0_229] : memref<8x128xf32, #tpu.memory_space<vmem>>, vector<8x128xf32>
    tpu.vector_store %arg6[%c0_228, %c0_229], %589 {strides = array<i32>} : memref<8x128xf32, #tpu.memory_space<vmem>>, vector<8x128xf32>,
    return
  }
}

</mosaic_0001>

<bundles_post_ra>
// kernel: encoder_forward.1
= control target key start
LH: loop header
LB: loop body
LE: loop exit
PB: predicated region body
PF: predicated region fallthrough
CT: control target
= control target key end

     0   :  { %s7995_s0 = inlined_call_operand.vmem [shape: f32[64,128], index: 0, kind: input, shape index: {}]   ;;  %s7996_s1 = inlined_call_operand.vmem [shape: f32[128,512], index: 1, kind: input, shape index: {}]   ;;  %s7997_s2 = inlined_call_operand.vmem [shape: f32[128,512], index: 2, kind: input, shape index: {}]   ;;  %s7998_s3 = inlined_call_operand.vmem [shape: f32[1,512], index: 3, kind: input, shape index: {}]   ;;  %s7999_s4 = inlined_call_operand.vmem [shape: f32[1,512], index: 4, kind: input, shape index: {}]   ;;  %s8000_s5 = inlined_call_operand.vmem [shape: f32[256,512], index: 5, kind: input, shape index: {}]   ;;  %s8001_s6 = inlined_call_operand.vmem [shape: f32[8,128], index: 6, kind: output, shape index: {}]  }
   0x1   :  { %v5461_v0 = vld [vmem:[%s8000_s5] sm:$0xff]  ;;  %v5466_v1 = vld [vmem:[%s8000_s5 + $0x8] sm:$0xff]  ;;  %v5471_v2 = vld [vmem:[%s8000_s5 + $0x10] sm:$0xff] }
   0x2   :  { %v5476_v3 = vld [vmem:[%s8000_s5 + $0x18] sm:$0xff]  ;;  %v5481_v4 = vld [vmem:[%s8000_s5 + $0x20] sm:$0xff]  ;;  %v5486_v5 = vld [vmem:[%s8000_s5 + $0x28] sm:$0xff] }
   0x3   :  { %v5491_v6 = vld [vmem:[%s8000_s5 + $0x30] sm:$0xff]  ;;  %v5496_v7 = vld [vmem:[%s8000_s5 + $0x38] sm:$0xff]  ;;  %v5501_v8 = vld [vmem:[%s8000_s5 + $0x40] sm:$0xff] }
   0x4   :  { %v5506_v9 = vld [vmem:[%s8000_s5 + $0x48] sm:$0xff]  ;;  %v5511_v10 = vld [vmem:[%s8000_s5 + $0x50] sm:$0xff]  ;;  %v5516_v11 = vld [vmem:[%s8000_s5 + $0x58] sm:$0xff] }
   0x5   :  { %v5521_v12 = vld [vmem:[%s8000_s5 + $0x60] sm:$0xff]  ;;  %v5526_v13 = vld [vmem:[%s8000_s5 + $0x68] sm:$0xff]  ;;  %v5531_v14 = vld [vmem:[%s8000_s5 + $0x70] sm:$0xff] }
   0x6   :  { %v5536_v15 = vld [vmem:[%s8000_s5 + $0x78] sm:$0xff]  ;;  %v5541_v16 = vld [vmem:[%s8000_s5 + $0x80] sm:$0xff]  ;;  %v5546_v17 = vld [vmem:[%s8000_s5 + $0x88] sm:$0xff] }
   0x7   :  { %v5551_v18 = vld [vmem:[%s8000_s5 + $0x90] sm:$0xff]  ;;  %v5556_v19 = vld [vmem:[%s8000_s5 + $0x98] sm:$0xff]  ;;  %v5561_v20 = vld [vmem:[%s8000_s5 + $0xa0] sm:$0xff] }
   0x8   :  { %v5566_v21 = vld [vmem:[%s8000_s5 + $0xa8] sm:$0xff]  ;;  %v5571_v22 = vld [vmem:[%s8000_s5 + $0xb0] sm:$0xff]  ;;  %v5576_v23 = vld [vmem:[%s8000_s5 + $0xb8] sm:$0xff] }
   0x9   :  { %v5581_v24 = vld [vmem:[%s8000_s5 + $0xc0] sm:$0xff]  ;;  %v5586_v25 = vld [vmem:[%s8000_s5 + $0xc8] sm:$0xff]  ;;  %v5591_v26 = vld [vmem:[%s8000_s5 + $0xd0] sm:$0xff] }
   0xa   :  { %v5596_v27 = vld [vmem:[%s8000_s5 + $0xd8] sm:$0xff]  ;;  %v5601_v28 = vld [vmem:[%s8000_s5 + $0xe0] sm:$0xff]  ;;  %v5606_v29 = vld [vmem:[%s8000_s5 + $0xe8] sm:$0xff] }
   0xb   :  { %v5611_v30 = vld [vmem:[%s8000_s5 + $0xf0] sm:$0xff]  ;;  %v5616_v31 = vld [vmem:[%s8000_s5 + $0xf8] sm:$0xff]  ;;  %v5621_v32 = vld [vmem:[%s8000_s5 + $0x100] sm:$0xff] }
   0xc   :  { %v5626_v33 = vld [vmem:[%s8000_s5 + $0x108] sm:$0xff]  ;;  %v5631_v34 = vld [vmem:[%s8000_s5 + $0x110] sm:$0xff]  ;;  %v5636_v35 = vld [vmem:[%s8000_s5 + $0x118] sm:$0xff] }
   0xd   :  { %v5641_v36 = vld [vmem:[%s8000_s5 + $0x120] sm:$0xff]  ;;  %v5646_v37 = vld [vmem:[%s8000_s5 + $0x128] sm:$0xff]  ;;  %v5651_v38 = vld [vmem:[%s8000_s5 + $0x130] sm:$0xff] }
   0xe   :  { %v5656_v39 = vld [vmem:[%s8000_s5 + $0x138] sm:$0xff]  ;;  %v5661_v40 = vld [vmem:[%s8000_s5 + $0x140] sm:$0xff]  ;;  %v5666_v41 = vld [vmem:[%s8000_s5 + $0x148] sm:$0xff] }
   0xf   :  { %v5671_v42 = vld [vmem:[%s8000_s5 + $0x150] sm:$0xff]  ;;  %v5676_v43 = vld [vmem:[%s8000_s5 + $0x158] sm:$0xff]  ;;  %v5681_v44 = vld [vmem:[%s8000_s5 + $0x160] sm:$0xff] }
  0x10   :  { %8187 = vst [vmem:[#allocation7_spill] sm:$0xff] %v5671_v42  ;;  %8188 = vst [vmem:[#allocation8_spill] sm:$0xff] %v5676_v43  ;;  %v5686_v45 = vld [vmem:[%s8000_s5 + $0x168] sm:$0xff]  ;;  %v5691_v46 = vld [vmem:[%s8000_s5 + $0x170] sm:$0xff] }
  0x11   :  { %8189 = vst [vmem:[#allocation9_spill] sm:$0xff] %v5681_v44  ;;  %8190 = vst [vmem:[#allocation10_spill] sm:$0xff] %v5691_v46  ;;  %v5696_v47 = vld [vmem:[%s8000_s5 + $0x178] sm:$0xff]  ;;  %v5701_v48 = vld [vmem:[%s8000_s5 + $0x180] sm:$0xff] }
  0x12   :  { %8191 = vst [vmem:[#allocation11_spill] sm:$0xff] %v5696_v47  ;;  %8192 = vst [vmem:[#allocation12_spill] sm:$0xff] %v5701_v48  ;;  %v5706_v49 = vld [vmem:[%s8000_s5 + $0x188] sm:$0xff]  ;;  %v5711_v50 = vld [vmem:[%s8000_s5 + $0x190] sm:$0xff] }
  0x13   :  { %8193 = vst [vmem:[#allocation13_spill] sm:$0xff] %v5706_v49  ;;  %8194 = vst [vmem:[#allocation14_spill] sm:$0xff] %v5711_v50  ;;  %v5716_v51 = vld [vmem:[%s8000_s5 + $0x198] sm:$0xff]  ;;  %v5721_v52 = vld [vmem:[%s8000_s5 + $0x1a0] sm:$0xff] }
  0x14   :  { %8195 = vst [vmem:[#allocation15_spill] sm:$0xff] %v5716_v51  ;;  %8196 = vst [vmem:[#allocation16_spill] sm:$0xff] %v5721_v52  ;;  %v5726_v53 = vld [vmem:[%s8000_s5 + $0x1a8] sm:$0xff]  ;;  %v5731_v54 = vld [vmem:[%s8000_s5 + $0x1b0] sm:$0xff] }
  0x15   :  { %8197 = vst [vmem:[#allocation17_spill] sm:$0xff] %v5726_v53  ;;  %8198 = vst [vmem:[#allocation18_spill] sm:$0xff] %v5731_v54  ;;  %v5736_v55 = vld [vmem:[%s8000_s5 + $0x1b8] sm:$0xff]  ;;  %v5741_v56 = vld [vmem:[%s8000_s5 + $0x1c0] sm:$0xff] }
  0x16   :  { %8199 = vst [vmem:[#allocation19_spill] sm:$0xff] %v5736_v55  ;;  %8200 = vst [vmem:[#allocation20_spill] sm:$0xff] %v5741_v56  ;;  %v5746_v57 = vld [vmem:[%s8000_s5 + $0x1c8] sm:$0xff]  ;;  %v5751_v58 = vld [vmem:[%s8000_s5 + $0x1d0] sm:$0xff] }
  0x17   :  { %8201 = vst [vmem:[#allocation21_spill] sm:$0xff] %v5746_v57  ;;  %8202 = vst [vmem:[#allocation22_spill] sm:$0xff] %v5751_v58  ;;  %v5756_v59 = vld [vmem:[%s8000_s5 + $0x1d8] sm:$0xff]  ;;  %v5761_v60 = vld [vmem:[%s8000_s5 + $0x1e0] sm:$0xff] }
  0x18   :  { %8203 = vst [vmem:[#allocation23_spill] sm:$0xff] %v5756_v59  ;;  %8204 = vst [vmem:[#allocation24_spill] sm:$0xff] %v5761_v60  ;;  %v5766_v61 = vld [vmem:[%s8000_s5 + $0x1e8] sm:$0xff]  ;;  %v5771_v62 = vld [vmem:[%s8000_s5 + $0x1f0] sm:$0xff] }
  0x19   :  { %8205 = vst [vmem:[#allocation25_spill] sm:$0xff] %v5766_v61  ;;  %8206 = vst [vmem:[#allocation26_spill] sm:$0xff] %v5771_v62  ;;  %v5776_v63 = vld [vmem:[%s8000_s5 + $0x1f8] sm:$0xff]  ;;  %v5781_v58 = vld [vmem:[%s8000_s5 + $0x200] sm:$0xff] }
  0x1a   :  { %8207 = vst [vmem:[#allocation27_spill] sm:$0xff] %v5776_v63  ;;  %8208 = vst [vmem:[#allocation28_spill] sm:$0xff] %v5781_v58  ;;  %v5786_v59 = vld [vmem:[%s8000_s5 + $0x208] sm:$0xff]  ;;  %v5791_v60 = vld [vmem:[%s8000_s5 + $0x210] sm:$0xff] }
  0x1b   :  { %8209 = vst [vmem:[#allocation29_spill] sm:$0xff] %v5786_v59  ;;  %8210 = vst [vmem:[#allocation30_spill] sm:$0xff] %v5791_v60  ;;  %v5796_v62 = vld [vmem:[%s8000_s5 + $0x218] sm:$0xff]  ;;  %v5801_v63 = vld [vmem:[%s8000_s5 + $0x220] sm:$0xff] }
  0x1c   :  { %8211 = vst [vmem:[#allocation31_spill] sm:$0xff] %v5796_v62  ;;  %8212 = vst [vmem:[#allocation32_spill] sm:$0xff] %v5801_v63  ;;  %v5806_v58 = vld [vmem:[%s8000_s5 + $0x228] sm:$0xff]  ;;  %v5811_v59 = vld [vmem:[%s8000_s5 + $0x230] sm:$0xff] }
  0x1d   :  { %8213 = vst [vmem:[#allocation33_spill] sm:$0xff] %v5806_v58  ;;  %8214 = vst [vmem:[#allocation34_spill] sm:$0xff] %v5811_v59  ;;  %v5816_v60 = vld [vmem:[%s8000_s5 + $0x238] sm:$0xff]  ;;  %v5821_v62 = vld [vmem:[%s8000_s5 + $0x240] sm:$0xff] }
  0x1e   :  { %8215 = vst [vmem:[#allocation35_spill] sm:$0xff] %v5816_v60  ;;  %8216 = vst [vmem:[#allocation36_spill] sm:$0xff] %v5821_v62  ;;  %v5826_v63 = vld [vmem:[%s8000_s5 + $0x248] sm:$0xff]  ;;  %v5831_v58 = vld [vmem:[%s8000_s5 + $0x250] sm:$0xff] }
  0x1f   :  { %8217 = vst [vmem:[#allocation37_spill] sm:$0xff] %v5826_v63  ;;  %8218 = vst [vmem:[#allocation38_spill] sm:$0xff] %v5831_v58  ;;  %v5836_v59 = vld [vmem:[%s8000_s5 + $0x258] sm:$0xff]  ;;  %v5841_v60 = vld [vmem:[%s8000_s5 + $0x260] sm:$0xff] }
  0x20   :  { %8219 = vst [vmem:[#allocation39_spill] sm:$0xff] %v5836_v59  ;;  %8220 = vst [vmem:[#allocation40_spill] sm:$0xff] %v5841_v60  ;;  %v5846_v62 = vld [vmem:[%s8000_s5 + $0x268] sm:$0xff]  ;;  %v5851_v63 = vld [vmem:[%s8000_s5 + $0x270] sm:$0xff] }
  0x21   :  { %8221 = vst [vmem:[#allocation41_spill] sm:$0xff] %v5846_v62  ;;  %8222 = vst [vmem:[#allocation42_spill] sm:$0xff] %v5851_v63  ;;  %v5856_v58 = vld [vmem:[%s8000_s5 + $0x278] sm:$0xff]  ;;  %v5861_v59 = vld [vmem:[%s8000_s5 + $0x280] sm:$0xff] }
  0x22   :  { %8223 = vst [vmem:[#allocation43_spill] sm:$0xff] %v5856_v58  ;;  %8224 = vst [vmem:[#allocation44_spill] sm:$0xff] %v5861_v59  ;;  %v5866_v60 = vld [vmem:[%s8000_s5 + $0x288] sm:$0xff]  ;;  %v5871_v62 = vld [vmem:[%s8000_s5 + $0x290] sm:$0xff] }
  0x23   :  { %8225 = vst [vmem:[#allocation45_spill] sm:$0xff] %v5866_v60  ;;  %8226 = vst [vmem:[#allocation46_spill] sm:$0xff] %v5871_v62  ;;  %v5876_v63 = vld [vmem:[%s8000_s5 + $0x298] sm:$0xff]  ;;  %v5881_v58 = vld [vmem:[%s8000_s5 + $0x2a0] sm:$0xff] }
  0x24   :  { %8227 = vst [vmem:[#allocation47_spill] sm:$0xff] %v5876_v63  ;;  %8228 = vst [vmem:[#allocation48_spill] sm:$0xff] %v5881_v58  ;;  %v5886_v59 = vld [vmem:[%s8000_s5 + $0x2a8] sm:$0xff]  ;;  %v5891_v60 = vld [vmem:[%s8000_s5 + $0x2b0] sm:$0xff] }
  0x25   :  { %8229 = vst [vmem:[#allocation49_spill] sm:$0xff] %v5886_v59  ;;  %8230 = vst [vmem:[#allocation50_spill] sm:$0xff] %v5891_v60  ;;  %v5896_v62 = vld [vmem:[%s8000_s5 + $0x2b8] sm:$0xff]  ;;  %v5901_v63 = vld [vmem:[%s8000_s5 + $0x2c0] sm:$0xff] }
  0x26   :  { %8231 = vst [vmem:[#allocation51_spill] sm:$0xff] %v5896_v62  ;;  %8232 = vst [vmem:[#allocation52_spill] sm:$0xff] %v5901_v63  ;;  %v5906_v58 = vld [vmem:[%s8000_s5 + $0x2c8] sm:$0xff]  ;;  %v5911_v59 = vld [vmem:[%s8000_s5 + $0x2d0] sm:$0xff] }
  0x27   :  { %8233 = vst [vmem:[#allocation53_spill] sm:$0xff] %v5906_v58  ;;  %8234 = vst [vmem:[#allocation54_spill] sm:$0xff] %v5911_v59  ;;  %v5916_v60 = vld [vmem:[%s8000_s5 + $0x2d8] sm:$0xff]  ;;  %v5921_v62 = vld [vmem:[%s8000_s5 + $0x2e0] sm:$0xff] }
  0x28   :  { %8235 = vst [vmem:[#allocation55_spill] sm:$0xff] %v5916_v60  ;;  %8236 = vst [vmem:[#allocation56_spill] sm:$0xff] %v5921_v62  ;;  %v5926_v63 = vld [vmem:[%s8000_s5 + $0x2e8] sm:$0xff]  ;;  %v5931_v58 = vld [vmem:[%s8000_s5 + $0x2f0] sm:$0xff] }
  0x29   :  { %8237 = vst [vmem:[#allocation57_spill] sm:$0xff] %v5926_v63  ;;  %8238 = vst [vmem:[#allocation58_spill] sm:$0xff] %v5931_v58  ;;  %v5936_v59 = vld [vmem:[%s8000_s5 + $0x2f8] sm:$0xff]  ;;  %v5941_v60 = vld [vmem:[%s8000_s5 + $0x300] sm:$0xff] }
  0x2a   :  { %8239 = vst [vmem:[#allocation59_spill] sm:$0xff] %v5936_v59  ;;  %8240 = vst [vmem:[#allocation60_spill] sm:$0xff] %v5941_v60  ;;  %v5946_v62 = vld [vmem:[%s8000_s5 + $0x308] sm:$0xff]  ;;  %v5951_v63 = vld [vmem:[%s8000_s5 + $0x310] sm:$0xff] }
  0x2b   :  { %8241 = vst [vmem:[#allocation61_spill] sm:$0xff] %v5946_v62  ;;  %8242 = vst [vmem:[#allocation62_spill] sm:$0xff] %v5951_v63  ;;  %v5956_v58 = vld [vmem:[%s8000_s5 + $0x318] sm:$0xff]  ;;  %v5961_v59 = vld [vmem:[%s8000_s5 + $0x320] sm:$0xff] }
  0x2c   :  { %8243 = vst [vmem:[#allocation63_spill] sm:$0xff] %v5956_v58  ;;  %8244 = vst [vmem:[#allocation64_spill] sm:$0xff] %v5961_v59  ;;  %v5966_v60 = vld [vmem:[%s8000_s5 + $0x328] sm:$0xff]  ;;  %v5971_v62 = vld [vmem:[%s8000_s5 + $0x330] sm:$0xff] }
  0x2d   :  { %8245 = vst [vmem:[#allocation65_spill] sm:$0xff] %v5966_v60  ;;  %8246 = vst [vmem:[#allocation66_spill] sm:$0xff] %v5971_v62  ;;  %v5976_v63 = vld [vmem:[%s8000_s5 + $0x338] sm:$0xff]  ;;  %v5981_v58 = vld [vmem:[%s8000_s5 + $0x340] sm:$0xff] }
  0x2e   :  { %8247 = vst [vmem:[#allocation67_spill] sm:$0xff] %v5976_v63  ;;  %8248 = vst [vmem:[#allocation68_spill] sm:$0xff] %v5981_v58  ;;  %v5986_v59 = vld [vmem:[%s8000_s5 + $0x348] sm:$0xff]  ;;  %v5991_v60 = vld [vmem:[%s8000_s5 + $0x350] sm:$0xff] }
  0x2f   :  { %8249 = vst [vmem:[#allocation69_spill] sm:$0xff] %v5986_v59  ;;  %8250 = vst [vmem:[#allocation70_spill] sm:$0xff] %v5991_v60  ;;  %v5996_v62 = vld [vmem:[%s8000_s5 + $0x358] sm:$0xff]  ;;  %v6001_v63 = vld [vmem:[%s8000_s5 + $0x360] sm:$0xff] }
  0x30   :  { %8251 = vst [vmem:[#allocation71_spill] sm:$0xff] %v5996_v62  ;;  %8252 = vst [vmem:[#allocation72_spill] sm:$0xff] %v6001_v63  ;;  %v6006_v58 = vld [vmem:[%s8000_s5 + $0x368] sm:$0xff]  ;;  %v6011_v59 = vld [vmem:[%s8000_s5 + $0x370] sm:$0xff] }
  0x31   :  { %8253 = vst [vmem:[#allocation73_spill] sm:$0xff] %v6006_v58  ;;  %8254 = vst [vmem:[#allocation74_spill] sm:$0xff] %v6011_v59  ;;  %v6016_v60 = vld [vmem:[%s8000_s5 + $0x378] sm:$0xff]  ;;  %v6021_v62 = vld [vmem:[%s8000_s5 + $0x380] sm:$0xff] }
  0x32   :  { %8255 = vst [vmem:[#allocation75_spill] sm:$0xff] %v6016_v60  ;;  %8256 = vst [vmem:[#allocation76_spill] sm:$0xff] %v6021_v62  ;;  %v6026_v63 = vld [vmem:[%s8000_s5 + $0x388] sm:$0xff]  ;;  %v6031_v58 = vld [vmem:[%s8000_s5 + $0x390] sm:$0xff] }
  0x33   :  { %8257 = vst [vmem:[#allocation77_spill] sm:$0xff] %v6026_v63  ;;  %8258 = vst [vmem:[#allocation78_spill] sm:$0xff] %v6031_v58  ;;  %v6036_v59 = vld [vmem:[%s8000_s5 + $0x398] sm:$0xff]  ;;  %v6041_v60 = vld [vmem:[%s8000_s5 + $0x3a0] sm:$0xff] }
  0x34   :  { %8259 = vst [vmem:[#allocation79_spill] sm:$0xff] %v6036_v59  ;;  %8260 = vst [vmem:[#allocation80_spill] sm:$0xff] %v6041_v60  ;;  %v6046_v62 = vld [vmem:[%s8000_s5 + $0x3a8] sm:$0xff]  ;;  %v6051_v63 = vld [vmem:[%s8000_s5 + $0x3b0] sm:$0xff] }
  0x35   :  { %8261 = vst [vmem:[#allocation81_spill] sm:$0xff] %v6046_v62  ;;  %8262 = vst [vmem:[#allocation82_spill] sm:$0xff] %v6051_v63  ;;  %v6056_v58 = vld [vmem:[%s8000_s5 + $0x3b8] sm:$0xff]  ;;  %v6061_v59 = vld [vmem:[%s8000_s5 + $0x3c0] sm:$0xff] }
  0x36   :  { %8263 = vst [vmem:[#allocation83_spill] sm:$0xff] %v6056_v58  ;;  %8264 = vst [vmem:[#allocation84_spill] sm:$0xff] %v6061_v59  ;;  %v6066_v60 = vld [vmem:[%s8000_s5 + $0x3c8] sm:$0xff]  ;;  %v6071_v62 = vld [vmem:[%s8000_s5 + $0x3d0] sm:$0xff] }
  0x37   :  { %8265 = vst [vmem:[#allocation85_spill] sm:$0xff] %v6066_v60  ;;  %8266 = vst [vmem:[#allocation86_spill] sm:$0xff] %v6071_v62  ;;  %v6076_v63 = vld [vmem:[%s8000_s5 + $0x3d8] sm:$0xff]  ;;  %v6081_v58 = vld [vmem:[%s8000_s5 + $0x3e0] sm:$0xff] }
  0x38   :  { %8267 = vst [vmem:[#allocation87_spill] sm:$0xff] %v6076_v63  ;;  %8268 = vst [vmem:[#allocation88_spill] sm:$0xff] %v6081_v58  ;;  %v6086_v59 = vld [vmem:[%s8000_s5 + $0x3e8] sm:$0xff]  ;;  %v6091_v60 = vld [vmem:[%s8000_s5 + $0x3f0] sm:$0xff] }
  0x39   :  { %8269 = vst [vmem:[#allocation89_spill] sm:$0xff] %v6086_v59  ;;  %8270 = vst [vmem:[#allocation90_spill] sm:$0xff] %v6091_v60  ;;  %v6096_v62 = vld [vmem:[%s8000_s5 + $0x3f8] sm:$0xff] }
  0x3a   :  { %8271 = vst [vmem:[#allocation91_spill] sm:$0xff] %v6096_v62 }
  0x3b   :  { %316 = vsyncadd [#allocation4], 16384  ;;  %v326_v63 = vld [vmem:[%s7996_s1 + $0x8] sm:$0xff]  ;;  %v328_v56 = vld [vmem:[%s7996_s1 + $0x18] sm:$0xff]  ;;  %v8002_v54 = vmov 0.0  }
  0x3c   :  { %v330_v58 = vld [vmem:[%s7996_s1 + $0x28] sm:$0xff]  ;;  %v332_v60 = vld [vmem:[%s7996_s1 + $0x38] sm:$0xff]  ;;  %v325_v62 = vld [vmem:[%s7996_s1] sm:$0xff]  ;;  %475 = vmatprep.mubr.f32.mxu0 %v8002_v54  ;;  %588 = vmatprep.mubr.f32.mxu1 %v8002_v54 }
  0x3d   :  { %v3595_v59 = vpack.c.bf16 %v330_v58, %v326_v63  ;;  %v3627_v50 = vpack.c.bf16 %v332_v60, %v328_v56  ;;  %v329_v58 = vld [vmem:[%s7996_s1 + $0x20] sm:$0xff]  ;;  %v327_v63 = vld [vmem:[%s7996_s1 + $0x10] sm:$0xff]  ;;  %v334_v54 = vld [vmem:[%s7996_s1 + $0x48] sm:$0xff] }
  0x3e   :  { %v331_v61 = vld [vmem:[%s7996_s1 + $0x30] sm:$0xff]  ;;  %v3597_v57 = vpack.c.bf16 %v329_v58, %v325_v62  ;;  %v338_v56 = vld [vmem:[%s7996_s1 + $0x68] sm:$0xff]  ;;  %v336_v60 = vld [vmem:[%s7996_s1 + $0x58] sm:$0xff] }
  0x3f   :  { %3596 = vmatprep.subr.bf16.mxu0 %v3595_v59  ;;  %v3629_v55 = vpack.c.bf16 %v331_v61, %v327_v63  ;;  %3628 = vmatprep.subr.bf16.mxu1 %v3627_v50  ;;  %v3599_v51 = vpack.c.bf16 %v338_v56, %v334_v54  ;;  %v340_v59 = vld [vmem:[%s7996_s1 + $0x78] sm:$0xff]  ;;  %v333_v61 = vld [vmem:[%s7996_s1 + $0x40] sm:$0xff]  ;;  %v335_v50 = vld [vmem:[%s7996_s1 + $0x50] sm:$0xff] }
  0x40   :  { %v337_v62 = vld [vmem:[%s7996_s1 + $0x60] sm:$0xff]  ;;  %3598 = vmatpush1.bf16.msra.mxu0 %v3597_v57  ;;  %v3631_v58 = vpack.c.bf16 %v340_v59, %v336_v60  ;;  %v339_v54 = vld [vmem:[%s7996_s1 + $0x70] sm:$0xff]  ;;  %v342_v56 = vld [vmem:[%s7996_s1 + $0x88] sm:$0xff] }
  0x41   :  { %3630 = vmatpush1.bf16.msra.mxu1 %v3629_v55  ;;  %v3601_v63 = vpack.c.bf16 %v337_v62, %v333_v61  ;;  %3600 = vmatprep.subr.bf16.mxu0 %v3599_v51  ;;  %v3633_v52 = vpack.c.bf16 %v339_v54, %v335_v50  ;;  %v346_v55 = vld [vmem:[%s7996_s1 + $0xa8] sm:$0xff]  ;;  %v344_v57 = vld [vmem:[%s7996_s1 + $0x98] sm:$0xff]  ;;  %v341_v51 = vld [vmem:[%s7996_s1 + $0x80] sm:$0xff] }
  0x42   :  { %v348_v60 = vld [vmem:[%s7996_s1 + $0xb8] sm:$0xff]  ;;  %3632 = vmatprep.subr.bf16.mxu1 %v3631_v58  ;;  %v3603_v59 = vpack.c.bf16 %v346_v55, %v342_v56  ;;  %v345_v62 = vld [vmem:[%s7996_s1 + $0xa0] sm:$0xff]  ;;  %v343_v50 = vld [vmem:[%s7996_s1 + $0x90] sm:$0xff] }
  0x43   :  { %v3635_v61 = vpack.c.bf16 %v348_v60, %v344_v57  ;;  %v347_v54 = vld [vmem:[%s7996_s1 + $0xb0] sm:$0xff]  ;;  %v350_v58 = vld [vmem:[%s7996_s1 + $0xc8] sm:$0xff]  ;;  %v3605_v55 = vpack.c.bf16 %v345_v62, %v341_v51  ;;  %v352_v60 = vld [vmem:[%s7996_s1 + $0xd8] sm:$0xff] }
  0x44   :  { %v354_v56 = vld [vmem:[%s7996_s1 + $0xe8] sm:$0xff]  ;;  %3602 = vmatpush1.bf16.msra.mxu0 %v3601_v63  ;;  %v3637_v57 = vpack.c.bf16 %v347_v54, %v343_v50  ;;  %v356_v48 = vld [vmem:[%s7996_s1 + $0xf8] sm:$0xff]  ;;  %v349_v46 = vld [vmem:[%s7996_s1 + $0xc0] sm:$0xff] }
  0x45   :  { %3634 = vmatpush1.bf16.msra.mxu1 %v3633_v52  ;;  %3604 = vmatprep.subr.bf16.mxu0 %v3603_v59  ;;  %v3607_v42 = vpack.c.bf16 %v354_v56, %v350_v58  ;;  %v3639_v53 = vpack.c.bf16 %v356_v48, %v352_v60  ;;  %v353_v52 = vld [vmem:[%s7996_s1 + $0xe0] sm:$0xff]  ;;  %v351_v63 = vld [vmem:[%s7996_s1 + $0xd0] sm:$0xff]  ;;  %v358_v62 = vld [vmem:[%s7996_s1 + $0x108] sm:$0xff] }
  0x46   :  { %3636 = vmatprep.subr.bf16.mxu1 %v3635_v61  ;;  %v355_v51 = vld [vmem:[%s7996_s1 + $0xf0] sm:$0xff]  ;;  %v362_v48 = vld [vmem:[%s7996_s1 + $0x128] sm:$0xff]  ;;  %v360_v59 = vld [vmem:[%s7996_s1 + $0x118] sm:$0xff]  ;;  %v3609_v50 = vpack.c.bf16 %v353_v52, %v349_v46 }
  0x47   :  { %v364_v61 = vld [vmem:[%s7996_s1 + $0x138] sm:$0xff]  ;;  %v3641_v54 = vpack.c.bf16 %v355_v51, %v351_v63  ;;  %v357_v58 = vld [vmem:[%s7996_s1 + $0x100] sm:$0xff]  ;;  %v3611_v60 = vpack.c.bf16 %v362_v48, %v358_v62  ;;  %v359_v47 = vld [vmem:[%s7996_s1 + $0x110] sm:$0xff] }
  0x48   :  { %3606 = vmatpush1.bf16.msra.mxu0 %v3605_v55  ;;  %v361_v56 = vld [vmem:[%s7996_s1 + $0x120] sm:$0xff]  ;;  %v3643_v49 = vpack.c.bf16 %v364_v61, %v360_v59  ;;  %v363_v46 = vld [vmem:[%s7996_s1 + $0x130] sm:$0xff]  ;;  %v366_v55 = vld [vmem:[%s7996_s1 + $0x148] sm:$0xff] }
  0x49   :  { %3638 = vmatpush1.bf16.msra.mxu1 %v3637_v57  ;;  %3608 = vmatprep.subr.bf16.mxu0 %v3607_v42  ;;  %v370_v57 = vld [vmem:[%s7996_s1 + $0x168] sm:$0xff]  ;;  %v368_v42 = vld [vmem:[%s7996_s1 + $0x158] sm:$0xff]  ;;  %v3613_v52 = vpack.c.bf16 %v361_v56, %v357_v58  ;;  %v3645_v63 = vpack.c.bf16 %v363_v46, %v359_v47  ;;  %v365_v51 = vld [vmem:[%s7996_s1 + $0x140] sm:$0xff] }
  0x4a   :  { %3640 = vmatprep.subr.bf16.mxu1 %v3639_v53  ;;  %v372_v53 = vld [vmem:[%s7996_s1 + $0x178] sm:$0xff]  ;;  %v369_v62 = vld [vmem:[%s7996_s1 + $0x160] sm:$0xff]  ;;  %v3615_v48 = vpack.c.bf16 %v370_v57, %v366_v55  ;;  %v367_v61 = vld [vmem:[%s7996_s1 + $0x150] sm:$0xff] }
  0x4b   :  { %v3647_v59 = vpack.c.bf16 %v372_v53, %v368_v42  ;;  %v371_v47 = vld [vmem:[%s7996_s1 + $0x170] sm:$0xff]  ;;  %v380_v58 = vld [vmem:[%s7996_s1 + $0x1b8] sm:$0xff]  ;;  %v3617_v56 = vpack.c.bf16 %v369_v62, %v365_v51  ;;  %v373_v46 = vld [vmem:[%s7996_s1 + $0x180] sm:$0xff] }
  0x4c   :  { %3610 = vmatpush1.bf16.msra.mxu0 %v3609_v50  ;;  %v374_v50 = vld [vmem:[%s7996_s1 + $0x188] sm:$0xff]  ;;  %v377_v55 = vld [vmem:[%s7996_s1 + $0x1a0] sm:$0xff]  ;;  %v375_v53 = vld [vmem:[%s7996_s1 + $0x190] sm:$0xff] }
  0x4d   :  { %3642 = vmatpush1.bf16.msra.mxu1 %v3641_v54  ;;  %3612 = vmatprep.subr.bf16.mxu0 %v3611_v60  ;;  %v378_v54 = vld [vmem:[%s7996_s1 + $0x1a8] sm:$0xff]  ;;  %v3649_v60 = vpack.c.bf16 %v371_v47, %v367_v61  ;;  %v384_v62 = vld [vmem:[%s7996_s1 + $0x1d8] sm:$0xff]  ;;  %v381_v47 = vld [vmem:[%s7996_s1 + $0x1c0] sm:$0xff] }
  0x4e   :  { %3644 = vmatprep.subr.bf16.mxu1 %v3643_v49  ;;  %v376_v49 = vld [vmem:[%s7996_s1 + $0x198] sm:$0xff]  ;;  %v3619_v57 = vpack.c.bf16 %v378_v54, %v374_v50  ;;  %v386_v51 = vld [vmem:[%s7996_s1 + $0x1e8] sm:$0xff]  ;;  %v385_v50 = vld [vmem:[%s7996_s1 + $0x1e0] sm:$0xff] }
  0x4f   :  { %v3651_v42 = vpack.c.bf16 %v380_v58, %v376_v49  ;;  %v383_v58 = vld [vmem:[%s7996_s1 + $0x1d0] sm:$0xff] }
  0x50   :  { %3614 = vmatpush1.bf16.msra.mxu0 %v3613_v52  ;;  %v379_v52 = vld [vmem:[%s7996_s1 + $0x1b0] sm:$0xff] }
  0x51   :  { %3646 = vmatpush1.bf16.msra.mxu1 %v3645_v63  ;;  %3616 = vmatprep.subr.bf16.mxu0 %v3615_v48  ;;  %v382_v63 = vld [vmem:[%s7996_s1 + $0x1c8] sm:$0xff]  ;;  %v388_v48 = vld [vmem:[%s7996_s1 + $0x1f8] sm:$0xff]  ;;  %v3653_v61 = vpack.c.bf16 %v379_v52, %v375_v53  ;;  %v673_v52 = vld [vmem:[%s7997_s2] sm:$0xff] }
  0x52   :  { %3648 = vmatprep.subr.bf16.mxu1 %v3647_v59  ;;  %v3621_v59 = vpack.c.bf16 %v377_v55, %v373_v46  ;;  %v3623_v54 = vpack.c.bf16 %v386_v51, %v382_v63  ;;  %v3655_v49 = vpack.c.bf16 %v388_v48, %v384_v62  ;;  %v678_v46 = vld [vmem:[%s7997_s2 + $0x28] sm:$0xff]  ;;  %v676_v55 = vld [vmem:[%s7997_s2 + $0x18] sm:$0xff]  ;;  %v677_v62 = vld [vmem:[%s7997_s2 + $0x20] sm:$0xff] }
  0x53   :  { %v675_v48 = vld [vmem:[%s7997_s2 + $0x10] sm:$0xff] }
  0x54   :  { %3618 = vmatpush1.bf16.msra.mxu0 %v3617_v56  ;;  %v387_v56 = vld [vmem:[%s7996_s1 + $0x1f0] sm:$0xff] }
  0x55   :  { %3650 = vmatpush1.bf16.msra.mxu1 %v3649_v60  ;;  %3620 = vmatprep.subr.bf16.mxu0 %v3619_v57  ;;  %v674_v60 = vld [vmem:[%s7997_s2 + $0x8] sm:$0xff]  ;;  %v680_v57 = vld [vmem:[%s7997_s2 + $0x38] sm:$0xff]  ;;  %v3657_v53 = vpack.c.bf16 %v387_v56, %v383_v58  ;;  %v3661_v58 = vpack.c.bf16 %v677_v62, %v673_v52 }
  0x56   :  { %3652 = vmatprep.subr.bf16.mxu1 %v3651_v42  ;;  %v3625_v42 = vpack.c.bf16 %v385_v50, %v381_v47  ;;  %v3659_v63 = vpack.c.bf16 %v678_v46, %v674_v60  ;;  %v3691_v51 = vpack.c.bf16 %v680_v57, %v676_v55  ;;  %v686_v47 = vld [vmem:[%s7997_s2 + $0x68] sm:$0xff]  ;;  %v684_v50 = vld [vmem:[%s7997_s2 + $0x58] sm:$0xff]  ;;  %v681_v60 = vld [vmem:[%s7997_s2 + $0x40] sm:$0xff] }
  0x57   :  { %v685_v46 = vld [vmem:[%s7997_s2 + $0x60] sm:$0xff]  ;;  %v683_v55 = vld [vmem:[%s7997_s2 + $0x50] sm:$0xff]  ;;  %v690_v52 = vld [vmem:[%s7997_s2 + $0x88] sm:$0xff] }
  0x58   :  { %3622 = vmatpush1.bf16.msra.mxu0 %v3621_v59  ;;  %v679_v59 = vld [vmem:[%s7997_s2 + $0x30] sm:$0xff]  ;;  %v696_v62 = vld [vmem:[%s7997_s2 + $0xb8] sm:$0xff] }
  0x59   :  { %3654 = vmatpush1.bf16.msra.mxu1 %v3653_v61  ;;  %3624 = vmatprep.subr.bf16.mxu0 %v3623_v54  ;;  %v682_v61 = vld [vmem:[%s7997_s2 + $0x48] sm:$0xff]  ;;  %v688_v54 = vld [vmem:[%s7997_s2 + $0x78] sm:$0xff]  ;;  %v3693_v56 = vpack.c.bf16 %v679_v59, %v675_v48  ;;  %v687_v57 = vld [vmem:[%s7997_s2 + $0x70] sm:$0xff]  ;;  %v3665_v59 = vpack.c.bf16 %v685_v46, %v681_v60 }
  0x5a   :  { %3656 = vmatprep.subr.bf16.mxu1 %v3655_v49  ;;  %v317_v49 = vld [vmem:[%s7995_s0] sm:$0xff]  ;;  %v318_v48 = vld [vmem:[%s7995_s0 + $0x8] sm:$0xff] }
  0x5b   :  { %v698_v46 = vld [vmem:[%s7997_s2 + $0xc8] sm:$0xff] }
  0x5c   :  { %3626 = vmatpush1.bf16.msra.mxu0 %v3625_v42  ;;  %v3663_v42 = vpack.c.bf16 %v686_v47, %v682_v61  ;;  %v3697_v61 = vpack.c.bf16 %v687_v57, %v683_v55  ;;  %v689_v47 = vld [vmem:[%s7997_s2 + $0x80] sm:$0xff]  ;;  %v702_v55 = vld [vmem:[%s7997_s2 + $0xe8] sm:$0xff]  ;;  %v700_v57 = vld [vmem:[%s7997_s2 + $0xd8] sm:$0xff] }
  0x5d   :  { %3658 = vmatpush1.bf16.msra.mxu1 %v3657_v53  ;;  %3660 = vmatprep.subr.bf16.mxu0 %v3659_v63  ;;  %v3695_v53 = vpack.c.bf16 %v688_v54, %v684_v50  ;;  %v694_v63 = vld [vmem:[%s7997_s2 + $0xa8] sm:$0xff]  ;;  %v8272_v50 = vmov 0.0   ;;  %v693_v54 = vld [vmem:[%s7997_s2 + $0xa0] sm:$0xff] }
  0x5e   :  { %3692 = vmatprep.subr.bf16.mxu1 %v3691_v51  ;;  %v692_v51 = vld [vmem:[%s7997_s2 + $0x98] sm:$0xff] }
  0x5f   :  { %476 = vmatmul.mubr.f32.vlgmr.msra.gmra.mrb[0].mxu0 %v317_v49  ;;  %v3699_v60 = vpack.c.bf16 %v696_v62, %v692_v51  ;;  %v697_v51 = vld [vmem:[%s7997_s2 + $0xc0] sm:$0xff] }
  0x60   :  { %589 = vmatmul.mubr.f32.vlgmr.msra.gmra.mrb[0].mxu1 %v317_v49  ;;  %3662 = vmatpush1.bf16.msra.mxu0 %v3661_v58  ;;  %v691_v49 = vld [vmem:[%s7997_s2 + $0x90] sm:$0xff]  ;;  %v701_v62 = vld [vmem:[%s7997_s2 + $0xe0] sm:$0xff] }
  0x61   :  { %3694 = vmatpush1.bf16.msra.mxu1 %v3693_v56  ;;  %481 = vmatprep.mubr.f32.mxu0 %v8272_v50  ;;  %v695_v58 = vld [vmem:[%s7997_s2 + $0xb0] sm:$0xff]  ;;  %v3667_v56 = vpack.c.bf16 %v694_v63, %v690_v52  ;;  %v3669_v52 = vpack.c.bf16 %v693_v54, %v689_v47  ;;  %v706_v54 = vld [vmem:[%s7997_s2 + $0x108] sm:$0xff] }
  0x62   :  { %594 = vmatprep.mubr.f32.mxu1 %v8272_v50  ;;  %3664 = vmatprep.subr.bf16.mxu0 %v3663_v42  ;;  %v704_v42 = vld [vmem:[%s7997_s2 + $0xf8] sm:$0xff]  ;;  %v3701_v63 = vpack.c.bf16 %v695_v58, %v691_v49  ;;  %v710_v49 = vld [vmem:[%s7997_s2 + $0x128] sm:$0xff] }
  0x63   :  { %3696 = vmatprep.subr.bf16.mxu1 %v3695_v53  ;;  %482 = vmatmul.mubr.f32.gmra.mrb[2].mxu0 %v318_v48  ;;  %v319_v53 = vld [vmem:[%s7995_s0 + $0x10] sm:$0xff]  ;;  %v3703_v47 = vpack.c.bf16 %v704_v42, %v700_v57  ;;  %v708_v58 = vld [vmem:[%s7997_s2 + $0x118] sm:$0xff]  ;;  %v705_v57 = vld [vmem:[%s7997_s2 + $0x100] sm:$0xff] }
  0x64   :  { %595 = vmatmul.mubr.f32.gmra.mrb[2].mxu1 %v318_v48  ;;  %3666 = vmatpush1.bf16.msra.mxu0 %v3665_v59  ;;  %v699_v48 = vld [vmem:[%s7997_s2 + $0xd0] sm:$0xff]  ;;  %v709_v42 = vld [vmem:[%s7997_s2 + $0x120] sm:$0xff] }
  0x65   :  { %3698 = vmatpush1.bf16.msra.mxu1 %v3697_v61  ;;  %487 = vmatprep.mubr.f32.mxu0 %v8272_v50  ;;  %v703_v59 = vld [vmem:[%s7997_s2 + $0xf0] sm:$0xff]  ;;  %v3671_v61 = vpack.c.bf16 %v702_v55, %v698_v46  ;;  %v3673_v46 = vpack.c.bf16 %v701_v62, %v697_v51  ;;  %v714_v62 = vld [vmem:[%s7997_s2 + $0x148] sm:$0xff] }
  0x66   :  { %600 = vmatprep.mubr.f32.mxu1 %v8272_v50  ;;  %3668 = vmatprep.subr.bf16.mxu0 %v3667_v56  ;;  %v712_v56 = vld [vmem:[%s7997_s2 + $0x138] sm:$0xff]  ;;  %v3705_v55 = vpack.c.bf16 %v703_v59, %v699_v48  ;;  %v718_v48 = vld [vmem:[%s7997_s2 + $0x168] sm:$0xff] }
  0x67   :  { %3700 = vmatprep.subr.bf16.mxu1 %v3699_v60  ;;  %488 = vmatmul.mubr.f32.gmra.mrb[4].mxu0 %v319_v53  ;;  %v320_v60 = vld [vmem:[%s7995_s0 + $0x18] sm:$0xff]  ;;  %v3707_v51 = vpack.c.bf16 %v712_v56, %v708_v58  ;;  %v713_v58 = vld [vmem:[%s7997_s2 + $0x140] sm:$0xff] }
  0x68   :  { %601 = vmatmul.mubr.f32.gmra.mrb[4].mxu1 %v319_v53  ;;  %3670 = vmatpush1.bf16.msra.mxu0 %v3669_v52  ;;  %v707_v53 = vld [vmem:[%s7997_s2 + $0x110] sm:$0xff]  ;;  %v716_v59 = vld [vmem:[%s7997_s2 + $0x158] sm:$0xff]  ;;  %v717_v56 = vld [vmem:[%s7997_s2 + $0x160] sm:$0xff] }
  0x69   :  { %3702 = vmatpush1.bf16.msra.mxu1 %v3701_v63  ;;  %493 = vmatprep.mubr.f32.mxu0 %v8272_v50  ;;  %v711_v52 = vld [vmem:[%s7997_s2 + $0x130] sm:$0xff]  ;;  %v3675_v63 = vpack.c.bf16 %v710_v49, %v706_v54  ;;  %v3677_v54 = vpack.c.bf16 %v709_v42, %v705_v57  ;;  %v722_v42 = vld [vmem:[%s7997_s2 + $0x188] sm:$0xff] }
  0x6a   :  { %606 = vmatprep.mubr.f32.mxu1 %v8272_v50  ;;  %3672 = vmatprep.subr.bf16.mxu0 %v3671_v61  ;;  %v720_v61 = vld [vmem:[%s7997_s2 + $0x178] sm:$0xff]  ;;  %v3709_v49 = vpack.c.bf16 %v711_v52, %v707_v53  ;;  %v726_v53 = vld [vmem:[%s7997_s2 + $0x1a8] sm:$0xff] }
  0x6b   :  { %3704 = vmatprep.subr.bf16.mxu1 %v3703_v47  ;;  %494 = vmatmul.mubr.f32.gmra.mrb[6].mxu0 %v320_v60  ;;  %v321_v47 = vld [vmem:[%s7995_s0 + $0x20] sm:$0xff]  ;;  %v3711_v57 = vpack.c.bf16 %v720_v61, %v716_v59  ;;  %v724_v52 = vld [vmem:[%s7997_s2 + $0x198] sm:$0xff] }
  0x6c   :  { %607 = vmatmul.mubr.f32.gmra.mrb[6].mxu1 %v320_v60  ;;  %3674 = vmatpush1.bf16.msra.mxu0 %v3673_v46  ;;  %v715_v60 = vld [vmem:[%s7997_s2 + $0x150] sm:$0xff]  ;;  %v721_v59 = vld [vmem:[%s7997_s2 + $0x180] sm:$0xff] }
  0x6d   :  { %3706 = vmatpush1.bf16.msra.mxu1 %v3705_v55  ;;  %499 = vmatprep.mubr.f32.mxu0 %v8272_v50  ;;  %v719_v46 = vld [vmem:[%s7997_s2 + $0x170] sm:$0xff]  ;;  %v3679_v55 = vpack.c.bf16 %v718_v48, %v714_v62  ;;  %v3681_v62 = vpack.c.bf16 %v717_v56, %v713_v58  ;;  %v725_v61 = vld [vmem:[%s7997_s2 + $0x1a0] sm:$0xff]  ;;  %v730_v56 = vld [vmem:[%s7997_s2 + $0x1c8] sm:$0xff] }
  0x6e   :  { %612 = vmatprep.mubr.f32.mxu1 %v8272_v50  ;;  %3676 = vmatprep.subr.bf16.mxu0 %v3675_v63  ;;  %v728_v63 = vld [vmem:[%s7997_s2 + $0x1b8] sm:$0xff]  ;;  %v3713_v48 = vpack.c.bf16 %v719_v46, %v715_v60  ;;  %v734_v60 = vld [vmem:[%s7997_s2 + $0x1e8] sm:$0xff] }
  0x6f   :  { %3708 = vmatprep.subr.bf16.mxu1 %v3707_v51  ;;  %500 = vmatmul.mubr.f32.gmra.mrb[8].mxu0 %v321_v47  ;;  %v322_v51 = vld [vmem:[%s7995_s0 + $0x28] sm:$0xff]  ;;  %v3715_v58 = vpack.c.bf16 %v728_v63, %v724_v52  ;;  %v732_v46 = vld [vmem:[%s7997_s2 + $0x1d8] sm:$0xff]  ;;  %v729_v52 = vld [vmem:[%s7997_s2 + $0x1c0] sm:$0xff] }
  0x70   :  { %613 = vmatmul.mubr.f32.gmra.mrb[8].mxu1 %v321_v47  ;;  %3678 = vmatpush1.bf16.msra.mxu0 %v3677_v54  ;;  %v723_v47 = vld [vmem:[%s7997_s2 + $0x190] sm:$0xff]  ;;  %v733_v63 = vld [vmem:[%s7997_s2 + $0x1e0] sm:$0xff] }
  0x71   :  { %3710 = vmatpush1.bf16.msra.mxu1 %v3709_v49  ;;  %505 = vmatprep.mubr.f32.mxu0 %v8272_v50  ;;  %v727_v54 = vld [vmem:[%s7997_s2 + $0x1b0] sm:$0xff]  ;;  %v3683_v49 = vpack.c.bf16 %v726_v53, %v722_v42  ;;  %v3685_v42 = vpack.c.bf16 %v725_v61, %v721_v59  ;;  %v324_v61 = vld [vmem:[%s7995_s0 + $0x38] sm:$0xff] }
  0x72   :  { %618 = vmatprep.mubr.f32.mxu1 %v8272_v50  ;;  %3680 = vmatprep.subr.bf16.mxu0 %v3679_v55  ;;  %v736_v55 = vld [vmem:[%s7997_s2 + $0x1f8] sm:$0xff]  ;;  %v3717_v53 = vpack.c.bf16 %v727_v54, %v723_v47  ;;  %v3689_v47 = vpack.c.bf16 %v733_v63, %v729_v52 }
  0x73   :  { %3712 = vmatprep.subr.bf16.mxu1 %v3711_v57  ;;  %506 = vmatmul.mubr.f32.gmra.mrb[10].mxu0 %v322_v51  ;;  %v323_v57 = vld [vmem:[%s7995_s0 + $0x30] sm:$0xff]  ;;  %v3719_v59 = vpack.c.bf16 %v736_v55, %v732_v46 }
  0x74   :  { %619 = vmatmul.mubr.f32.gmra.mrb[10].mxu1 %v322_v51  ;;  %3682 = vmatpush1.bf16.msra.mxu0 %v3681_v62  ;;  %v731_v51 = vld [vmem:[%s7997_s2 + $0x1d0] sm:$0xff] }
  0x75   :  { %3714 = vmatpush1.bf16.msra.mxu1 %v3713_v48  ;;  %511 = vmatprep.mubr.f32.mxu0 %v8272_v50  ;;  %v735_v62 = vld [vmem:[%s7997_s2 + $0x1f0] sm:$0xff]  ;;  %v3687_v48 = vpack.c.bf16 %v734_v60, %v730_v56  ;;  %v389_v60 = vld [vmem:[%s7998_s3] sm:$0xf] }
  0x76   :  { %624 = vmatprep.mubr.f32.mxu1 %v8272_v50  ;;  %3684 = vmatprep.subr.bf16.mxu0 %v3683_v49  ;;  %v3721_v54 = vpack.c.bf16 %v735_v62, %v731_v51  ;;  %v391_v49 = vlaneseq }
  0x77   :  { %3716 = vmatprep.subr.bf16.mxu1 %v3715_v58  ;;  %512 = vmatmul.mubr.f32.gmra.mrb[12].mxu0 %v323_v57 }
  0x78   :  { %625 = vmatmul.mubr.f32.gmra.mrb[12].mxu1 %v323_v57  ;;  %3686 = vmatpush1.bf16.msra.mxu0 %v3685_v42  ;;  %v6526_v58 = vshrl.u32 %v391_v49, 7 }
  0x79   :  { %3718 = vmatpush1.bf16.msra.mxu1 %v3717_v53  ;;  %517 = vmatprep.mubr.f32.mxu0 %v8272_v50 }
  0x7a   :  { %630 = vmatprep.mubr.f32.mxu1 %v8272_v50  ;;  %3688 = vmatprep.subr.bf16.mxu0 %v3687_v48  ;;  %8273 = vst [vmem:[#allocation92_spill] sm:$0xff] %v6526_v58  ;;  %v8006_v56 = vsub.s32 0, %v6526_v58  ;;  %v8004_v46 = vsub.s32 1, %v6526_v58  ;;  %v8005_v57 = vsub.s32 2, %v6526_v58  ;;  %v8011_v48 = vsub.s32 3, %v6526_v58 }
  0x7b   :  { %3720 = vmatprep.subr.bf16.mxu1 %v3719_v59  ;;  %518 = vmatmul.mubr.f32.gmra.mrb[14].mxu0 %v324_v61 }
  0x7c   :  { %631 = vmatmul.mubr.f32.gmra.mrb[14].mxu1 %v324_v61  ;;  %3690 = vmatpush1.bf16.msra.mxu0 %v3689_v47  ;;  %v6535_v55 = vrot.slane %v389_v60, %v8006_v56  ;;  %v6540_v42 = vrot.slane %v389_v60, %v8004_v46  ;;  %v6545_v51 = vrot.slane %v389_v60, %v8005_v57 }
  0x7d   :  { %3722 = vmatpush1.bf16.msra.mxu1 %v3721_v54  ;;  %801 = vmatprep.mubr.f32.mxu0 %v8272_v50  ;;  %v6552_v46 = vrot.slane %v389_v60, %v8011_v48 }
  0x7e   :  { %872 = vmatprep.mubr.f32.mxu1 %v8272_v50  ;;  %8274 = vst [vmem:[#allocation93_spill] sm:$0xff] %v6535_v55  ;;  %8275 = vst [vmem:[#allocation94_spill] sm:$0xff] %v6540_v42 }
  0x7f   :  { %802 = vmatmul.mubr.f32.vlgmr.msra.gmra.mrb[0].mxu0 %v8272_v50  ;;  %8276 = vst [vmem:[#allocation95_spill] sm:$0xff] %v6545_v51  ;;  %8277 = vst [vmem:[#allocation96_spill] sm:$0xff] %v6552_v46 }
  0x80   :  { %873 = vmatmul.mubr.f32.vlgmr.msra.gmra.mrb[0].mxu1 %v8272_v50 }
 0x152   :  { %v803_v53 = vpop.f32.mrb[0].mxu0 }
 0x153   :  { %v874_v52 = vpop.f32.mrb[0].mxu1  ;;  %v5195_v63 = vadd.f32 %v803_v53, %v6535_v55  ;;  %v805_v62 = vpop.f32.mrb[1].mxu0 }
 0x154   :  { %v876_v59 = vpop.f32.mrb[1].mxu1  ;;  %v5196_v61 = vadd.f32 %v805_v62, %v6540_v42  ;;  %v5211_v49 = vadd.f32 %v874_v52, %v6545_v51 }
 0x155   :  { %v883_v47 = vmul.f32 0.5, %v5195_v63  ;;  %v5212_v53 = vadd.f32 %v876_v59, %v6552_v46 }
 0x156   :  { %v887_v54 = vmul.f32 0.5, %v5196_v61 }
 0x157   :  { %5260 = vtanh.f32 %v883_v47  ;;  %v892_v57 = vmul.f32 0.5, %v5212_v53 }
 0x158   :  { %5262 = vtanh.f32 %v887_v54 }
 0x159   :  { %5264 = vtanh.f32 %v5211_v49 }
 0x15a   :  { %5266 = vtanh.f32 %v892_v57 }
 0x161   :  { %v5261_v56 = vpop.eup %5260 }
 0x162   :  { %v5263_v55 = vpop.eup %5262  ;;  %v885_v43 = vadd.f32 1.0, %v5261_v56 }
 0x163   :  { %v889_v44 = vadd.f32 1.0, %v5263_v55  ;;  %v5265_v63 = vpop.eup %5264 }
 0x164   :  { %v886_v62 = vmul.f32 0.5, %v885_v43  ;;  %v5267_v60 = vpop.eup %5266 }
 0x165   :  { %v890_v61 = vmul.f32 0.5, %v889_v44  ;;  %v894_v54 = vadd.f32 1.0, %v5267_v60 }
 0x166   :  { %v897_v47 = vmul.f32 %v5265_v63, %v886_v62 }
 0x167   :  { %v896_v42 = vmul.f32 0.0, %v890_v61  ;;  %v895_v49 = vmul.f32 0.5, %v894_v54 }
 0x169   :  { %v6555_v52 = vadd.f32 %v897_v47, %v896_v42 }
 0x16b   :  { %8278 = vst [vmem:[#allocation97_spill] sm:$0xff] %v6555_v52  ;;  %5268 = vtanh.f32 %v6555_v52 }
 0x175   :  { %v5269_v48 = vpop.eup %5268 }
 0x176   :  { %v6558_v59 = vmul.f32 %v5269_v48, %v895_v49 }
 0x177   :  { %5420 = dma.done.wait [#allocation4], 16384 }
 0x178   :  { %5421 = vsyncadd [#allocation4], 4294950912  ;;  %1037 = vmatprep.mubr.f32.mxu0 %v8272_v50  ;;  %1108 = vmatprep.mubr.f32.mxu1 %v8272_v50  ;;  %v910_v43 = vld [vmem:[%s7997_s2 + $0x8] sm:$0xff]  ;;  %v909_v56 = vld [vmem:[%s7997_s2] sm:$0xff] }
 0x179   :  { %v914_v44 = vld [vmem:[%s7997_s2 + $0x28] sm:$0xff]  ;;  %v913_v57 = vld [vmem:[%s7997_s2 + $0x20] sm:$0xff]  ;;  %v912_v47 = vld [vmem:[%s7997_s2 + $0x18] sm:$0xff] }
 0x17a   :  { %v6571_v55 = vpack.c.bf16 %v914_v44, %v910_v43  ;;  %v918_v42 = vld [vmem:[%s7997_s2 + $0x48] sm:$0xff]  ;;  %v6582_v53 = vpack.c.bf16 %v913_v57, %v909_v56  ;;  %v917_v63 = vld [vmem:[%s7997_s2 + $0x40] sm:$0xff]  ;;  %v916_v60 = vld [vmem:[%s7997_s2 + $0x38] sm:$0xff] }
 0x17b   :  { %v922_v48 = vld [vmem:[%s7997_s2 + $0x68] sm:$0xff]  ;;  %v921_v61 = vld [vmem:[%s7997_s2 + $0x60] sm:$0xff]  ;;  %v911_v54 = vld [vmem:[%s7997_s2 + $0x10] sm:$0xff]  ;;  %v6608_v44 = vpack.c.bf16 %v916_v60, %v912_v47 }
 0x17c   :  { %8279 = vst [vmem:[#allocation98_spill] sm:$0xff] %v6571_v55  ;;  %8280 = vst [vmem:[#allocation99_spill] sm:$0xff] %v6582_v53  ;;  %v6584_v62 = vpack.c.bf16 %v922_v48, %v918_v42  ;;  %3724 = vmatprep.subr.bf16.mxu0 %v6571_v55  ;;  %v915_v49 = vld [vmem:[%s7997_s2 + $0x30] sm:$0xff]  ;;  %v6606_v43 = vpack.c.bf16 %v921_v61, %v917_v63  ;;  %v926_v57 = vld [vmem:[%s7997_s2 + $0x88] sm:$0xff] }
 0x17d   :  { %3726 = vmatpush1.bf16.msra.mxu0 %v6582_v53  ;;  %8283 = vst [vmem:[#allocation102_spill] sm:$0xff] %v6608_v44  ;;  %v6610_v56 = vpack.c.bf16 %v915_v49, %v911_v54  ;;  %v930_v42 = vld [vmem:[%s7997_s2 + $0xa8] sm:$0xff]  ;;  %v925_v48 = vld [vmem:[%s7997_s2 + $0x80] sm:$0xff]  ;;  %v920_v47 = vld [vmem:[%s7997_s2 + $0x58] sm:$0xff]  ;;  %3756 = vmatprep.subr.bf16.mxu1 %v6608_v44 }
 0x17e   :  { %8281 = vst [vmem:[#allocation100_spill] sm:$0xff] %v6584_v62  ;;  %8282 = vst [vmem:[#allocation101_spill] sm:$0xff] %v6606_v43  ;;  %3728 = vmatprep.subr.bf16.mxu0 %v6584_v62  ;;  %v6622_v63 = vpack.c.bf16 %v930_v42, %v926_v57  ;;  %v929_v61 = vld [vmem:[%s7997_s2 + $0xa0] sm:$0xff]  ;;  %v924_v60 = vld [vmem:[%s7997_s2 + $0x78] sm:$0xff] }
 0x17f   :  { %8284 = vst [vmem:[#allocation103_spill] sm:$0xff] %v6610_v56  ;;  %v6634_v54 = vpack.c.bf16 %v924_v60, %v920_v47  ;;  %v919_v49 = vld [vmem:[%s7997_s2 + $0x50] sm:$0xff]  ;;  %v934_v42 = vld [vmem:[%s7997_s2 + $0xc8] sm:$0xff]  ;;  %3758 = vmatpush1.bf16.msra.mxu1 %v6610_v56  ;;  %v6652_v60 = vpack.c.bf16 %v929_v61, %v925_v48  ;;  %v928_v52 = vld [vmem:[%s7997_s2 + $0x98] sm:$0xff] }
 0x180   :  { %8285 = vst [vmem:[#allocation104_spill] sm:$0xff] %v6622_v63  ;;  %v923_v57 = vld [vmem:[%s7997_s2 + $0x70] sm:$0xff]  ;;  %v938_v47 = vld [vmem:[%s7997_s2 + $0xe8] sm:$0xff]  ;;  %v932_v46 = vld [vmem:[%s7997_s2 + $0xb8] sm:$0xff] }
 0x181   :  { %8286 = vst [vmem:[#allocation105_spill] sm:$0xff] %v6634_v54  ;;  %v6646_v58 = vpack.c.bf16 %v923_v57, %v919_v49  ;;  %3730 = vmatpush1.bf16.msra.mxu0 %v6606_v43  ;;  %8288 = vst [vmem:[#allocation107_spill] sm:$0xff] %v6652_v60  ;;  %3760 = vmatprep.subr.bf16.mxu1 %v6634_v54  ;;  %v927_v49 = vld [vmem:[%s7997_s2 + $0x90] sm:$0xff]  ;;  %v6665_v57 = vpack.c.bf16 %v938_v47, %v934_v42  ;;  %v933_v48 = vld [vmem:[%s7997_s2 + $0xc0] sm:$0xff] }
 0x182   :  { %3732 = vmatprep.subr.bf16.mxu0 %v6622_v63  ;;  %v937_v61 = vld [vmem:[%s7997_s2 + $0xe0] sm:$0xff]  ;;  %v6673_v51 = vpack.c.bf16 %v932_v46, %v928_v52  ;;  %v931_v43 = vld [vmem:[%s7997_s2 + $0xb0] sm:$0xff]  ;;  %v942_v63 = vld [vmem:[%s7997_s2 + $0x108] sm:$0xff] }
 0x183   :  { %8287 = vst [vmem:[#allocation106_spill] sm:$0xff] %v6646_v58  ;;  %8289 = vst [vmem:[#allocation108_spill] sm:$0xff] %v6665_v57  ;;  %v946_v42 = vld [vmem:[%s7997_s2 + $0x128] sm:$0xff]  ;;  %v936_v47 = vld [vmem:[%s7997_s2 + $0xd8] sm:$0xff]  ;;  %3762 = vmatpush1.bf16.msra.mxu1 %v6646_v58  ;;  %v6688_v46 = vpack.c.bf16 %v931_v43, %v927_v49  ;;  %v6694_v54 = vpack.c.bf16 %v937_v61, %v933_v48 }
 0x184   :  { %8290 = vst [vmem:[#allocation109_spill] sm:$0xff] %v6673_v51  ;;  %v940_v52 = vld [vmem:[%s7997_s2 + $0xf8] sm:$0xff]  ;;  %3764 = vmatprep.subr.bf16.mxu1 %v6673_v51  ;;  %v941_v56 = vld [vmem:[%s7997_s2 + $0x100] sm:$0xff]  ;;  %v935_v43 = vld [vmem:[%s7997_s2 + $0xd0] sm:$0xff]  ;;  %v6709_v48 = vpack.c.bf16 %v946_v42, %v942_v63 }
 0x185   :  { %8291 = vst [vmem:[#allocation110_spill] sm:$0xff] %v6688_v46  ;;  %3734 = vmatpush1.bf16.msra.mxu0 %v6652_v60  ;;  %8292 = vst [vmem:[#allocation111_spill] sm:$0xff] %v6694_v54  ;;  %v6700_v62 = vpack.c.bf16 %v940_v52, %v936_v47  ;;  %v939_v49 = vld [vmem:[%s7997_s2 + $0xf0] sm:$0xff]  ;;  %v945_v61 = vld [vmem:[%s7997_s2 + $0x120] sm:$0xff] }
 0x186   :  { %3736 = vmatprep.subr.bf16.mxu0 %v6665_v57  ;;  %8294 = vst [vmem:[#allocation113_spill] sm:$0xff] %v6709_v48  ;;  %v944_v47 = vld [vmem:[%s7997_s2 + $0x118] sm:$0xff]  ;;  %v950_v60 = vld [vmem:[%s7997_s2 + $0x148] sm:$0xff]  ;;  %v6727_v42 = vpack.c.bf16 %v939_v49, %v935_v43  ;;  %v6730_v57 = vpack.c.bf16 %v945_v61, %v941_v56  ;;  %v949_v51 = vld [vmem:[%s7997_s2 + $0x140] sm:$0xff] }
 0x187   :  { %8293 = vst [vmem:[#allocation112_spill] sm:$0xff] %v6700_v62  ;;  %v948_v52 = vld [vmem:[%s7997_s2 + $0x138] sm:$0xff]  ;;  %v954_v63 = vld [vmem:[%s7997_s2 + $0x168] sm:$0xff]  ;;  %3766 = vmatpush1.bf16.msra.mxu1 %v6688_v46  ;;  %v943_v53 = vld [vmem:[%s7997_s2 + $0x110] sm:$0xff] }
 0x188   :  { %8295 = vst [vmem:[#allocation114_spill] sm:$0xff] %v6727_v42  ;;  %8296 = vst [vmem:[#allocation115_spill] sm:$0xff] %v6730_v57  ;;  %3768 = vmatprep.subr.bf16.mxu1 %v6700_v62  ;;  %v6736_v58 = vpack.c.bf16 %v948_v52, %v944_v47  ;;  %v947_v43 = vld [vmem:[%s7997_s2 + $0x130] sm:$0xff]  ;;  %v6745_v56 = vpack.c.bf16 %v954_v63, %v950_v60  ;;  %v953_v49 = vld [vmem:[%s7997_s2 + $0x160] sm:$0xff] }
 0x189   :  { %3738 = vmatpush1.bf16.msra.mxu0 %v6694_v54  ;;  %v952_v61 = vld [vmem:[%s7997_s2 + $0x158] sm:$0xff]  ;;  %v958_v52 = vld [vmem:[%s7997_s2 + $0x188] sm:$0xff]  ;;  %v6763_v63 = vpack.c.bf16 %v947_v43, %v943_v53  ;;  %v957_v54 = vld [vmem:[%s7997_s2 + $0x180] sm:$0xff] }
 0x18a   :  { %8297 = vst [vmem:[#allocation116_spill] sm:$0xff] %v6736_v58  ;;  %3740 = vmatprep.subr.bf16.mxu0 %v6709_v48  ;;  %8298 = vst [vmem:[#allocation117_spill] sm:$0xff] %v6745_v56  ;;  %v956_v47 = vld [vmem:[%s7997_s2 + $0x178] sm:$0xff]  ;;  %v962_v60 = vld [vmem:[%s7997_s2 + $0x1a8] sm:$0xff]  ;;  %v6766_v48 = vpack.c.bf16 %v953_v49, %v949_v51 }
 0x18b   :  { %3770 = vmatpush1.bf16.msra.mxu1 %v6727_v42  ;;  %8299 = vst [vmem:[#allocation118_spill] sm:$0xff] %v6763_v63  ;;  %v6772_v62 = vpack.c.bf16 %v956_v47, %v952_v61  ;;  %v951_v46 = vld [vmem:[%s7997_s2 + $0x150] sm:$0xff]  ;;  %v6781_v51 = vpack.c.bf16 %v962_v60, %v958_v52  ;;  %v961_v43 = vld [vmem:[%s7997_s2 + $0x1a0] sm:$0xff]  ;;  %v960_v49 = vld [vmem:[%s7997_s2 + $0x198] sm:$0xff] }
 0x18c   :  { %8300 = vst [vmem:[#allocation119_spill] sm:$0xff] %v6766_v48  ;;  %3772 = vmatprep.subr.bf16.mxu1 %v6736_v58  ;;  %v955_v53 = vld [vmem:[%s7997_s2 + $0x170] sm:$0xff]  ;;  %v964_v61 = vld [vmem:[%s7997_s2 + $0x1b8] sm:$0xff]  ;;  %v966_v47 = vld [vmem:[%s7997_s2 + $0x1c8] sm:$0xff] }
 0x18d   :  { %3742 = vmatpush1.bf16.msra.mxu0 %v6730_v57  ;;  %8301 = vst [vmem:[#allocation120_spill] sm:$0xff] %v6772_v62  ;;  %8302 = vst [vmem:[#allocation121_spill] sm:$0xff] %v6781_v51  ;;  %v970_v52 = vld [vmem:[%s7997_s2 + $0x1e8] sm:$0xff]  ;;  %v6799_v60 = vpack.c.bf16 %v955_v53, %v951_v46  ;;  %v965_v57 = vld [vmem:[%s7997_s2 + $0x1c0] sm:$0xff]  ;;  %v6808_v58 = vpack.c.bf16 %v964_v61, %v960_v49 }
 0x18e   :  { %3744 = vmatprep.subr.bf16.mxu0 %v6745_v56  ;;  %v6802_v56 = vpack.c.bf16 %v961_v43, %v957_v54  ;;  %v959_v42 = vld [vmem:[%s7997_s2 + $0x190] sm:$0xff]  ;;  %v6817_v54 = vpack.c.bf16 %v970_v52, %v966_v47  ;;  %v969_v53 = vld [vmem:[%s7997_s2 + $0x1e0] sm:$0xff]  ;;  %v968_v43 = vld [vmem:[%s7997_s2 + $0x1d8] sm:$0xff] }
 0x18f   :  { %3774 = vmatpush1.bf16.msra.mxu1 %v6763_v63  ;;  %8303 = vst [vmem:[#allocation122_spill] sm:$0xff] %v6799_v60  ;;  %8305 = vst [vmem:[#allocation124_spill] sm:$0xff] %v6808_v58  ;;  %v963_v46 = vld [vmem:[%s7997_s2 + $0x1b0] sm:$0xff]  ;;  %v972_v49 = vld [vmem:[%s7997_s2 + $0x1f8] sm:$0xff]  ;;  %v6832_v47 = vpack.c.bf16 %v969_v53, %v965_v57  ;;  %v6859_v53 = vpack.c.bf16 %v5496_v7, %v5476_v3  ;;  %v6875_v3 = vpack.c.bf16 %v5521_v12, %v5501_v8 }
 0x190   :  { %8304 = vst [vmem:[#allocation123_spill] sm:$0xff] %v6802_v56  ;;  %3776 = vmatprep.subr.bf16.mxu1 %v6772_v62  ;;  %8306 = vst [vmem:[#allocation125_spill] sm:$0xff] %v6817_v54  ;;  %v6829_v61 = vpack.c.bf16 %v963_v46, %v959_v42  ;;  %v6835_v52 = vpack.c.bf16 %v972_v49, %v968_v43  ;;  %v6846_v42 = vpack.c.bf16 %v5486_v5, %v5466_v1  ;;  %v8331_v43 = vld [vmem:[#allocation27_spill] sm:$0xff] }
 0x191   :  { %3746 = vmatpush1.bf16.msra.mxu0 %v6766_v48  ;;  %8308 = vst [vmem:[#allocation127_spill] sm:$0xff] %v6832_v47  ;;  %v971_v48 = vld [vmem:[%s7997_s2 + $0x1f0] sm:$0xff]  ;;  %v6854_v46 = vpack.c.bf16 %v5481_v4, %v5461_v0  ;;  %8312 = vst [vmem:[#allocation131_spill] sm:$0xff] %v6859_v53  ;;  %v6864_v1 = vpack.c.bf16 %v5526_v13, %v5506_v9  ;;  %v6870_v0 = vpack.c.bf16 %v5491_v6, %v5471_v2 }
 0x192   :  { %3748 = vmatprep.subr.bf16.mxu0 %v6781_v51  ;;  %8307 = vst [vmem:[#allocation126_spill] sm:$0xff] %v6829_v61  ;;  %8309 = vst [vmem:[#allocation128_spill] sm:$0xff] %v6835_v52  ;;  %v967_v51 = vld [vmem:[%s7997_s2 + $0x1d0] sm:$0xff]  ;;  %v6880_v4 = vpack.c.bf16 %v5536_v15, %v5516_v11  ;;  %v6885_v5 = vpack.c.bf16 %v5566_v21, %v5546_v17  ;;  %v6892_v2 = vpack.c.bf16 %v5531_v14, %v5511_v10  ;;  %v8315_v21 = vld [vmem:[#allocation11_spill] sm:$0xff] }
 0x193   :  { %3778 = vmatpush1.bf16.msra.mxu1 %v6799_v60  ;;  %8310 = vst [vmem:[#allocation129_spill] sm:$0xff] %v6846_v42  ;;  %v6849_v57 = vpack.c.bf16 %v971_v48, %v967_v51  ;;  %v6898_v6 = vpack.c.bf16 %v5561_v20, %v5541_v16  ;;  %v6903_v7 = vpack.c.bf16 %v5576_v23, %v5556_v19  ;;  %v8314_v20 = vld [vmem:[#allocation8_spill] sm:$0xff]  ;;  %v8316_v23 = vld [vmem:[#allocation13_spill] sm:$0xff]  ;;  %v8330_v51 = vld [vmem:[#allocation23_spill] sm:$0xff] }
 0x194   :  { %3780 = vmatprep.subr.bf16.mxu1 %v6808_v58  ;;  %v6908_v8 = vpack.c.bf16 %v5606_v29, %v5586_v25  ;;  %v6913_v9 = vpack.c.bf16 %v5571_v22, %v5551_v18  ;;  %v6918_v10 = vpack.c.bf16 %v5601_v28, %v5581_v24  ;;  %v6923_v11 = vpack.c.bf16 %v5616_v31, %v5596_v27  ;;  %v8313_v18 = vld [vmem:[#allocation9_spill] sm:$0xff]  ;;  %v8319_v27 = vld [vmem:[#allocation10_spill] sm:$0xff]  ;;  %v8320_v29 = vld [vmem:[#allocation12_spill] sm:$0xff] }
 0x195   :  { %3750 = vmatpush1.bf16.msra.mxu0 %v6802_v56  ;;  %8311 = vst [vmem:[#allocation130_spill] sm:$0xff] %v6849_v57  ;;  %v6928_v12 = vpack.c.bf16 %v5646_v37, %v5626_v33  ;;  %v6933_v13 = vpack.c.bf16 %v5611_v30, %v5591_v26  ;;  %v6938_v14 = vpack.c.bf16 %v5641_v36, %v5621_v32  ;;  %v8317_v24 = vld [vmem:[#allocation17_spill] sm:$0xff]  ;;  %v8318_v26 = vld [vmem:[#allocation7_spill] sm:$0xff]  ;;  %v8321_v30 = vld [vmem:[#allocation16_spill] sm:$0xff] }
 0x196   :  { %3752 = vmatprep.subr.bf16.mxu0 %v6817_v54  ;;  %v6943_v15 = vpack.c.bf16 %v5656_v39, %v5636_v35  ;;  %v6948_v16 = vpack.c.bf16 %v5686_v45, %v5666_v41  ;;  %v6953_v17 = vpack.c.bf16 %v5651_v38, %v5631_v34  ;;  %v6958_v19 = vpack.c.bf16 %v8313_v18, %v5661_v40  ;;  %v8322_v32 = vld [vmem:[#allocation15_spill] sm:$0xff]  ;;  %v8324_v35 = vld [vmem:[#allocation21_spill] sm:$0xff]  ;;  %v8326_v38 = vld [vmem:[#allocation14_spill] sm:$0xff] }
 0x197   :  { %3782 = vmatpush1.bf16.msra.mxu1 %v6829_v61  ;;  %v6963_v22 = vpack.c.bf16 %v8315_v21, %v8314_v20  ;;  %v6968_v25 = vpack.c.bf16 %v8317_v24, %v8316_v23  ;;  %v6973_v28 = vpack.c.bf16 %v8319_v27, %v8318_v26  ;;  %v6978_v31 = vpack.c.bf16 %v8321_v30, %v8320_v29  ;;  %v8323_v33 = vld [vmem:[#allocation19_spill] sm:$0xff]  ;;  %v8325_v36 = vld [vmem:[#allocation25_spill] sm:$0xff]  ;;  %v8327_v39 = vld [vmem:[#allocation18_spill] sm:$0xff] }
 0x198   :  { %3784 = vmatprep.subr.bf16.mxu1 %v6835_v52  ;;  %v6983_v34 = vpack.c.bf16 %v8323_v33, %v8322_v32  ;;  %v6988_v37 = vpack.c.bf16 %v8325_v36, %v8324_v35  ;;  %v6993_v40 = vpack.c.bf16 %v8327_v39, %v8326_v38  ;;  %v8328_v41 = vld [vmem:[#allocation20_spill] sm:$0xff]  ;;  %v7003_v49 = vpack.c.bf16 %v8331_v43, %v8330_v51  ;;  %v8332_v18 = vld [vmem:[#allocation29_spill] sm:$0xff]  ;;  %v8334_v23 = vld [vmem:[#allocation22_spill] sm:$0xff] }
 0x199   :  { %3754 = vmatpush1.bf16.msra.mxu0 %v6832_v47  ;;  %v8329_v45 = vld [vmem:[#allocation24_spill] sm:$0xff]  ;;  %v8333_v20 = vld [vmem:[#allocation33_spill] sm:$0xff]  ;;  %v8335_v24 = vld [vmem:[#allocation26_spill] sm:$0xff] }
 0x19a   :  { %3788 = vmatprep.subr.bf16.mxu0 %v6846_v42  ;;  %v6998_v48 = vpack.c.bf16 %v8329_v45, %v8328_v41  ;;  %v7008_v21 = vpack.c.bf16 %v8333_v20, %v8332_v18  ;;  %v7013_v26 = vpack.c.bf16 %v8335_v24, %v8334_v23  ;;  %v8336_v27 = vld [vmem:[#allocation28_spill] sm:$0xff]  ;;  %v8339_v32 = vld [vmem:[#allocation31_spill] sm:$0xff]  ;;  %v8342_v36 = vld [vmem:[#allocation37_spill] sm:$0xff] }
 0x19b   :  { %3786 = vmatpush1.bf16.msra.mxu1 %v6849_v57  ;;  %v8337_v29 = vld [vmem:[#allocation32_spill] sm:$0xff]  ;;  %v8340_v33 = vld [vmem:[#allocation35_spill] sm:$0xff]  ;;  %v8343_v38 = vld [vmem:[#allocation41_spill] sm:$0xff] }
 0x19c   :  { %1038 = vmatmul.mubr.f32.vlgmr.msra.gmra.mrb[2].mxu0 %v6558_v59  ;;  %3852 = vmatprep.subr.bf16.mxu1 %v6859_v53  ;;  %v7018_v30 = vpack.c.bf16 %v8337_v29, %v8336_v27  ;;  %v7023_v35 = vpack.c.bf16 %v8340_v33, %v8339_v32  ;;  %v7028_v39 = vpack.c.bf16 %v8343_v38, %v8342_v36  ;;  %v8345_v41 = vld [vmem:[#allocation30_spill] sm:$0xff]  ;;  %v8348_v43 = vld [vmem:[#allocation36_spill] sm:$0xff]  ;;  %v8351_v23 = vld [vmem:[#allocation39_spill] sm:$0xff] }
 0x19d   :  { %3790 = vmatpush1.bf16.msra.mxu0 %v6854_v46  ;;  %1351 = vmatprep.mubr.f32.mxu0 %v8272_v50  ;;  %v8346_v45 = vld [vmem:[#allocation34_spill] sm:$0xff]  ;;  %v8349_v18 = vld [vmem:[#allocation40_spill] sm:$0xff]  ;;  %v8352_v24 = vld [vmem:[#allocation43_spill] sm:$0xff] }
 0x19e   :  { %3792 = vmatprep.subr.bf16.mxu0 %v6864_v1  ;;  %1109 = vmatmul.mubr.f32.vlgmr.msra.gmra.mrb[2].mxu1 %v6558_v59  ;;  %8338 = vst [vmem:[#allocation9_spill] sm:$0xff] %v7018_v30  ;;  %8341 = vst [vmem:[#allocation8_spill] sm:$0xff] %v7023_v35  ;;  %v7033_v51 = vpack.c.bf16 %v8346_v45, %v8345_v41  ;;  %v7038_v20 = vpack.c.bf16 %v8349_v18, %v8348_v43  ;;  %v8354_v29 = vld [vmem:[#allocation45_spill] sm:$0xff]  ;;  %v8357_v36 = vld [vmem:[#allocation38_spill] sm:$0xff] }
 0x19f   :  { %3854 = vmatpush1.bf16.msra.mxu1 %v6870_v0  ;;  %1422 = vmatprep.mubr.f32.mxu1 %v8272_v50  ;;  %8344 = vst [vmem:[#allocation11_spill] sm:$0xff] %v7028_v39  ;;  %v7043_v27 = vpack.c.bf16 %v8352_v24, %v8351_v23  ;;  %v8355_v32 = vld [vmem:[#allocation49_spill] sm:$0xff]  ;;  %v8358_v38 = vld [vmem:[#allocation42_spill] sm:$0xff]  ;;  %v8360_v45 = vld [vmem:[#allocation44_spill] sm:$0xff] }
 0x1a0   :  { %3856 = vmatprep.subr.bf16.mxu1 %v6880_v4  ;;  %8347 = vst [vmem:[#allocation13_spill] sm:$0xff] %v7033_v51  ;;  %8350 = vst [vmem:[#allocation17_spill] sm:$0xff] %v7038_v20  ;;  %v7048_v33 = vpack.c.bf16 %v8355_v32, %v8354_v29  ;;  %v7053_v41 = vpack.c.bf16 %v8358_v38, %v8357_v36  ;;  %v8361_v43 = vld [vmem:[#allocation48_spill] sm:$0xff]  ;;  %v8363_v23 = vld [vmem:[#allocation47_spill] sm:$0xff] }
 0x1a1   :  { %3794 = vmatpush1.bf16.msra.mxu0 %v6875_v3  ;;  %8353 = vst [vmem:[#allocation7_spill] sm:$0xff] %v7043_v27  ;;  %v7058_v18 = vpack.c.bf16 %v8361_v43, %v8360_v45  ;;  %v8364_v24 = vld [vmem:[#allocation51_spill] sm:$0xff]  ;;  %v8366_v29 = vld [vmem:[#allocation53_spill] sm:$0xff]  ;;  %v8369_v36 = vld [vmem:[#allocation46_spill] sm:$0xff] }
 0x1a2   :  { %3796 = vmatprep.subr.bf16.mxu0 %v6885_v5  ;;  %8356 = vst [vmem:[#allocation10_spill] sm:$0xff] %v7048_v33  ;;  %8359 = vst [vmem:[#allocation12_spill] sm:$0xff] %v7053_v41  ;;  %v8367_v32 = vld [vmem:[#allocation57_spill] sm:$0xff]  ;;  %v8370_v38 = vld [vmem:[#allocation50_spill] sm:$0xff] }
 0x1a3   :  { %3858 = vmatpush1.bf16.msra.mxu1 %v6892_v2  ;;  %8362 = vst [vmem:[#allocation16_spill] sm:$0xff] %v7058_v18  ;;  %v8372_v45 = vld [vmem:[#allocation52_spill] sm:$0xff] }
 0x1a4   :  { %3860 = vmatprep.subr.bf16.mxu1 %v6903_v7  ;;  %v8373_v43 = vld [vmem:[#allocation56_spill] sm:$0xff] }
 0x1a5   :  { %3798 = vmatpush1.bf16.msra.mxu0 %v6898_v6 }
 0x1a6   :  { %3800 = vmatprep.subr.bf16.mxu0 %v6908_v8 }
 0x1a7   :  { %3862 = vmatpush1.bf16.msra.mxu1 %v6913_v9 }
 0x1a8   :  { %3864 = vmatprep.subr.bf16.mxu1 %v6923_v11 }
 0x1a9   :  { %3802 = vmatpush1.bf16.msra.mxu0 %v6918_v10 }
 0x1aa   :  { %3804 = vmatprep.subr.bf16.mxu0 %v6928_v12 }
 0x1ab   :  { %3866 = vmatpush1.bf16.msra.mxu1 %v6933_v13 }
 0x1ac   :  { %3868 = vmatprep.subr.bf16.mxu1 %v6943_v15 }
 0x1ad   :  { %3806 = vmatpush1.bf16.msra.mxu0 %v6938_v14 }
 0x1ae   :  { %3808 = vmatprep.subr.bf16.mxu0 %v6948_v16 }
 0x1af   :  { %3870 = vmatpush1.bf16.msra.mxu1 %v6953_v17 }
 0x1b0   :  { %3872 = vmatprep.subr.bf16.mxu1 %v6963_v22 }
 0x1b1   :  { %3810 = vmatpush1.bf16.msra.mxu0 %v6958_v19 }
 0x1b2   :  { %3812 = vmatprep.subr.bf16.mxu0 %v6968_v25 }
 0x1b3   :  { %3874 = vmatpush1.bf16.msra.mxu1 %v6973_v28 }
 0x1b4   :  { %3876 = vmatprep.subr.bf16.mxu1 %v6983_v34 }
 0x1b5   :  { %3814 = vmatpush1.bf16.msra.mxu0 %v6978_v31 }
 0x1b6   :  { %3816 = vmatprep.subr.bf16.mxu0 %v6988_v37 }
 0x1b7   :  { %3878 = vmatpush1.bf16.msra.mxu1 %v6993_v40 }
 0x1b8   :  { %3880 = vmatprep.subr.bf16.mxu1 %v7003_v49 }
 0x1b9   :  { %3818 = vmatpush1.bf16.msra.mxu0 %v6998_v48 }
 0x1ba   :  { %3820 = vmatprep.subr.bf16.mxu0 %v7008_v21 }
 0x1bb   :  { %3882 = vmatpush1.bf16.msra.mxu1 %v7013_v26 }
 0x1bc   :  { %3884 = vmatprep.subr.bf16.mxu1 %v7023_v35 }
 0x1bd   :  { %3822 = vmatpush1.bf16.msra.mxu0 %v7018_v30 }
 0x1be   :  { %3824 = vmatprep.subr.bf16.mxu0 %v7028_v39  ;;  %v7063_v39 = vpack.c.bf16 %v8364_v24, %v8363_v23  ;;  %v8375_v23 = vld [vmem:[#allocation55_spill] sm:$0xff] }
 0x1bf   :  { %3886 = vmatpush1.bf16.msra.mxu1 %v7033_v51  ;;  %v7068_v51 = vpack.c.bf16 %v8367_v32, %v8366_v29  ;;  %v8376_v24 = vld [vmem:[#allocation59_spill] sm:$0xff]  ;;  %v8378_v29 = vld [vmem:[#allocation61_spill] sm:$0xff] }
 0x1c0   :  { %3888 = vmatprep.subr.bf16.mxu1 %v7043_v27  ;;  %8365 = vst [vmem:[#allocation15_spill] sm:$0xff] %v7063_v39  ;;  %v7078_v27 = vpack.c.bf16 %v8373_v43, %v8372_v45  ;;  %v8379_v32 = vld [vmem:[#allocation65_spill] sm:$0xff]  ;;  %v8384_v45 = vld [vmem:[#allocation60_spill] sm:$0xff] }
 0x1c1   :  { %3826 = vmatpush1.bf16.msra.mxu0 %v7038_v20  ;;  %8368 = vst [vmem:[#allocation19_spill] sm:$0xff] %v7068_v51  ;;  %v7073_v20 = vpack.c.bf16 %v8370_v38, %v8369_v36  ;;  %v8381_v36 = vld [vmem:[#allocation54_spill] sm:$0xff]  ;;  %v8385_v43 = vld [vmem:[#allocation64_spill] sm:$0xff] }
 0x1c2   :  { %3828 = vmatprep.subr.bf16.mxu0 %v7048_v33  ;;  %8374 = vst [vmem:[#allocation25_spill] sm:$0xff] %v7078_v27  ;;  %v7083_v33 = vpack.c.bf16 %v8376_v24, %v8375_v23  ;;  %v8382_v38 = vld [vmem:[#allocation58_spill] sm:$0xff]  ;;  %v8387_v23 = vld [vmem:[#allocation63_spill] sm:$0xff] }
 0x1c3   :  { %3890 = vmatpush1.bf16.msra.mxu1 %v7053_v41  ;;  %8371 = vst [vmem:[#allocation21_spill] sm:$0xff] %v7073_v20  ;;  %v7088_v41 = vpack.c.bf16 %v8379_v32, %v8378_v29  ;;  %v8388_v24 = vld [vmem:[#allocation67_spill] sm:$0xff]  ;;  %v8390_v29 = vld [vmem:[#allocation69_spill] sm:$0xff] }
 0x1c4   :  { %3892 = vmatprep.subr.bf16.mxu1 %v7063_v39  ;;  %8377 = vst [vmem:[#allocation14_spill] sm:$0xff] %v7083_v33  ;;  %v7098_v39 = vpack.c.bf16 %v8385_v43, %v8384_v45  ;;  %v8391_v32 = vld [vmem:[#allocation73_spill] sm:$0xff]  ;;  %v8396_v45 = vld [vmem:[#allocation68_spill] sm:$0xff] }
 0x1c5   :  { %3830 = vmatpush1.bf16.msra.mxu0 %v7058_v18  ;;  %8380 = vst [vmem:[#allocation18_spill] sm:$0xff] %v7088_v41  ;;  %v7093_v18 = vpack.c.bf16 %v8382_v38, %v8381_v36  ;;  %v8393_v36 = vld [vmem:[#allocation62_spill] sm:$0xff]  ;;  %v8397_v43 = vld [vmem:[#allocation72_spill] sm:$0xff] }
 0x1c6   :  { %3832 = vmatprep.subr.bf16.mxu0 %v7068_v51  ;;  %8386 = vst [vmem:[#allocation24_spill] sm:$0xff] %v7098_v39  ;;  %v7103_v51 = vpack.c.bf16 %v8388_v24, %v8387_v23  ;;  %v8394_v38 = vld [vmem:[#allocation66_spill] sm:$0xff]  ;;  %v8399_v23 = vld [vmem:[#allocation71_spill] sm:$0xff] }
 0x1c7   :  { %3894 = vmatpush1.bf16.msra.mxu1 %v7073_v20  ;;  %8383 = vst [vmem:[#allocation20_spill] sm:$0xff] %v7093_v18  ;;  %v7108_v20 = vpack.c.bf16 %v8391_v32, %v8390_v29  ;;  %v8400_v24 = vld [vmem:[#allocation75_spill] sm:$0xff]  ;;  %v8402_v29 = vld [vmem:[#allocation77_spill] sm:$0xff] }
 0x1c8   :  { %3896 = vmatprep.subr.bf16.mxu1 %v7083_v33  ;;  %8389 = vst [vmem:[#allocation23_spill] sm:$0xff] %v7103_v51  ;;  %v7118_v33 = vpack.c.bf16 %v8397_v43, %v8396_v45  ;;  %v8403_v32 = vld [vmem:[#allocation81_spill] sm:$0xff]  ;;  %v8408_v45 = vld [vmem:[#allocation76_spill] sm:$0xff] }
 0x1c9   :  { %3834 = vmatpush1.bf16.msra.mxu0 %v7078_v27  ;;  %8392 = vst [vmem:[#allocation27_spill] sm:$0xff] %v7108_v20  ;;  %v7113_v27 = vpack.c.bf16 %v8394_v38, %v8393_v36  ;;  %v8405_v36 = vld [vmem:[#allocation70_spill] sm:$0xff]  ;;  %v8409_v43 = vld [vmem:[#allocation80_spill] sm:$0xff] }
 0x1ca   :  { %3836 = vmatprep.subr.bf16.mxu0 %v7088_v41  ;;  %8398 = vst [vmem:[#allocation33_spill] sm:$0xff] %v7118_v33  ;;  %v7123_v41 = vpack.c.bf16 %v8400_v24, %v8399_v23  ;;  %v8406_v38 = vld [vmem:[#allocation74_spill] sm:$0xff]  ;;  %v8411_v23 = vld [vmem:[#allocation79_spill] sm:$0xff] }
 0x1cb   :  { %3898 = vmatpush1.bf16.msra.mxu1 %v7093_v18  ;;  %8395 = vst [vmem:[#allocation29_spill] sm:$0xff] %v7113_v27  ;;  %v7128_v18 = vpack.c.bf16 %v8403_v32, %v8402_v29  ;;  %v8412_v24 = vld [vmem:[#allocation83_spill] sm:$0xff]  ;;  %v8414_v29 = vld [vmem:[#allocation85_spill] sm:$0xff] }
 0x1cc   :  { %3900 = vmatprep.subr.bf16.mxu1 %v7103_v51  ;;  %8401 = vst [vmem:[#allocation22_spill] sm:$0xff] %v7123_v41  ;;  %v7138_v51 = vpack.c.bf16 %v8409_v43, %v8408_v45  ;;  %v8415_v32 = vld [vmem:[#allocation89_spill] sm:$0xff]  ;;  %v8420_v45 = vld [vmem:[#allocation84_spill] sm:$0xff] }
 0x1cd   :  { %3838 = vmatpush1.bf16.msra.mxu0 %v7098_v39  ;;  %8404 = vst [vmem:[#allocation26_spill] sm:$0xff] %v7128_v18  ;;  %v7133_v39 = vpack.c.bf16 %v8406_v38, %v8405_v36  ;;  %v8417_v36 = vld [vmem:[#allocation78_spill] sm:$0xff]  ;;  %v8421_v43 = vld [vmem:[#allocation88_spill] sm:$0xff] }
 0x1ce   :  { %3840 = vmatprep.subr.bf16.mxu0 %v7108_v20  ;;  %8410 = vst [vmem:[#allocation32_spill] sm:$0xff] %v7138_v51  ;;  %v7143_v20 = vpack.c.bf16 %v8412_v24, %v8411_v23  ;;  %v8418_v38 = vld [vmem:[#allocation82_spill] sm:$0xff]  ;;  %v8423_v23 = vld [vmem:[#allocation87_spill] sm:$0xff] }
 0x1cf   :  { %3902 = vmatpush1.bf16.msra.mxu1 %v7113_v27  ;;  %8407 = vst [vmem:[#allocation28_spill] sm:$0xff] %v7133_v39  ;;  %v7148_v27 = vpack.c.bf16 %v8415_v32, %v8414_v29  ;;  %v8424_v24 = vld [vmem:[#allocation91_spill] sm:$0xff]  ;;  %v8426_v29 = vld [vmem:[#allocation86_spill] sm:$0xff] }
 0x1d0   :  { %3904 = vmatprep.subr.bf16.mxu1 %v7123_v41  ;;  %8413 = vst [vmem:[#allocation31_spill] sm:$0xff] %v7143_v20  ;;  %v7158_v41 = vpack.c.bf16 %v8421_v43, %v8420_v45  ;;  %v8427_v32 = vld [vmem:[#allocation90_spill] sm:$0xff]  ;;  %v8430_v45 = vld [vmem:[#allocation100_spill] sm:$0xff]  ;;  %v8431_v43 = vld [vmem:[#allocation103_spill] sm:$0xff] }
 0x1d1   :  { %3842 = vmatpush1.bf16.msra.mxu0 %v7118_v33  ;;  %8416 = vst [vmem:[#allocation35_spill] sm:$0xff] %v7148_v27  ;;  %v7153_v33 = vpack.c.bf16 %v8418_v38, %v8417_v36  ;;  %v7169_v36 = vpack.c.bf16 %v8427_v32, %v8426_v29  ;;  %v8429_v38 = vld [vmem:[#allocation99_spill] sm:$0xff]  ;;  %v8434_v29 = vld [vmem:[#allocation104_spill] sm:$0xff]  ;;  %v8435_v32 = vld [vmem:[#allocation106_spill] sm:$0xff] }
 0x1d2   :  { %3844 = vmatprep.subr.bf16.mxu0 %v7128_v18  ;;  %8422 = vst [vmem:[#allocation41_spill] sm:$0xff] %v7158_v41  ;;  %v7163_v18 = vpack.c.bf16 %v8424_v24, %v8423_v23  ;;  %v8432_v23 = vld [vmem:[#allocation105_spill] sm:$0xff] }
 0x1d3   :  { %3906 = vmatpush1.bf16.msra.mxu1 %v7133_v39  ;;  %8419 = vst [vmem:[#allocation37_spill] sm:$0xff] %v7153_v33  ;;  %8428 = vst [vmem:[#allocation34_spill] sm:$0xff] %v7169_v36  ;;  %v8433_v24 = vld [vmem:[#allocation101_spill] sm:$0xff] }
 0x1d4   :  { %3908 = vmatprep.subr.bf16.mxu1 %v7143_v20  ;;  %8425 = vst [vmem:[#allocation30_spill] sm:$0xff] %v7163_v18 }
 0x1d5   :  { %3846 = vmatpush1.bf16.msra.mxu0 %v7138_v51 }
 0x1d6   :  { %3848 = vmatprep.subr.bf16.mxu0 %v7148_v27 }
 0x1d7   :  { %3910 = vmatpush1.bf16.msra.mxu1 %v7153_v33 }
 0x1d8   :  { %3912 = vmatprep.subr.bf16.mxu1 %v7163_v18 }
 0x1d9   :  { %3850 = vmatpush1.bf16.msra.mxu0 %v7158_v41 }
 0x1da   :  { %3916 = vmatprep.subr.bf16.mxu0 %v6571_v55  ;;  %v8439_v55 = vld [vmem:[#allocation110_spill] sm:$0xff] }
 0x1db   :  { %3914 = vmatpush1.bf16.msra.mxu1 %v7169_v36 }
 0x1dc   :  { %1352 = vmatmul.mubr.f32.vlgmr.msra.gmra.mrb[16].mxu0 %v6558_v59  ;;  %3948 = vmatprep.subr.bf16.mxu1 %v6608_v44  ;;  %v8436_v44 = vld [vmem:[#allocation109_spill] sm:$0xff] }
 0x1dd   :  { %3918 = vmatpush1.bf16.msra.mxu0 %v8429_v38  ;;  %1515 = vmatprep.mubr.f32.mxu0 %v8272_v50  ;;  %v8437_v38 = vld [vmem:[#allocation107_spill] sm:$0xff] }
 0x1de   :  { %3920 = vmatprep.subr.bf16.mxu0 %v8430_v45  ;;  %1423 = vmatmul.mubr.f32.vlgmr.msra.gmra.mrb[16].mxu1 %v6558_v59  ;;  %v8438_v45 = vld [vmem:[#allocation108_spill] sm:$0xff] }
 0x1df   :  { %3950 = vmatpush1.bf16.msra.mxu1 %v8431_v43  ;;  %1586 = vmatprep.mubr.f32.mxu1 %v8272_v50  ;;  %v8440_v59 = vld [vmem:[#allocation112_spill] sm:$0xff]  ;;  %v8441_v43 = vld [vmem:[#allocation111_spill] sm:$0xff]  ;;  %v8442_v50 = vld [vmem:[#allocation113_spill] sm:$0xff] }
 0x1e0   :  { %3952 = vmatprep.subr.bf16.mxu1 %v8432_v23  ;;  %v8443_v23 = vld [vmem:[#allocation114_spill] sm:$0xff] }
 0x1e1   :  { %3922 = vmatpush1.bf16.msra.mxu0 %v8433_v24  ;;  %v8444_v24 = vld [vmem:[#allocation116_spill] sm:$0xff] }
 0x1e2   :  { %3924 = vmatprep.subr.bf16.mxu0 %v8434_v29  ;;  %v8445_v29 = vld [vmem:[#allocation115_spill] sm:$0xff] }
 0x1e3   :  { %3954 = vmatpush1.bf16.msra.mxu1 %v8435_v32  ;;  %v8446_v32 = vld [vmem:[#allocation117_spill] sm:$0xff] }
 0x1e4   :  { %3956 = vmatprep.subr.bf16.mxu1 %v8436_v44 }
 0x1e5   :  { %3926 = vmatpush1.bf16.msra.mxu0 %v8437_v38 }
 0x1e6   :  { %3928 = vmatprep.subr.bf16.mxu0 %v8438_v45  ;;  %v8447_v45 = vld [vmem:[#allocation119_spill] sm:$0xff] }
 0x1e7   :  { %3958 = vmatpush1.bf16.msra.mxu1 %v8439_v55  ;;  %v8448_v55 = vld [vmem:[#allocation121_spill] sm:$0xff] }
 0x1e8   :  { %3960 = vmatprep.subr.bf16.mxu1 %v8440_v59 }
 0x1e9   :  { %3930 = vmatpush1.bf16.msra.mxu0 %v8441_v43 }
 0x1ea   :  { %3932 = vmatprep.subr.bf16.mxu0 %v8442_v50 }
 0x1eb   :  { %3962 = vmatpush1.bf16.msra.mxu1 %v8443_v23 }
 0x1ec   :  { %3964 = vmatprep.subr.bf16.mxu1 %v8444_v24 }
 0x1ed   :  { %3934 = vmatpush1.bf16.msra.mxu0 %v8445_v29 }
 0x1ee   :  { %3936 = vmatprep.subr.bf16.mxu0 %v8446_v32 }
 0x1ef   :  { %3966 = vmatpush1.bf16.msra.mxu1 %v6763_v63 }
 0x1f0   :  { %3968 = vmatprep.subr.bf16.mxu1 %v6772_v62  ;;  %v8450_v62 = vld [vmem:[#allocation94_spill] sm:$0xff] }
 0x1f1   :  { %3938 = vmatpush1.bf16.msra.mxu0 %v8447_v45 }
 0x1f2   :  { %3940 = vmatprep.subr.bf16.mxu0 %v8448_v55 }
 0x1f3   :  { %3970 = vmatpush1.bf16.msra.mxu1 %v6799_v60  ;;  %v8449_v60 = vld [vmem:[#allocation93_spill] sm:$0xff] }
 0x1f4   :  { %3972 = vmatprep.subr.bf16.mxu1 %v6808_v58 }
 0x1f5   :  { %3942 = vmatpush1.bf16.msra.mxu0 %v6802_v56 }
 0x1f6   :  { %3944 = vmatprep.subr.bf16.mxu0 %v6817_v54 }
 0x1f7   :  { %3974 = vmatpush1.bf16.msra.mxu1 %v6829_v61  ;;  %v8451_v61 = vld [vmem:[#allocation95_spill] sm:$0xff] }
 0x1f8   :  { %3976 = vmatprep.subr.bf16.mxu1 %v6835_v52 }
 0x1f9   :  { %3946 = vmatpush1.bf16.msra.mxu0 %v6832_v47 }
 0x1fa   :  { %3980 = vmatprep.subr.bf16.mxu0 %v6846_v42  ;;  %v8452_v42 = vld [vmem:[#allocation96_spill] sm:$0xff] }
 0x1fb   :  { %3978 = vmatpush1.bf16.msra.mxu1 %v6849_v57 }
 0x1fc   :  { %4044 = vmatprep.subr.bf16.mxu1 %v6859_v53 }
 0x26f   :  { %v1039_v55 = vpop.f32.mrb[2].mxu0 }
 0x270   :  { %v5197_v45 = vadd.f32 %v1039_v55, %v8449_v60  ;;  %v1041_v58 = vpop.f32.mrb[3].mxu0 }
 0x271   :  { %v5198_v56 = vadd.f32 %v1041_v58, %v8450_v62  ;;  %v1110_v54 = vpop.f32.mrb[2].mxu1  ;;  %v8453_v62 = vld [vmem:[#allocation97_spill] sm:$0xff] }
 0x272   :  { %v1119_v32 = vmul.f32 0.5, %v5197_v45  ;;  %v5213_v29 = vadd.f32 %v1110_v54, %v8451_v61  ;;  %v1112_v52 = vpop.f32.mrb[3].mxu1 }
 0x273   :  { %v1123_v63 = vmul.f32 0.5, %v5198_v56  ;;  %v5214_v47 = vadd.f32 %v1112_v52, %v8452_v42 }
 0x274   :  { %5270 = vtanh.f32 %v1119_v32 }
 0x275   :  { %5272 = vtanh.f32 %v1123_v63  ;;  %v1128_v57 = vmul.f32 0.5, %v5214_v47 }
 0x276   :  { %5274 = vtanh.f32 %v5213_v29 }
 0x277   :  { %5276 = vtanh.f32 %v1128_v57 }
 0x27e   :  { %v5271_v24 = vpop.eup %5270 }
 0x27f   :  { %v5273_v53 = vpop.eup %5272  ;;  %v1121_v50 = vadd.f32 1.0, %v5271_v24 }
 0x280   :  { %v5275_v23 = vpop.eup %5274  ;;  %v1125_v55 = vadd.f32 1.0, %v5273_v53 }
 0x281   :  { %v1122_v60 = vmul.f32 0.5, %v1121_v50  ;;  %v5277_v63 = vpop.eup %5276  ;;  %v1265_v50 = vld [vmem:[%s7999_s4] sm:$0xf] }
 0x282   :  { %v1126_v58 = vmul.f32 0.5, %v1125_v55  ;;  %v1130_v54 = vadd.f32 1.0, %v5277_v63 }
 0x283   :  { %v1133_v45 = vmul.f32 %v5275_v23, %v1122_v60 }
 0x284   :  { %v1132_v56 = vmul.f32 %v1126_v58, %v8453_v62  ;;  %v1131_v29 = vmul.f32 0.5, %v1130_v54  ;;  %v8454_v62 = vld [vmem:[#allocation92_spill] sm:$0xff] }
 0x285   :  { %v8455_v60 = vsub.s32 0, %v8454_v62  ;;  %v8457_v53 = vsub.s32 1, %v8454_v62  ;;  %v8459_v32 = vsub.s32 2, %v8454_v62 }
 0x286   :  { %v7217_v43 = vadd.f32 %v1133_v45, %v1132_v56 }
 0x287   :  { %v7253_v57 = vrot.slane %v1265_v50, %v8455_v60  ;;  %v7257_v23 = vrot.slane %v1265_v50, %v8457_v53  ;;  %v7265_v55 = vrot.slane %v1265_v50, %v8459_v32  ;;  %v8461_v53 = vsub.s32 3, %v8454_v62  ;;  %v8463_v32 = vld [vmem:[#allocation13_spill] sm:$0xff] }
 0x288   :  { %5278 = vtanh.f32 %v7217_v43 }
 0x289   :  { %8456 = vst [vmem:[#allocation36_spill] sm:$0xff] %v7253_v57  ;;  %8458 = vst [vmem:[#allocation40_spill] sm:$0xff] %v7257_v23 }
 0x28a   :  { %8460 = vst [vmem:[#allocation39_spill] sm:$0xff] %v7265_v55 }
 0x292   :  { %v5279_v52 = vpop.eup %5278 }
 0x293   :  { %v7220_v47 = vmul.f32 %v5279_v52, %v1131_v29 }
 0x295   :  { %1516 = vmatmul.mubr.f32.vlgmr.msra.gmra.mrb[4].mxu0 %v7220_v47  ;;  %1587 = vmatmul.mubr.f32.vlgmr.msra.gmra.mrb[4].mxu1 %v7220_v47 }
 0x296   :  { %3982 = vmatpush1.bf16.msra.mxu0 %v6854_v46  ;;  %4046 = vmatpush1.bf16.msra.mxu1 %v6870_v0 }
 0x297   :  { %3984 = vmatprep.subr.bf16.mxu0 %v6864_v1  ;;  %4048 = vmatprep.subr.bf16.mxu1 %v6880_v4 }
 0x29a   :  { %3986 = vmatpush1.bf16.msra.mxu0 %v6875_v3  ;;  %4050 = vmatpush1.bf16.msra.mxu1 %v6892_v2 }
 0x29b   :  { %3988 = vmatprep.subr.bf16.mxu0 %v6885_v5  ;;  %4052 = vmatprep.subr.bf16.mxu1 %v6903_v7 }
 0x29e   :  { %3990 = vmatpush1.bf16.msra.mxu0 %v6898_v6  ;;  %4054 = vmatpush1.bf16.msra.mxu1 %v6913_v9 }
 0x29f   :  { %3992 = vmatprep.subr.bf16.mxu0 %v6908_v8  ;;  %4056 = vmatprep.subr.bf16.mxu1 %v6923_v11 }
 0x2a2   :  { %3994 = vmatpush1.bf16.msra.mxu0 %v6918_v10  ;;  %4058 = vmatpush1.bf16.msra.mxu1 %v6933_v13 }
 0x2a3   :  { %3996 = vmatprep.subr.bf16.mxu0 %v6928_v12  ;;  %4060 = vmatprep.subr.bf16.mxu1 %v6943_v15 }
 0x2a6   :  { %3998 = vmatpush1.bf16.msra.mxu0 %v6938_v14  ;;  %4062 = vmatpush1.bf16.msra.mxu1 %v6953_v17 }
 0x2a7   :  { %4000 = vmatprep.subr.bf16.mxu0 %v6948_v16  ;;  %4064 = vmatprep.subr.bf16.mxu1 %v6963_v22 }
 0x2aa   :  { %4002 = vmatpush1.bf16.msra.mxu0 %v6958_v19  ;;  %4066 = vmatpush1.bf16.msra.mxu1 %v6973_v28 }
 0x2ab   :  { %4004 = vmatprep.subr.bf16.mxu0 %v6968_v25  ;;  %4068 = vmatprep.subr.bf16.mxu1 %v6983_v34 }
 0x2ae   :  { %4006 = vmatpush1.bf16.msra.mxu0 %v6978_v31  ;;  %4070 = vmatpush1.bf16.msra.mxu1 %v6993_v40 }
 0x2af   :  { %v1353_v24 = vpop.f32.mrb[16].mxu0  ;;  %4008 = vmatprep.subr.bf16.mxu0 %v6988_v37  ;;  %4072 = vmatprep.subr.bf16.mxu1 %v7003_v49 }
 0x2b0   :  { %v1354_v58 = vadd.f32 %v1353_v24, %v7253_v57  ;;  %v1355_v45 = vpop.f32.mrb[17].mxu0  ;;  %v7276_v24 = vrot.slane %v1265_v50, %v8461_v53  ;;  %v8469_v50 = vld [vmem:[#allocation15_spill] sm:$0xff]  ;;  %v8471_v53 = vld [vmem:[#allocation21_spill] sm:$0xff] }
 0x2b1   :  { %v1356_v56 = vadd.f32 %v1355_v45, %v7257_v23  ;;  %v1424_v54 = vpop.f32.mrb[16].mxu1  ;;  %v8465_v45 = vld [vmem:[#allocation7_spill] sm:$0xff] }
 0x2b2   :  { %v1429_v63 = vmul.f32 0.5, %v1354_v58  ;;  %4010 = vmatpush1.bf16.msra.mxu0 %v6998_v48  ;;  %4074 = vmatpush1.bf16.msra.mxu1 %v7013_v26  ;;  %v1425_v52 = vadd.f32 %v1424_v54, %v7265_v55  ;;  %v1426_v60 = vpop.f32.mrb[17].mxu1  ;;  %8462 = vst [vmem:[#allocation43_spill] sm:$0xff] %v7276_v24  ;;  %v8464_v58 = vld [vmem:[#allocation11_spill] sm:$0xff]  ;;  %v8466_v54 = vld [vmem:[#allocation17_spill] sm:$0xff]  ;;  %v8467_v55 = vld [vmem:[#allocation12_spill] sm:$0xff] }
 0x2b3   :  { %v1433_v29 = vmul.f32 0.5, %v1356_v56  ;;  %4012 = vmatprep.subr.bf16.mxu0 %v7008_v21  ;;  %4076 = vmatprep.subr.bf16.mxu1 %v7023_v35  ;;  %v1427_v56 = vadd.f32 %v1426_v60, %v7276_v24  ;;  %v8476_v35 = vld [vmem:[#allocation18_spill] sm:$0xff] }
 0x2b4   :  { %5280 = vtanh.f32 %v1429_v63  ;;  %v8468_v63 = vld [vmem:[#allocation10_spill] sm:$0xff] }
 0x2b5   :  { %5282 = vtanh.f32 %v1433_v29  ;;  %v1438_v62 = vmul.f32 0.5, %v1427_v56 }
 0x2b6   :  { %5284 = vtanh.f32 %v1425_v52  ;;  %4014 = vmatpush1.bf16.msra.mxu0 %v7018_v30  ;;  %4078 = vmatpush1.bf16.msra.mxu1 %v8463_v32  ;;  %v8470_v52 = vld [vmem:[#allocation16_spill] sm:$0xff]  ;;  %v8472_v30 = vld [vmem:[#allocation19_spill] sm:$0xff] }
 0x2b7   :  { %4016 = vmatprep.subr.bf16.mxu0 %v8464_v58  ;;  %4080 = vmatprep.subr.bf16.mxu1 %v8465_v45  ;;  %v8473_v45 = vld [vmem:[#allocation14_spill] sm:$0xff]  ;;  %5286 = vtanh.f32 %v1438_v62  ;;  %v8482_v62 = vld [vmem:[#allocation33_spill] sm:$0xff] }
 0x2ba   :  { %4018 = vmatpush1.bf16.msra.mxu0 %v8466_v54  ;;  %4082 = vmatpush1.bf16.msra.mxu1 %v8467_v55 }
 0x2bb   :  { %4020 = vmatprep.subr.bf16.mxu0 %v8468_v63  ;;  %4084 = vmatprep.subr.bf16.mxu1 %v8469_v50  ;;  %v8474_v63 = vld [vmem:[#allocation25_spill] sm:$0xff]  ;;  %v8475_v50 = vld [vmem:[#allocation20_spill] sm:$0xff] }
 0x2be   :  { %v5281_v29 = vpop.eup %5280  ;;  %4022 = vmatpush1.bf16.msra.mxu0 %v8470_v52  ;;  %4086 = vmatpush1.bf16.msra.mxu1 %v8471_v53  ;;  %v8477_v52 = vld [vmem:[#allocation23_spill] sm:$0xff] }
 0x2bf   :  { %v5283_v32 = vpop.eup %5282  ;;  %v1431_v58 = vadd.f32 1.0, %v5281_v29  ;;  %4024 = vmatprep.subr.bf16.mxu0 %v8472_v30  ;;  %4088 = vmatprep.subr.bf16.mxu1 %v8473_v45  ;;  %v8478_v30 = vld [vmem:[#allocation24_spill] sm:$0xff]  ;;  %v8479_v45 = vld [vmem:[#allocation29_spill] sm:$0xff] }
 0x2c0   :  { %v5285_v60 = vpop.eup %5284  ;;  %v1435_v54 = vadd.f32 1.0, %v5283_v32  ;;  %v8480_v32 = vld [vmem:[#allocation27_spill] sm:$0xff] }
 0x2c1   :  { %v1432_v55 = vmul.f32 0.5, %v1431_v58  ;;  %v8481_v58 = vld [vmem:[#allocation22_spill] sm:$0xff] }
 0x2c2   :  { %v1436_v24 = vmul.f32 0.5, %v1435_v54  ;;  %4026 = vmatpush1.bf16.msra.mxu0 %v8474_v63  ;;  %4090 = vmatpush1.bf16.msra.mxu1 %v8475_v50  ;;  %v5287_v54 = vpop.eup %5286 }
 0x2c3   :  { %v1443_v56 = vmul.f32 %v5285_v60, %v1432_v55  ;;  %4028 = vmatprep.subr.bf16.mxu0 %v8476_v35  ;;  %4092 = vmatprep.subr.bf16.mxu1 %v8477_v52  ;;  %v8483_v55 = vld [vmem:[#allocation26_spill] sm:$0xff] }
 0x2c4   :  { %v1442_v53 = vmul.f32 0.0, %v1436_v24  ;;  %v1440_v24 = vadd.f32 1.0, %v5287_v54  ;;  %v8486_v54 = vld [vmem:[#allocation99_spill] sm:$0xff] }
 0x2c6   :  { %v7295_v29 = vadd.f32 %v1443_v56, %v1442_v53  ;;  %4030 = vmatpush1.bf16.msra.mxu0 %v8478_v30  ;;  %4094 = vmatpush1.bf16.msra.mxu1 %v8479_v45  ;;  %v1441_v53 = vmul.f32 0.5, %v1440_v24  ;;  %v8488_v24 = vld [vmem:[#allocation100_spill] sm:$0xff] }
 0x2c7   :  { %4032 = vmatprep.subr.bf16.mxu0 %v8480_v32  ;;  %4096 = vmatprep.subr.bf16.mxu1 %v8481_v58 }
 0x2c8   :  { %5288 = vtanh.f32 %v7295_v29 }
 0x2ca   :  { %4034 = vmatpush1.bf16.msra.mxu0 %v8482_v62  ;;  %4098 = vmatpush1.bf16.msra.mxu1 %v7133_v39  ;;  %v8484_v39 = vld [vmem:[#allocation98_spill] sm:$0xff] }
 0x2cb   :  { %4036 = vmatprep.subr.bf16.mxu0 %v8483_v55  ;;  %4100 = vmatprep.subr.bf16.mxu1 %v7143_v20  ;;  %v8485_v55 = vld [vmem:[#allocation102_spill] sm:$0xff] }
 0x2ce   :  { %4038 = vmatpush1.bf16.msra.mxu0 %v7138_v51  ;;  %4102 = vmatpush1.bf16.msra.mxu1 %v7153_v33 }
 0x2cf   :  { %4040 = vmatprep.subr.bf16.mxu0 %v7148_v27  ;;  %4104 = vmatprep.subr.bf16.mxu1 %v7163_v18  ;;  %v8487_v18 = vld [vmem:[#allocation103_spill] sm:$0xff] }
 0x2d2   :  { %v5289_v60 = vpop.eup %5288  ;;  %4042 = vmatpush1.bf16.msra.mxu0 %v7158_v41  ;;  %4106 = vmatpush1.bf16.msra.mxu1 %v7169_v36  ;;  %v8489_v41 = vld [vmem:[#allocation105_spill] sm:$0xff]  ;;  %v8490_v36 = vmov 0.0  }
 0x2d3   :  { %v1446_v56 = vmul.f32 %v5289_v60, %v1441_v53  ;;  %4108 = vmatprep.subr.bf16.mxu0 %v8484_v39  ;;  %4140 = vmatprep.subr.bf16.mxu1 %v8485_v55  ;;  %v8491_v53 = vld [vmem:[#allocation101_spill] sm:$0xff]  ;;  %v8492_v60 = vld [vmem:[#allocation106_spill] sm:$0xff] }
 0x2d4   :  { %v8517_v39 = vld [vmem:[#allocation94_spill] sm:$0xff] }
 0x2d5   :  { %1679 = vmatprep.mubr.f32.mxu0 %v1446_v56  ;;  %1750 = vmatprep.mubr.f32.mxu1 %v1446_v56  ;;  %v8493_v56 = vld [vmem:[#allocation104_spill] sm:$0xff] }
 0x2d6   :  { %1680 = vmatmul.mubr.f32.vlgmr.msra.gmra.mrb[18].mxu0 %v7220_v47  ;;  %1751 = vmatmul.mubr.f32.vlgmr.msra.gmra.mrb[18].mxu1 %v7220_v47  ;;  %v8494_v47 = vld [vmem:[#allocation110_spill] sm:$0xff] }
 0x2d7   :  { %4110 = vmatpush1.bf16.msra.mxu0 %v8486_v54  ;;  %4142 = vmatpush1.bf16.msra.mxu1 %v8487_v18  ;;  %v8495_v18 = vld [vmem:[#allocation108_spill] sm:$0xff]  ;;  %v8516_v54 = vld [vmem:[#allocation93_spill] sm:$0xff] }
 0x2d8   :  { %4112 = vmatprep.subr.bf16.mxu0 %v8488_v24  ;;  %4144 = vmatprep.subr.bf16.mxu1 %v8489_v41  ;;  %v8496_v41 = vld [vmem:[#allocation111_spill] sm:$0xff]  ;;  %v8497_v24 = vld [vmem:[#allocation114_spill] sm:$0xff] }
 0x2d9   :  { %1843 = vmatprep.mubr.f32.mxu0 %v8490_v36  ;;  %1914 = vmatprep.mubr.f32.mxu1 %v8490_v36  ;;  %v8498_v36 = vld [vmem:[#allocation113_spill] sm:$0xff] }
 0x2db   :  { %4114 = vmatpush1.bf16.msra.mxu0 %v8491_v53  ;;  %4146 = vmatpush1.bf16.msra.mxu1 %v8492_v60  ;;  %v8499_v53 = vld [vmem:[#allocation116_spill] sm:$0xff]  ;;  %v8500_v60 = vld [vmem:[#allocation115_spill] sm:$0xff] }
 0x2dc   :  { %4116 = vmatprep.subr.bf16.mxu0 %v8493_v56  ;;  %4148 = vmatprep.subr.bf16.mxu1 %v8436_v44  ;;  %v8501_v56 = vld [vmem:[#allocation118_spill] sm:$0xff]  ;;  %v8502_v44 = vld [vmem:[#allocation117_spill] sm:$0xff] }
 0x2df   :  { %4118 = vmatpush1.bf16.msra.mxu0 %v8437_v38  ;;  %4150 = vmatpush1.bf16.msra.mxu1 %v8494_v47  ;;  %v8503_v38 = vld [vmem:[#allocation120_spill] sm:$0xff]  ;;  %v8504_v47 = vld [vmem:[#allocation119_spill] sm:$0xff] }
 0x2e0   :  { %4120 = vmatprep.subr.bf16.mxu0 %v8495_v18  ;;  %4152 = vmatprep.subr.bf16.mxu1 %v8440_v59  ;;  %v8505_v18 = vld [vmem:[#allocation122_spill] sm:$0xff]  ;;  %v8506_v59 = vld [vmem:[#allocation121_spill] sm:$0xff] }
 0x2e3   :  { %4122 = vmatpush1.bf16.msra.mxu0 %v8496_v41  ;;  %4154 = vmatpush1.bf16.msra.mxu1 %v8497_v24  ;;  %v8507_v41 = vld [vmem:[#allocation124_spill] sm:$0xff]  ;;  %v8508_v24 = vld [vmem:[#allocation123_spill] sm:$0xff] }
 0x2e4   :  { %4124 = vmatprep.subr.bf16.mxu0 %v8498_v36  ;;  %4156 = vmatprep.subr.bf16.mxu1 %v8499_v53  ;;  %v8509_v36 = vld [vmem:[#allocation126_spill] sm:$0xff]  ;;  %v8510_v53 = vld [vmem:[#allocation125_spill] sm:$0xff] }
 0x2e7   :  { %4126 = vmatpush1.bf16.msra.mxu0 %v8500_v60  ;;  %4158 = vmatpush1.bf16.msra.mxu1 %v8501_v56  ;;  %v8511_v60 = vld [vmem:[#allocation128_spill] sm:$0xff]  ;;  %v8512_v56 = vld [vmem:[#allocation127_spill] sm:$0xff] }
 0x2e8   :  { %4128 = vmatprep.subr.bf16.mxu0 %v8502_v44  ;;  %4160 = vmatprep.subr.bf16.mxu1 %v8503_v38  ;;  %v8513_v44 = vld [vmem:[#allocation130_spill] sm:$0xff]  ;;  %v8514_v38 = vld [vmem:[#allocation129_spill] sm:$0xff] }
 0x2eb   :  { %4130 = vmatpush1.bf16.msra.mxu0 %v8504_v47  ;;  %4162 = vmatpush1.bf16.msra.mxu1 %v8505_v18  ;;  %v8515_v47 = vld [vmem:[#allocation131_spill] sm:$0xff] }
 0x2ec   :  { %4132 = vmatprep.subr.bf16.mxu0 %v8506_v59  ;;  %4164 = vmatprep.subr.bf16.mxu1 %v8507_v41 }
 0x2ef   :  { %4134 = vmatpush1.bf16.msra.mxu0 %v8508_v24  ;;  %4166 = vmatpush1.bf16.msra.mxu1 %v8509_v36 }
 0x2f0   :  { %4136 = vmatprep.subr.bf16.mxu0 %v8510_v53  ;;  %4168 = vmatprep.subr.bf16.mxu1 %v8511_v60 }
 0x2f3   :  { %4138 = vmatpush1.bf16.msra.mxu0 %v8512_v56  ;;  %4170 = vmatpush1.bf16.msra.mxu1 %v8513_v44 }
 0x2f4   :  { %4172 = vmatprep.subr.bf16.mxu0 %v8514_v38  ;;  %4236 = vmatprep.subr.bf16.mxu1 %v8515_v47 }
 0x368   :  { %v1517_v18 = vpop.f32.mrb[4].mxu0  ;;  %v1588_v59 = vpop.f32.mrb[4].mxu1 }
 0x369   :  { %v5199_v41 = vadd.f32 %v1517_v18, %v8516_v54  ;;  %v1519_v55 = vpop.f32.mrb[5].mxu0  ;;  %v1590_v24 = vpop.f32.mrb[5].mxu1  ;;  %v5215_v60 = vadd.f32 %v1588_v59, %v8451_v61 }
 0x36a   :  { %v5200_v36 = vadd.f32 %v1519_v55, %v8517_v39  ;;  %v5216_v44 = vadd.f32 %v1590_v24, %v8452_v42 }
 0x36b   :  { %v1597_v27 = vmul.f32 0.5, %v5199_v41 }
 0x36c   :  { %v1601_v53 = vmul.f32 0.5, %v5200_v36  ;;  %v1606_v38 = vmul.f32 0.5, %v5216_v44 }
 0x36d   :  { %5290 = vtanh.f32 %v1597_v27 }
 0x36e   :  { %5292 = vtanh.f32 %v1601_v53  ;;  %v8518_v53 = vld [vmem:[#allocation8_spill] sm:$0xff] }
 0x36f   :  { %5294 = vtanh.f32 %v5215_v60 }
 0x370   :  { %5296 = vtanh.f32 %v1606_v38 }
 0x377   :  { %v5291_v56 = vpop.eup %5290 }
 0x378   :  { %v5293_v47 = vpop.eup %5292  ;;  %v1599_v33 = vadd.f32 1.0, %v5291_v56  ;;  %v8519_v56 = vld [vmem:[#allocation39_spill] sm:$0xff] }
 0x379   :  { %v1603_v51 = vadd.f32 1.0, %v5293_v47  ;;  %v5295_v54 = vpop.eup %5294 }
 0x37a   :  { %v1600_v18 = vmul.f32 0.5, %v1599_v33  ;;  %v5297_v27 = vpop.eup %5296 }
 0x37b   :  { %v1604_v20 = vmul.f32 0.5, %v1603_v51  ;;  %v1608_v59 = vadd.f32 1.0, %v5297_v27  ;;  %v8522_v27 = vld [vmem:[#allocation11_spill] sm:$0xff] }
 0x37c   :  { %v1611_v62 = vmul.f32 %v5295_v54, %v1600_v18  ;;  %v8520_v18 = vld [vmem:[#allocation9_spill] sm:$0xff] }
 0x37d   :  { %v1610_v41 = vmul.f32 %v1604_v20, %v7217_v43  ;;  %v1609_v55 = vmul.f32 0.5, %v1608_v59  ;;  %v8523_v59 = vld [vmem:[#allocation7_spill] sm:$0xff] }
 0x37f   :  { %v7355_v36 = vadd.f32 %v1611_v62, %v1610_v41  ;;  %v8521_v41 = vld [vmem:[#allocation13_spill] sm:$0xff] }
 0x381   :  { %5298 = vtanh.f32 %v7355_v36 }
 0x38b   :  { %v5299_v24 = vpop.eup %5298 }
 0x38c   :  { %v7358_v44 = vmul.f32 %v5299_v24, %v1609_v55  ;;  %v8524_v55 = vld [vmem:[#allocation43_spill] sm:$0xff] }
 0x38e   :  { %1844 = vmatmul.mubr.f32.vlgmr.msra.gmra.mrb[6].mxu0 %v7358_v44  ;;  %1915 = vmatmul.mubr.f32.vlgmr.msra.gmra.mrb[6].mxu1 %v7358_v44 }
 0x38f   :  { %4174 = vmatpush1.bf16.msra.mxu0 %v6854_v46  ;;  %4238 = vmatpush1.bf16.msra.mxu1 %v6870_v0 }
 0x390   :  { %4176 = vmatprep.subr.bf16.mxu0 %v6864_v1  ;;  %4240 = vmatprep.subr.bf16.mxu1 %v6880_v4 }
 0x393   :  { %4178 = vmatpush1.bf16.msra.mxu0 %v6875_v3  ;;  %4242 = vmatpush1.bf16.msra.mxu1 %v6892_v2 }
 0x394   :  { %4180 = vmatprep.subr.bf16.mxu0 %v6885_v5  ;;  %4244 = vmatprep.subr.bf16.mxu1 %v6903_v7 }
 0x397   :  { %4182 = vmatpush1.bf16.msra.mxu0 %v6898_v6  ;;  %4246 = vmatpush1.bf16.msra.mxu1 %v6913_v9 }
 0x398   :  { %4184 = vmatprep.subr.bf16.mxu0 %v6908_v8  ;;  %4248 = vmatprep.subr.bf16.mxu1 %v6923_v11 }
 0x39b   :  { %4186 = vmatpush1.bf16.msra.mxu0 %v6918_v10  ;;  %4250 = vmatpush1.bf16.msra.mxu1 %v6933_v13 }
 0x39c   :  { %4188 = vmatprep.subr.bf16.mxu0 %v6928_v12  ;;  %4252 = vmatprep.subr.bf16.mxu1 %v6943_v15 }
 0x39f   :  { %4190 = vmatpush1.bf16.msra.mxu0 %v6938_v14  ;;  %4254 = vmatpush1.bf16.msra.mxu1 %v6953_v17 }
 0x3a0   :  { %4192 = vmatprep.subr.bf16.mxu0 %v6948_v16  ;;  %4256 = vmatprep.subr.bf16.mxu1 %v6963_v22 }
 0x3a3   :  { %4194 = vmatpush1.bf16.msra.mxu0 %v6958_v19  ;;  %4258 = vmatpush1.bf16.msra.mxu1 %v6973_v28 }
 0x3a4   :  { %4196 = vmatprep.subr.bf16.mxu0 %v6968_v25  ;;  %4260 = vmatprep.subr.bf16.mxu1 %v6983_v34 }
 0x3a7   :  { %4198 = vmatpush1.bf16.msra.mxu0 %v6978_v31  ;;  %4262 = vmatpush1.bf16.msra.mxu1 %v6993_v40 }
 0x3a8   :  { %4200 = vmatprep.subr.bf16.mxu0 %v6988_v37  ;;  %4264 = vmatprep.subr.bf16.mxu1 %v7003_v49 }
 0x3a9   :  { %v1681_v51 = vpop.f32.mrb[18].mxu0  ;;  %v1752_v20 = vpop.f32.mrb[18].mxu1 }
 0x3aa   :  { %v1682_v33 = vadd.f32 %v1681_v51, %v7253_v57  ;;  %v1683_v38 = vpop.f32.mrb[19].mxu0  ;;  %v1754_v43 = vpop.f32.mrb[19].mxu1  ;;  %v1753_v47 = vadd.f32 %v1752_v20, %v8519_v56  ;;  %v8525_v51 = vld [vmem:[#allocation17_spill] sm:$0xff] }
 0x3ab   :  { %v1684_v62 = vadd.f32 %v1683_v38, %v7257_v23  ;;  %4202 = vmatpush1.bf16.msra.mxu0 %v6998_v48  ;;  %4266 = vmatpush1.bf16.msra.mxu1 %v7013_v26  ;;  %v1755_v24 = vadd.f32 %v1754_v43, %v8524_v55  ;;  %v8527_v38 = vld [vmem:[#allocation10_spill] sm:$0xff] }
 0x3ac   :  { %v1757_v54 = vmul.f32 0.5, %v1682_v33  ;;  %4204 = vmatprep.subr.bf16.mxu0 %v7008_v21  ;;  %4268 = vmatprep.subr.bf16.mxu1 %v8518_v53  ;;  %v8526_v33 = vld [vmem:[#allocation12_spill] sm:$0xff] }
 0x3ad   :  { %v1761_v60 = vmul.f32 0.5, %v1684_v62  ;;  %v8528_v62 = vld [vmem:[#allocation15_spill] sm:$0xff]  ;;  %v1766_v20 = vmul.f32 0.5, %v1755_v24 }
 0x3ae   :  { %5300 = vtanh.f32 %v1757_v54  ;;  %v8529_v54 = vld [vmem:[#allocation16_spill] sm:$0xff] }
 0x3af   :  { %5302 = vtanh.f32 %v1761_v60  ;;  %4206 = vmatpush1.bf16.msra.mxu0 %v8520_v18  ;;  %4270 = vmatpush1.bf16.msra.mxu1 %v8521_v41  ;;  %v8530_v60 = vld [vmem:[#allocation21_spill] sm:$0xff] }
 0x3b0   :  { %4208 = vmatprep.subr.bf16.mxu0 %v8522_v27  ;;  %4272 = vmatprep.subr.bf16.mxu1 %v8523_v59  ;;  %5304 = vtanh.f32 %v1753_v47  ;;  %v8531_v27 = vld [vmem:[#allocation19_spill] sm:$0xff]  ;;  %v8532_v59 = vld [vmem:[#allocation14_spill] sm:$0xff] }
 0x3b1   :  { %5306 = vtanh.f32 %v1766_v20  ;;  %v8535_v20 = vld [vmem:[#allocation28_spill] sm:$0xff] }
 0x3b3   :  { %4210 = vmatpush1.bf16.msra.mxu0 %v8525_v51  ;;  %4274 = vmatpush1.bf16.msra.mxu1 %v8526_v33 }
 0x3b4   :  { %4212 = vmatprep.subr.bf16.mxu0 %v8527_v38  ;;  %4276 = vmatprep.subr.bf16.mxu1 %v8528_v62 }
 0x3b7   :  { %4214 = vmatpush1.bf16.msra.mxu0 %v8529_v54  ;;  %4278 = vmatpush1.bf16.msra.mxu1 %v8530_v60 }
 0x3b8   :  { %v5301_v41 = vpop.eup %5300  ;;  %4216 = vmatprep.subr.bf16.mxu0 %v8531_v27  ;;  %4280 = vmatprep.subr.bf16.mxu1 %v8532_v59 }
 0x3b9   :  { %v5303_v47 = vpop.eup %5302  ;;  %v1759_v43 = vadd.f32 1.0, %v5301_v41 }
 0x3ba   :  { %v1763_v55 = vadd.f32 1.0, %v5303_v47  ;;  %v5305_v62 = vpop.eup %5304 }
 0x3bb   :  { %v1760_v51 = vmul.f32 0.5, %v1759_v43  ;;  %4218 = vmatpush1.bf16.msra.mxu0 %v8474_v63  ;;  %4282 = vmatpush1.bf16.msra.mxu1 %v8475_v50  ;;  %v5307_v47 = vpop.eup %5306  ;;  %v8538_v43 = vld [vmem:[#allocation32_spill] sm:$0xff] }
 0x3bc   :  { %v1764_v24 = vmul.f32 0.5, %v1763_v55  ;;  %4220 = vmatprep.subr.bf16.mxu0 %v8476_v35  ;;  %4284 = vmatprep.subr.bf16.mxu1 %v8477_v52  ;;  %v8534_v55 = vld [vmem:[#allocation33_spill] sm:$0xff] }
 0x3bd   :  { %v1771_v60 = vmul.f32 %v5305_v62, %v1760_v51  ;;  %v8536_v51 = vld [vmem:[#allocation26_spill] sm:$0xff]  ;;  %v1768_v62 = vadd.f32 1.0, %v5307_v47  ;;  %v8546_v47 = vld [vmem:[#allocation99_spill] sm:$0xff] }
 0x3be   :  { %v1770_v27 = vmul.f32 %v1764_v24, %v7295_v29  ;;  %v8537_v29 = vld [vmem:[#allocation31_spill] sm:$0xff]  ;;  %v8541_v24 = vld [vmem:[#allocation30_spill] sm:$0xff] }
 0x3bf   :  { %4222 = vmatpush1.bf16.msra.mxu0 %v8478_v30  ;;  %4286 = vmatpush1.bf16.msra.mxu1 %v8479_v45  ;;  %v8544_v45 = vld [vmem:[#allocation98_spill] sm:$0xff] }
 0x3c0   :  { %v7417_v41 = vadd.f32 %v1771_v60, %v1770_v27  ;;  %4224 = vmatprep.subr.bf16.mxu0 %v8480_v32  ;;  %4288 = vmatprep.subr.bf16.mxu1 %v8481_v58  ;;  %v8539_v27 = vld [vmem:[#allocation37_spill] sm:$0xff]  ;;  %v8540_v60 = vld [vmem:[#allocation35_spill] sm:$0xff]  ;;  %v1769_v58 = vmul.f32 0.5, %v1768_v62  ;;  %v8548_v62 = vld [vmem:[#allocation100_spill] sm:$0xff] }
 0x3c1   :  { %v8542_v32 = vld [vmem:[#allocation41_spill] sm:$0xff] }
 0x3c2   :  { %8533 = vst [vmem:[#allocation45_spill] sm:$0xff] %v7417_v41  ;;  %5308 = vtanh.f32 %v7417_v41 }
 0x3c3   :  { %4226 = vmatpush1.bf16.msra.mxu0 %v8534_v55  ;;  %4290 = vmatpush1.bf16.msra.mxu1 %v8535_v20  ;;  %v8543_v55 = vld [vmem:[#allocation34_spill] sm:$0xff] }
 0x3c4   :  { %4228 = vmatprep.subr.bf16.mxu0 %v8536_v51  ;;  %4292 = vmatprep.subr.bf16.mxu1 %v8537_v29  ;;  %v8545_v51 = vld [vmem:[#allocation102_spill] sm:$0xff] }
 0x3c7   :  { %4230 = vmatpush1.bf16.msra.mxu0 %v8538_v43  ;;  %4294 = vmatpush1.bf16.msra.mxu1 %v8539_v27 }
 0x3c8   :  { %4232 = vmatprep.subr.bf16.mxu0 %v8540_v60  ;;  %4296 = vmatprep.subr.bf16.mxu1 %v8541_v24  ;;  %v8547_v24 = vld [vmem:[#allocation103_spill] sm:$0xff]  ;;  %v8579_v60 = vld [vmem:[#allocation93_spill] sm:$0xff] }
 0x3cb   :  { %4234 = vmatpush1.bf16.msra.mxu0 %v8542_v32  ;;  %4298 = vmatpush1.bf16.msra.mxu1 %v8543_v55  ;;  %v8549_v32 = vld [vmem:[#allocation105_spill] sm:$0xff]  ;;  %v8550_v55 = vmov 0.0  }
 0x3cc   :  { %v5309_v20 = vpop.eup %5308  ;;  %4300 = vmatprep.subr.bf16.mxu0 %v8544_v45  ;;  %4332 = vmatprep.subr.bf16.mxu1 %v8545_v51  ;;  %v8551_v51 = vld [vmem:[#allocation101_spill] sm:$0xff]  ;;  %v8560_v45 = vld [vmem:[#allocation114_spill] sm:$0xff] }
 0x3cd   :  { %v1774_v29 = vmul.f32 %v5309_v20, %v1769_v58  ;;  %v8552_v58 = vld [vmem:[#allocation106_spill] sm:$0xff]  ;;  %v8553_v20 = vld [vmem:[#allocation104_spill] sm:$0xff] }
 0x3cf   :  { %2007 = vmatprep.mubr.f32.mxu0 %v1774_v29  ;;  %2078 = vmatprep.mubr.f32.mxu1 %v1774_v29  ;;  %v8554_v29 = vld [vmem:[#allocation109_spill] sm:$0xff] }
 0x3d0   :  { %2008 = vmatmul.mubr.f32.vlgmr.msra.gmra.mrb[20].mxu0 %v7358_v44  ;;  %2079 = vmatmul.mubr.f32.vlgmr.msra.gmra.mrb[20].mxu1 %v7358_v44  ;;  %v8555_v44 = vld [vmem:[#allocation107_spill] sm:$0xff] }
 0x3d1   :  { %4302 = vmatpush1.bf16.msra.mxu0 %v8546_v47  ;;  %4334 = vmatpush1.bf16.msra.mxu1 %v8547_v24  ;;  %v8556_v47 = vld [vmem:[#allocation110_spill] sm:$0xff]  ;;  %v8557_v24 = vld [vmem:[#allocation108_spill] sm:$0xff] }
 0x3d2   :  { %4304 = vmatprep.subr.bf16.mxu0 %v8548_v62  ;;  %4336 = vmatprep.subr.bf16.mxu1 %v8549_v32  ;;  %v8558_v62 = vld [vmem:[#allocation112_spill] sm:$0xff]  ;;  %v8559_v32 = vld [vmem:[#allocation111_spill] sm:$0xff] }
 0x3d3   :  { %2171 = vmatprep.mubr.f32.mxu0 %v8550_v55  ;;  %2242 = vmatprep.mubr.f32.mxu1 %v8550_v55  ;;  %v8561_v55 = vld [vmem:[#allocation113_spill] sm:$0xff] }
 0x3d5   :  { %4306 = vmatpush1.bf16.msra.mxu0 %v8551_v51  ;;  %4338 = vmatpush1.bf16.msra.mxu1 %v8552_v58  ;;  %v8562_v51 = vld [vmem:[#allocation116_spill] sm:$0xff]  ;;  %v8563_v58 = vld [vmem:[#allocation115_spill] sm:$0xff] }
 0x3d6   :  { %4308 = vmatprep.subr.bf16.mxu0 %v8553_v20  ;;  %4340 = vmatprep.subr.bf16.mxu1 %v8554_v29  ;;  %v8564_v20 = vld [vmem:[#allocation118_spill] sm:$0xff]  ;;  %v8565_v29 = vld [vmem:[#allocation117_spill] sm:$0xff] }
 0x3d9   :  { %4310 = vmatpush1.bf16.msra.mxu0 %v8555_v44  ;;  %4342 = vmatpush1.bf16.msra.mxu1 %v8556_v47  ;;  %v8566_v44 = vld [vmem:[#allocation120_spill] sm:$0xff]  ;;  %v8567_v47 = vld [vmem:[#allocation119_spill] sm:$0xff] }
 0x3da   :  { %4312 = vmatprep.subr.bf16.mxu0 %v8557_v24  ;;  %4344 = vmatprep.subr.bf16.mxu1 %v8558_v62  ;;  %v8568_v24 = vld [vmem:[#allocation122_spill] sm:$0xff]  ;;  %v8569_v62 = vld [vmem:[#allocation121_spill] sm:$0xff] }
 0x3dd   :  { %4314 = vmatpush1.bf16.msra.mxu0 %v8559_v32  ;;  %4346 = vmatpush1.bf16.msra.mxu1 %v8560_v45  ;;  %v8570_v32 = vld [vmem:[#allocation124_spill] sm:$0xff]  ;;  %v8571_v45 = vld [vmem:[#allocation123_spill] sm:$0xff] }
 0x3de   :  { %4316 = vmatprep.subr.bf16.mxu0 %v8561_v55  ;;  %4348 = vmatprep.subr.bf16.mxu1 %v8562_v51  ;;  %v8572_v55 = vld [vmem:[#allocation126_spill] sm:$0xff]  ;;  %v8573_v51 = vld [vmem:[#allocation125_spill] sm:$0xff] }
 0x3e1   :  { %4318 = vmatpush1.bf16.msra.mxu0 %v8563_v58  ;;  %4350 = vmatpush1.bf16.msra.mxu1 %v8564_v20  ;;  %v8574_v58 = vld [vmem:[#allocation128_spill] sm:$0xff]  ;;  %v8575_v20 = vld [vmem:[#allocation127_spill] sm:$0xff] }
 0x3e2   :  { %4320 = vmatprep.subr.bf16.mxu0 %v8565_v29  ;;  %4352 = vmatprep.subr.bf16.mxu1 %v8566_v44  ;;  %v8576_v29 = vld [vmem:[#allocation130_spill] sm:$0xff]  ;;  %v8577_v44 = vld [vmem:[#allocation129_spill] sm:$0xff] }
 0x3e5   :  { %4322 = vmatpush1.bf16.msra.mxu0 %v8567_v47  ;;  %4354 = vmatpush1.bf16.msra.mxu1 %v8568_v24  ;;  %v8578_v47 = vld [vmem:[#allocation131_spill] sm:$0xff] }
 0x3e6   :  { %4324 = vmatprep.subr.bf16.mxu0 %v8569_v62  ;;  %4356 = vmatprep.subr.bf16.mxu1 %v8570_v32 }
 0x3e9   :  { %4326 = vmatpush1.bf16.msra.mxu0 %v8571_v45  ;;  %4358 = vmatpush1.bf16.msra.mxu1 %v8572_v55 }
 0x3ea   :  { %4328 = vmatprep.subr.bf16.mxu0 %v8573_v51  ;;  %4360 = vmatprep.subr.bf16.mxu1 %v8574_v58 }
 0x3ed   :  { %4330 = vmatpush1.bf16.msra.mxu0 %v8575_v20  ;;  %4362 = vmatpush1.bf16.msra.mxu1 %v8576_v29 }
 0x3ee   :  { %4364 = vmatprep.subr.bf16.mxu0 %v8577_v44  ;;  %4428 = vmatprep.subr.bf16.mxu1 %v8578_v47 }
 0x461   :  { %v1845_v24 = vpop.f32.mrb[6].mxu0  ;;  %v1916_v62 = vpop.f32.mrb[6].mxu1 }
 0x462   :  { %v5201_v32 = vadd.f32 %v1845_v24, %v8579_v60  ;;  %v1847_v27 = vpop.f32.mrb[7].mxu0  ;;  %v1918_v45 = vpop.f32.mrb[7].mxu1  ;;  %v5217_v58 = vadd.f32 %v1916_v62, %v8451_v61 }
 0x463   :  { %v5202_v55 = vadd.f32 %v1847_v27, %v8517_v39  ;;  %v5218_v29 = vadd.f32 %v1918_v45, %v8452_v42 }
 0x464   :  { %v1925_v43 = vmul.f32 0.5, %v5201_v32 }
 0x465   :  { %v1929_v51 = vmul.f32 0.5, %v5202_v55  ;;  %v1934_v44 = vmul.f32 0.5, %v5218_v29  ;;  %v8580_v29 = vld [vmem:[#allocation13_spill] sm:$0xff] }
 0x466   :  { %5310 = vtanh.f32 %v1925_v43 }
 0x467   :  { %5312 = vtanh.f32 %v1929_v51 }
 0x468   :  { %5314 = vtanh.f32 %v5217_v58 }
 0x469   :  { %5316 = vtanh.f32 %v1934_v44  ;;  %v8581_v44 = vld [vmem:[#allocation11_spill] sm:$0xff] }
 0x470   :  { %v5311_v20 = vpop.eup %5310 }
 0x471   :  { %v5313_v47 = vpop.eup %5312  ;;  %v1927_v30 = vadd.f32 1.0, %v5311_v20 }
 0x472   :  { %v1931_v41 = vadd.f32 1.0, %v5313_v47  ;;  %v5315_v60 = vpop.eup %5314 }
 0x473   :  { %v1928_v24 = vmul.f32 0.5, %v1927_v30  ;;  %v5317_v51 = vpop.eup %5316 }
 0x474   :  { %v1932_v52 = vmul.f32 0.5, %v1931_v41  ;;  %v1936_v43 = vadd.f32 1.0, %v5317_v51 }
 0x475   :  { %v1939_v35 = vmul.f32 %v5315_v60, %v1928_v24  ;;  %v8582_v24 = vld [vmem:[#allocation7_spill] sm:$0xff] }
 0x476   :  { %v1938_v32 = vmul.f32 %v1932_v52, %v7355_v36  ;;  %v1937_v27 = vmul.f32 0.5, %v1936_v43  ;;  %v8584_v43 = vld [vmem:[#allocation17_spill] sm:$0xff] }
 0x478   :  { %v7475_v55 = vadd.f32 %v1939_v35, %v1938_v32  ;;  %v8583_v32 = vld [vmem:[#allocation43_spill] sm:$0xff] }
 0x47a   :  { %5318 = vtanh.f32 %v7475_v55 }
 0x484   :  { %v5319_v45 = vpop.eup %5318 }
 0x485   :  { %v7478_v62 = vmul.f32 %v5319_v45, %v1937_v27  ;;  %v8585_v27 = vld [vmem:[#allocation15_spill] sm:$0xff] }
 0x487   :  { %2172 = vmatmul.mubr.f32.vlgmr.msra.gmra.mrb[8].mxu0 %v7478_v62  ;;  %2243 = vmatmul.mubr.f32.vlgmr.msra.gmra.mrb[8].mxu1 %v7478_v62 }
 0x488   :  { %4366 = vmatpush1.bf16.msra.mxu0 %v6854_v46  ;;  %4430 = vmatpush1.bf16.msra.mxu1 %v6870_v0 }
 0x489   :  { %4368 = vmatprep.subr.bf16.mxu0 %v6864_v1  ;;  %4432 = vmatprep.subr.bf16.mxu1 %v6880_v4 }
 0x48c   :  { %4370 = vmatpush1.bf16.msra.mxu0 %v6875_v3  ;;  %4434 = vmatpush1.bf16.msra.mxu1 %v6892_v2 }
 0x48d   :  { %4372 = vmatprep.subr.bf16.mxu0 %v6885_v5  ;;  %4436 = vmatprep.subr.bf16.mxu1 %v6903_v7 }
 0x490   :  { %4374 = vmatpush1.bf16.msra.mxu0 %v6898_v6  ;;  %4438 = vmatpush1.bf16.msra.mxu1 %v6913_v9 }
 0x491   :  { %4376 = vmatprep.subr.bf16.mxu0 %v6908_v8  ;;  %4440 = vmatprep.subr.bf16.mxu1 %v6923_v11 }
 0x494   :  { %4378 = vmatpush1.bf16.msra.mxu0 %v6918_v10  ;;  %4442 = vmatpush1.bf16.msra.mxu1 %v6933_v13 }
 0x495   :  { %4380 = vmatprep.subr.bf16.mxu0 %v6928_v12  ;;  %4444 = vmatprep.subr.bf16.mxu1 %v6943_v15 }
 0x498   :  { %4382 = vmatpush1.bf16.msra.mxu0 %v6938_v14  ;;  %4446 = vmatpush1.bf16.msra.mxu1 %v6953_v17 }
 0x499   :  { %4384 = vmatprep.subr.bf16.mxu0 %v6948_v16  ;;  %4448 = vmatprep.subr.bf16.mxu1 %v6963_v22 }
 0x49c   :  { %4386 = vmatpush1.bf16.msra.mxu0 %v6958_v19  ;;  %4450 = vmatpush1.bf16.msra.mxu1 %v6973_v28 }
 0x49d   :  { %4388 = vmatprep.subr.bf16.mxu0 %v6968_v25  ;;  %4452 = vmatprep.subr.bf16.mxu1 %v6983_v34 }
 0x4a0   :  { %4390 = vmatpush1.bf16.msra.mxu0 %v6978_v31  ;;  %4454 = vmatpush1.bf16.msra.mxu1 %v6993_v40 }
 0x4a1   :  { %4392 = vmatprep.subr.bf16.mxu0 %v6988_v37  ;;  %4456 = vmatprep.subr.bf16.mxu1 %v7003_v49 }
 0x4a3   :  { %v2009_v30 = vpop.f32.mrb[20].mxu0  ;;  %v2080_v35 = vpop.f32.mrb[20].mxu1 }
 0x4a4   :  { %v2010_v52 = vadd.f32 %v2009_v30, %v7253_v57  ;;  %v2011_v36 = vpop.f32.mrb[21].mxu0  ;;  %v2082_v41 = vpop.f32.mrb[21].mxu1  ;;  %4394 = vmatpush1.bf16.msra.mxu0 %v6998_v48  ;;  %4458 = vmatpush1.bf16.msra.mxu1 %v7013_v26  ;;  %v2081_v20 = vadd.f32 %v2080_v35, %v8519_v56  ;;  %v8586_v30 = vld [vmem:[#allocation21_spill] sm:$0xff]  ;;  %v8587_v35 = vld [vmem:[#allocation19_spill] sm:$0xff] }
 0x4a5   :  { %v2012_v60 = vadd.f32 %v2011_v36, %v7257_v23  ;;  %4396 = vmatprep.subr.bf16.mxu0 %v7008_v21  ;;  %4460 = vmatprep.subr.bf16.mxu1 %v8518_v53  ;;  %v2083_v51 = vadd.f32 %v2082_v41, %v8583_v32 }
 0x4a6   :  { %v2085_v47 = vmul.f32 0.5, %v2010_v52 }
 0x4a7   :  { %v2089_v58 = vmul.f32 0.5, %v2012_v60  ;;  %v2094_v45 = vmul.f32 0.5, %v2083_v51 }
 0x4a8   :  { %5320 = vtanh.f32 %v2085_v47  ;;  %4398 = vmatpush1.bf16.msra.mxu0 %v8520_v18  ;;  %4462 = vmatpush1.bf16.msra.mxu1 %v8580_v29 }
 0x4a9   :  { %5322 = vtanh.f32 %v2089_v58  ;;  %4400 = vmatprep.subr.bf16.mxu0 %v8581_v44  ;;  %4464 = vmatprep.subr.bf16.mxu1 %v8582_v24  ;;  %v8588_v58 = vld [vmem:[#allocation18_spill] sm:$0xff] }
 0x4aa   :  { %5324 = vtanh.f32 %v2081_v20  ;;  %v8589_v20 = vld [vmem:[#allocation23_spill] sm:$0xff] }
 0x4ab   :  { %5326 = vtanh.f32 %v2094_v45  ;;  %v8594_v45 = vld [vmem:[#allocation22_spill] sm:$0xff] }
 0x4ac   :  { %4402 = vmatpush1.bf16.msra.mxu0 %v8584_v43  ;;  %4466 = vmatpush1.bf16.msra.mxu1 %v8526_v33 }
 0x4ad   :  { %4404 = vmatprep.subr.bf16.mxu0 %v8527_v38  ;;  %4468 = vmatprep.subr.bf16.mxu1 %v8585_v27  ;;  %v8592_v38 = vld [vmem:[#allocation29_spill] sm:$0xff] }
 0x4b0   :  { %4406 = vmatpush1.bf16.msra.mxu0 %v8529_v54  ;;  %4470 = vmatpush1.bf16.msra.mxu1 %v8586_v30 }
 0x4b1   :  { %4408 = vmatprep.subr.bf16.mxu0 %v8587_v35  ;;  %4472 = vmatprep.subr.bf16.mxu1 %v8532_v59  ;;  %v8590_v35 = vld [vmem:[#allocation45_spill] sm:$0xff]  ;;  %v8591_v59 = vld [vmem:[#allocation24_spill] sm:$0xff] }
 0x4b2   :  { %v5321_v52 = vpop.eup %5320 }
 0x4b3   :  { %v5323_v36 = vpop.eup %5322  ;;  %v2087_v41 = vadd.f32 1.0, %v5321_v52  ;;  %v8593_v52 = vld [vmem:[#allocation27_spill] sm:$0xff] }
 0x4b4   :  { %v2091_v60 = vadd.f32 1.0, %v5323_v36  ;;  %4410 = vmatpush1.bf16.msra.mxu0 %v8474_v63  ;;  %4474 = vmatpush1.bf16.msra.mxu1 %v8475_v50  ;;  %v5325_v51 = vpop.eup %5324 }
 0x4b5   :  { %v2088_v47 = vmul.f32 0.5, %v2087_v41  ;;  %4412 = vmatprep.subr.bf16.mxu0 %v8588_v58  ;;  %4476 = vmatprep.subr.bf16.mxu1 %v8589_v20  ;;  %v8596_v41 = vld [vmem:[#allocation33_spill] sm:$0xff]  ;;  %v8597_v20 = vld [vmem:[#allocation28_spill] sm:$0xff] }
 0x4b6   :  { %v2092_v30 = vmul.f32 0.5, %v2091_v60  ;;  %v8598_v60 = vld [vmem:[#allocation26_spill] sm:$0xff] }
 0x4b7   :  { %v2099_v54 = vmul.f32 %v5325_v51, %v2088_v47  ;;  %v8599_v47 = vld [vmem:[#allocation31_spill] sm:$0xff]  ;;  %v8601_v51 = vld [vmem:[#allocation37_spill] sm:$0xff] }
 0x4b8   :  { %v2098_v27 = vmul.f32 %v2092_v30, %v8590_v35  ;;  %4414 = vmatpush1.bf16.msra.mxu0 %v8591_v59  ;;  %4478 = vmatpush1.bf16.msra.mxu1 %v8592_v38  ;;  %v5327_v30 = vpop.eup %5326  ;;  %v8600_v35 = vld [vmem:[#allocation32_spill] sm:$0xff]  ;;  %v8602_v38 = vld [vmem:[#allocation35_spill] sm:$0xff] }
 0x4b9   :  { %4416 = vmatprep.subr.bf16.mxu0 %v8593_v52  ;;  %4480 = vmatprep.subr.bf16.mxu1 %v8594_v45  ;;  %v2096_v52 = vadd.f32 1.0, %v5327_v30  ;;  %v8605_v45 = vld [vmem:[#allocation34_spill] sm:$0xff]  ;;  %v8608_v30 = vld [vmem:[#allocation99_spill] sm:$0xff] }
 0x4ba   :  { %v7539_v36 = vadd.f32 %v2099_v54, %v2098_v27  ;;  %v8603_v54 = vld [vmem:[#allocation30_spill] sm:$0xff]  ;;  %v8604_v27 = vld [vmem:[#allocation41_spill] sm:$0xff] }
 0x4bc   :  { %8595 = vst [vmem:[#allocation49_spill] sm:$0xff] %v7539_v36  ;;  %5328 = vtanh.f32 %v7539_v36  ;;  %4418 = vmatpush1.bf16.msra.mxu0 %v8596_v41  ;;  %4482 = vmatpush1.bf16.msra.mxu1 %v8597_v20  ;;  %v2097_v41 = vmul.f32 0.5, %v2096_v52  ;;  %v8606_v20 = vld [vmem:[#allocation98_spill] sm:$0xff]  ;;  %v8612_v52 = vmov 0.0  }
 0x4bd   :  { %4420 = vmatprep.subr.bf16.mxu0 %v8598_v60  ;;  %4484 = vmatprep.subr.bf16.mxu1 %v8599_v47  ;;  %v8607_v60 = vld [vmem:[#allocation102_spill] sm:$0xff] }
 0x4c0   :  { %4422 = vmatpush1.bf16.msra.mxu0 %v8600_v35  ;;  %4486 = vmatpush1.bf16.msra.mxu1 %v8601_v51 }
 0x4c1   :  { %4424 = vmatprep.subr.bf16.mxu0 %v8602_v38  ;;  %4488 = vmatprep.subr.bf16.mxu1 %v8603_v54  ;;  %v8609_v54 = vld [vmem:[#allocation103_spill] sm:$0xff]  ;;  %v8641_v38 = vld [vmem:[#allocation93_spill] sm:$0xff] }
 0x4c4   :  { %4426 = vmatpush1.bf16.msra.mxu0 %v8604_v27  ;;  %4490 = vmatpush1.bf16.msra.mxu1 %v8605_v45  ;;  %v8610_v27 = vld [vmem:[#allocation100_spill] sm:$0xff]  ;;  %v8611_v45 = vld [vmem:[#allocation105_spill] sm:$0xff] }
 0x4c5   :  { %4492 = vmatprep.subr.bf16.mxu0 %v8606_v20  ;;  %4524 = vmatprep.subr.bf16.mxu1 %v8607_v60  ;;  %v8613_v60 = vld [vmem:[#allocation101_spill] sm:$0xff]  ;;  %v8622_v20 = vld [vmem:[#allocation114_spill] sm:$0xff] }
 0x4c6   :  { %v5329_v47 = vpop.eup %5328 }
 0x4c7   :  { %v2102_v36 = vmul.f32 %v5329_v47, %v2097_v41  ;;  %v8614_v41 = vld [vmem:[#allocation106_spill] sm:$0xff]  ;;  %v8616_v47 = vld [vmem:[#allocation109_spill] sm:$0xff] }
 0x4c9   :  { %2335 = vmatprep.mubr.f32.mxu0 %v2102_v36  ;;  %2406 = vmatprep.mubr.f32.mxu1 %v2102_v36  ;;  %v8615_v36 = vld [vmem:[#allocation104_spill] sm:$0xff] }
 0x4ca   :  { %2336 = vmatmul.mubr.f32.vlgmr.msra.gmra.mrb[22].mxu0 %v7478_v62  ;;  %2407 = vmatmul.mubr.f32.vlgmr.msra.gmra.mrb[22].mxu1 %v7478_v62  ;;  %v8617_v62 = vld [vmem:[#allocation107_spill] sm:$0xff] }
 0x4cb   :  { %4494 = vmatpush1.bf16.msra.mxu0 %v8608_v30  ;;  %4526 = vmatpush1.bf16.msra.mxu1 %v8609_v54  ;;  %v8618_v30 = vld [vmem:[#allocation110_spill] sm:$0xff]  ;;  %v8619_v54 = vld [vmem:[#allocation108_spill] sm:$0xff] }
 0x4cc   :  { %4496 = vmatprep.subr.bf16.mxu0 %v8610_v27  ;;  %4528 = vmatprep.subr.bf16.mxu1 %v8611_v45  ;;  %v8620_v27 = vld [vmem:[#allocation112_spill] sm:$0xff]  ;;  %v8621_v45 = vld [vmem:[#allocation111_spill] sm:$0xff] }
 0x4cd   :  { %2499 = vmatprep.mubr.f32.mxu0 %v8612_v52  ;;  %2570 = vmatprep.mubr.f32.mxu1 %v8612_v52  ;;  %v8623_v52 = vld [vmem:[#allocation113_spill] sm:$0xff] }
 0x4cf   :  { %4498 = vmatpush1.bf16.msra.mxu0 %v8613_v60  ;;  %4530 = vmatpush1.bf16.msra.mxu1 %v8614_v41  ;;  %v8624_v60 = vld [vmem:[#allocation116_spill] sm:$0xff]  ;;  %v8625_v41 = vld [vmem:[#allocation115_spill] sm:$0xff] }
 0x4d0   :  { %4500 = vmatprep.subr.bf16.mxu0 %v8615_v36  ;;  %4532 = vmatprep.subr.bf16.mxu1 %v8616_v47  ;;  %v8626_v36 = vld [vmem:[#allocation118_spill] sm:$0xff]  ;;  %v8627_v47 = vld [vmem:[#allocation117_spill] sm:$0xff] }
 0x4d3   :  { %4502 = vmatpush1.bf16.msra.mxu0 %v8617_v62  ;;  %4534 = vmatpush1.bf16.msra.mxu1 %v8618_v30  ;;  %v8628_v62 = vld [vmem:[#allocation120_spill] sm:$0xff]  ;;  %v8629_v30 = vld [vmem:[#allocation119_spill] sm:$0xff] }
 0x4d4   :  { %4504 = vmatprep.subr.bf16.mxu0 %v8619_v54  ;;  %4536 = vmatprep.subr.bf16.mxu1 %v8620_v27  ;;  %v8630_v54 = vld [vmem:[#allocation122_spill] sm:$0xff]  ;;  %v8631_v27 = vld [vmem:[#allocation121_spill] sm:$0xff] }
 0x4d7   :  { %4506 = vmatpush1.bf16.msra.mxu0 %v8621_v45  ;;  %4538 = vmatpush1.bf16.msra.mxu1 %v8622_v20  ;;  %v8632_v45 = vld [vmem:[#allocation124_spill] sm:$0xff]  ;;  %v8633_v20 = vld [vmem:[#allocation123_spill] sm:$0xff] }
 0x4d8   :  { %4508 = vmatprep.subr.bf16.mxu0 %v8623_v52  ;;  %4540 = vmatprep.subr.bf16.mxu1 %v8624_v60  ;;  %v8634_v52 = vld [vmem:[#allocation126_spill] sm:$0xff]  ;;  %v8635_v60 = vld [vmem:[#allocation125_spill] sm:$0xff] }
 0x4db   :  { %4510 = vmatpush1.bf16.msra.mxu0 %v8625_v41  ;;  %4542 = vmatpush1.bf16.msra.mxu1 %v8626_v36  ;;  %v8636_v41 = vld [vmem:[#allocation128_spill] sm:$0xff]  ;;  %v8637_v36 = vld [vmem:[#allocation127_spill] sm:$0xff] }
 0x4dc   :  { %4512 = vmatprep.subr.bf16.mxu0 %v8627_v47  ;;  %4544 = vmatprep.subr.bf16.mxu1 %v8628_v62  ;;  %v8638_v47 = vld [vmem:[#allocation130_spill] sm:$0xff]  ;;  %v8639_v62 = vld [vmem:[#allocation129_spill] sm:$0xff] }
 0x4df   :  { %4514 = vmatpush1.bf16.msra.mxu0 %v8629_v30  ;;  %4546 = vmatpush1.bf16.msra.mxu1 %v8630_v54  ;;  %v8640_v30 = vld [vmem:[#allocation131_spill] sm:$0xff] }
 0x4e0   :  { %4516 = vmatprep.subr.bf16.mxu0 %v8631_v27  ;;  %4548 = vmatprep.subr.bf16.mxu1 %v8632_v45 }
 0x4e3   :  { %4518 = vmatpush1.bf16.msra.mxu0 %v8633_v20  ;;  %4550 = vmatpush1.bf16.msra.mxu1 %v8634_v52 }
 0x4e4   :  { %4520 = vmatprep.subr.bf16.mxu0 %v8635_v60  ;;  %4552 = vmatprep.subr.bf16.mxu1 %v8636_v41 }
 0x4e7   :  { %4522 = vmatpush1.bf16.msra.mxu0 %v8637_v36  ;;  %4554 = vmatpush1.bf16.msra.mxu1 %v8638_v47 }
 0x4e8   :  { %4556 = vmatprep.subr.bf16.mxu0 %v8639_v62  ;;  %4620 = vmatprep.subr.bf16.mxu1 %v8640_v30 }
 0x55a   :  { %v2173_v54 = vpop.f32.mrb[8].mxu0  ;;  %v2244_v27 = vpop.f32.mrb[8].mxu1 }
 0x55b   :  { %v5203_v45 = vadd.f32 %v2173_v54, %v8641_v38  ;;  %v2175_v51 = vpop.f32.mrb[9].mxu0  ;;  %v2246_v20 = vpop.f32.mrb[9].mxu1  ;;  %v5219_v41 = vadd.f32 %v2244_v27, %v8451_v61 }
 0x55c   :  { %v5204_v52 = vadd.f32 %v2175_v51, %v8517_v39  ;;  %v5220_v47 = vadd.f32 %v2246_v20, %v8452_v42 }
 0x55d   :  { %v2253_v35 = vmul.f32 0.5, %v5203_v45 }
 0x55e   :  { %v2257_v60 = vmul.f32 0.5, %v5204_v52  ;;  %v2262_v62 = vmul.f32 0.5, %v5220_v47 }
 0x55f   :  { %5330 = vtanh.f32 %v2253_v35 }
 0x560   :  { %5332 = vtanh.f32 %v2257_v60 }
 0x561   :  { %5334 = vtanh.f32 %v5219_v41 }
 0x562   :  { %5336 = vtanh.f32 %v2262_v62  ;;  %v8642_v62 = vld [vmem:[#allocation10_spill] sm:$0xff] }
 0x569   :  { %v5331_v36 = vpop.eup %5330 }
 0x56a   :  { %v5333_v30 = vpop.eup %5332  ;;  %v2255_v59 = vadd.f32 1.0, %v5331_v36 }
 0x56b   :  { %v2259_v58 = vadd.f32 1.0, %v5333_v30  ;;  %v5335_v38 = vpop.eup %5334 }
 0x56c   :  { %v2256_v54 = vmul.f32 0.5, %v2255_v59  ;;  %v5337_v60 = vpop.eup %5336 }
 0x56d   :  { %v2260_v50 = vmul.f32 0.5, %v2259_v58  ;;  %v2264_v35 = vadd.f32 1.0, %v5337_v60  ;;  %v8645_v60 = vld [vmem:[#allocation21_spill] sm:$0xff] }
 0x56e   :  { %v2267_v63 = vmul.f32 %v5335_v38, %v2256_v54  ;;  %v8643_v54 = vld [vmem:[#allocation15_spill] sm:$0xff] }
 0x56f   :  { %v2266_v45 = vmul.f32 %v2260_v50, %v7475_v55  ;;  %v2265_v27 = vmul.f32 0.5, %v2264_v35 }
 0x571   :  { %v7595_v51 = vadd.f32 %v2267_v63, %v2266_v45  ;;  %v8644_v45 = vld [vmem:[#allocation16_spill] sm:$0xff] }
 0x573   :  { %5338 = vtanh.f32 %v7595_v51 }
 0x57d   :  { %v5339_v20 = vpop.eup %5338 }
 0x57e   :  { %v7598_v52 = vmul.f32 %v5339_v20, %v2265_v27  ;;  %v8646_v27 = vld [vmem:[#allocation19_spill] sm:$0xff]  ;;  %v8647_v20 = vld [vmem:[#allocation14_spill] sm:$0xff] }
 0x580   :  { %2500 = vmatmul.mubr.f32.vlgmr.msra.gmra.mrb[10].mxu0 %v7598_v52  ;;  %2571 = vmatmul.mubr.f32.vlgmr.msra.gmra.mrb[10].mxu1 %v7598_v52 }
 0x581   :  { %4558 = vmatpush1.bf16.msra.mxu0 %v6854_v46  ;;  %4622 = vmatpush1.bf16.msra.mxu1 %v6870_v0 }
 0x582   :  { %4560 = vmatprep.subr.bf16.mxu0 %v6864_v1  ;;  %4624 = vmatprep.subr.bf16.mxu1 %v6880_v4 }
 0x585   :  { %4562 = vmatpush1.bf16.msra.mxu0 %v6875_v3  ;;  %4626 = vmatpush1.bf16.msra.mxu1 %v6892_v2 }
 0x586   :  { %4564 = vmatprep.subr.bf16.mxu0 %v6885_v5  ;;  %4628 = vmatprep.subr.bf16.mxu1 %v6903_v7 }
 0x589   :  { %4566 = vmatpush1.bf16.msra.mxu0 %v6898_v6  ;;  %4630 = vmatpush1.bf16.msra.mxu1 %v6913_v9 }
 0x58a   :  { %4568 = vmatprep.subr.bf16.mxu0 %v6908_v8  ;;  %4632 = vmatprep.subr.bf16.mxu1 %v6923_v11 }
 0x58d   :  { %4570 = vmatpush1.bf16.msra.mxu0 %v6918_v10  ;;  %4634 = vmatpush1.bf16.msra.mxu1 %v6933_v13 }
 0x58e   :  { %4572 = vmatprep.subr.bf16.mxu0 %v6928_v12  ;;  %4636 = vmatprep.subr.bf16.mxu1 %v6943_v15 }
 0x591   :  { %4574 = vmatpush1.bf16.msra.mxu0 %v6938_v14  ;;  %4638 = vmatpush1.bf16.msra.mxu1 %v6953_v17 }
 0x592   :  { %4576 = vmatprep.subr.bf16.mxu0 %v6948_v16  ;;  %4640 = vmatprep.subr.bf16.mxu1 %v6963_v22 }
 0x595   :  { %4578 = vmatpush1.bf16.msra.mxu0 %v6958_v19  ;;  %4642 = vmatpush1.bf16.msra.mxu1 %v6973_v28 }
 0x596   :  { %4580 = vmatprep.subr.bf16.mxu0 %v6968_v25  ;;  %4644 = vmatprep.subr.bf16.mxu1 %v6983_v34 }
 0x599   :  { %4582 = vmatpush1.bf16.msra.mxu0 %v6978_v31  ;;  %4646 = vmatpush1.bf16.msra.mxu1 %v6993_v40 }
 0x59a   :  { %4584 = vmatprep.subr.bf16.mxu0 %v6988_v37  ;;  %4648 = vmatprep.subr.bf16.mxu1 %v7003_v49 }
 0x59d   :  { %v2337_v63 = vpop.f32.mrb[22].mxu0  ;;  %v2408_v50 = vpop.f32.mrb[22].mxu1  ;;  %4586 = vmatpush1.bf16.msra.mxu0 %v6998_v48  ;;  %4650 = vmatpush1.bf16.msra.mxu1 %v7013_v26 }
 0x59e   :  { %v2338_v59 = vadd.f32 %v2337_v63, %v7253_v57  ;;  %v2339_v38 = vpop.f32.mrb[23].mxu0  ;;  %v2410_v55 = vpop.f32.mrb[23].mxu1  ;;  %4588 = vmatprep.subr.bf16.mxu0 %v7008_v21  ;;  %4652 = vmatprep.subr.bf16.mxu1 %v8518_v53  ;;  %v2409_v36 = vadd.f32 %v2408_v50, %v8519_v56 }
 0x59f   :  { %v2340_v58 = vadd.f32 %v2339_v38, %v7257_v23  ;;  %v2411_v47 = vadd.f32 %v2410_v55, %v8583_v32  ;;  %v8648_v38 = vld [vmem:[#allocation25_spill] sm:$0xff] }
 0x5a0   :  { %v2413_v30 = vmul.f32 0.5, %v2338_v59  ;;  %v8654_v32 = vld [vmem:[#allocation49_spill] sm:$0xff] }
 0x5a1   :  { %v2417_v41 = vmul.f32 0.5, %v2340_v58  ;;  %4590 = vmatpush1.bf16.msra.mxu0 %v8520_v18  ;;  %4654 = vmatpush1.bf16.msra.mxu1 %v8580_v29  ;;  %v2422_v35 = vmul.f32 0.5, %v2411_v47  ;;  %v8649_v58 = vld [vmem:[#allocation20_spill] sm:$0xff] }
 0x5a2   :  { %5340 = vtanh.f32 %v2413_v30  ;;  %4592 = vmatprep.subr.bf16.mxu0 %v8581_v44  ;;  %4656 = vmatprep.subr.bf16.mxu1 %v8582_v24  ;;  %v8650_v30 = vld [vmem:[#allocation18_spill] sm:$0xff] }
 0x5a3   :  { %5342 = vtanh.f32 %v2417_v41  ;;  %v8651_v41 = vld [vmem:[#allocation23_spill] sm:$0xff] }
 0x5a4   :  { %5344 = vtanh.f32 %v2409_v36 }
 0x5a5   :  { %4594 = vmatpush1.bf16.msra.mxu0 %v8584_v43  ;;  %4658 = vmatpush1.bf16.msra.mxu1 %v8526_v33  ;;  %5346 = vtanh.f32 %v2422_v35  ;;  %v8658_v35 = vld [vmem:[#allocation33_spill] sm:$0xff] }
 0x5a6   :  { %4596 = vmatprep.subr.bf16.mxu0 %v8642_v62  ;;  %4660 = vmatprep.subr.bf16.mxu1 %v8643_v54  ;;  %v8655_v54 = vld [vmem:[#allocation27_spill] sm:$0xff] }
 0x5a9   :  { %4598 = vmatpush1.bf16.msra.mxu0 %v8644_v45  ;;  %4662 = vmatpush1.bf16.msra.mxu1 %v8645_v60 }
 0x5aa   :  { %4600 = vmatprep.subr.bf16.mxu0 %v8646_v27  ;;  %4664 = vmatprep.subr.bf16.mxu1 %v8647_v20  ;;  %v8652_v27 = vld [vmem:[#allocation24_spill] sm:$0xff]  ;;  %v8653_v20 = vld [vmem:[#allocation29_spill] sm:$0xff] }
 0x5ac   :  { %v5341_v63 = vpop.eup %5340 }
 0x5ad   :  { %v5343_v50 = vpop.eup %5342  ;;  %v2415_v59 = vadd.f32 1.0, %v5341_v63  ;;  %4602 = vmatpush1.bf16.msra.mxu0 %v8648_v38  ;;  %4666 = vmatpush1.bf16.msra.mxu1 %v8649_v58  ;;  %v8656_v38 = vld [vmem:[#allocation22_spill] sm:$0xff] }
 0x5ae   :  { %v2419_v55 = vadd.f32 1.0, %v5343_v50  ;;  %4604 = vmatprep.subr.bf16.mxu0 %v8650_v30  ;;  %4668 = vmatprep.subr.bf16.mxu1 %v8651_v41  ;;  %v5345_v60 = vpop.eup %5344  ;;  %v8659_v30 = vld [vmem:[#allocation28_spill] sm:$0xff] }
 0x5af   :  { %v2416_v36 = vmul.f32 0.5, %v2415_v59  ;;  %v8660_v59 = vld [vmem:[#allocation26_spill] sm:$0xff] }
 0x5b0   :  { %v2420_v47 = vmul.f32 0.5, %v2419_v55  ;;  %v5347_v55 = vpop.eup %5346 }
 0x5b1   :  { %v2427_v45 = vmul.f32 %v5345_v60, %v2416_v36  ;;  %4606 = vmatpush1.bf16.msra.mxu0 %v8652_v27  ;;  %4670 = vmatpush1.bf16.msra.mxu1 %v8653_v20  ;;  %v8661_v60 = vld [vmem:[#allocation31_spill] sm:$0xff]  ;;  %v8662_v36 = vld [vmem:[#allocation32_spill] sm:$0xff] }
 0x5b2   :  { %v2426_v63 = vmul.f32 %v2420_v47, %v8654_v32  ;;  %4608 = vmatprep.subr.bf16.mxu0 %v8655_v54  ;;  %4672 = vmatprep.subr.bf16.mxu1 %v8656_v38  ;;  %v8663_v32 = vld [vmem:[#allocation37_spill] sm:$0xff]  ;;  %v8664_v47 = vld [vmem:[#allocation35_spill] sm:$0xff]  ;;  %v8665_v38 = vld [vmem:[#allocation30_spill] sm:$0xff] }
 0x5b4   :  { %v7659_v50 = vadd.f32 %v2427_v45, %v2426_v63  ;;  %v2424_v45 = vadd.f32 1.0, %v5347_v55  ;;  %v8666_v63 = vld [vmem:[#allocation41_spill] sm:$0xff]  ;;  %v8671_v55 = vld [vmem:[#allocation103_spill] sm:$0xff] }
 0x5b5   :  { %4610 = vmatpush1.bf16.msra.mxu0 %v8658_v35  ;;  %4674 = vmatpush1.bf16.msra.mxu1 %v8659_v30  ;;  %v8667_v35 = vld [vmem:[#allocation34_spill] sm:$0xff] }
 0x5b6   :  { %8657 = vst [vmem:[#allocation38_spill] sm:$0xff] %v7659_v50  ;;  %5348 = vtanh.f32 %v7659_v50  ;;  %4612 = vmatprep.subr.bf16.mxu0 %v8660_v59  ;;  %4676 = vmatprep.subr.bf16.mxu1 %v8661_v60  ;;  %v8668_v30 = vld [vmem:[#allocation98_spill] sm:$0xff]  ;;  %v2425_v59 = vmul.f32 0.5, %v2424_v45  ;;  %v8675_v45 = vld [vmem:[#allocation101_spill] sm:$0xff] }
 0x5b7   :  { %v8669_v50 = vld [vmem:[#allocation102_spill] sm:$0xff] }
 0x5b9   :  { %4614 = vmatpush1.bf16.msra.mxu0 %v8662_v36  ;;  %4678 = vmatpush1.bf16.msra.mxu1 %v8663_v32 }
 0x5ba   :  { %4616 = vmatprep.subr.bf16.mxu0 %v8664_v47  ;;  %4680 = vmatprep.subr.bf16.mxu1 %v8665_v38  ;;  %v8670_v47 = vld [vmem:[#allocation99_spill] sm:$0xff]  ;;  %v8703_v38 = vld [vmem:[#allocation93_spill] sm:$0xff] }
 0x5bd   :  { %4618 = vmatpush1.bf16.msra.mxu0 %v8666_v63  ;;  %4682 = vmatpush1.bf16.msra.mxu1 %v8667_v35  ;;  %v8672_v63 = vld [vmem:[#allocation100_spill] sm:$0xff]  ;;  %v8673_v35 = vld [vmem:[#allocation105_spill] sm:$0xff] }
 0x5be   :  { %4684 = vmatprep.subr.bf16.mxu0 %v8668_v30  ;;  %4716 = vmatprep.subr.bf16.mxu1 %v8669_v50  ;;  %v8674_v30 = vmov 0.0   ;;  %v8684_v50 = vld [vmem:[#allocation114_spill] sm:$0xff] }
 0x5c0   :  { %v5349_v60 = vpop.eup %5348 }
 0x5c1   :  { %v2430_v54 = vmul.f32 %v5349_v60, %v2425_v59  ;;  %v8676_v59 = vld [vmem:[#allocation106_spill] sm:$0xff]  ;;  %v8678_v60 = vld [vmem:[#allocation109_spill] sm:$0xff] }
 0x5c3   :  { %2663 = vmatprep.mubr.f32.mxu0 %v2430_v54  ;;  %2734 = vmatprep.mubr.f32.mxu1 %v2430_v54  ;;  %v8677_v54 = vld [vmem:[#allocation104_spill] sm:$0xff] }
 0x5c4   :  { %2664 = vmatmul.mubr.f32.vlgmr.msra.gmra.mrb[24].mxu0 %v7598_v52  ;;  %2735 = vmatmul.mubr.f32.vlgmr.msra.gmra.mrb[24].mxu1 %v7598_v52  ;;  %v8679_v52 = vld [vmem:[#allocation107_spill] sm:$0xff] }
 0x5c5   :  { %4686 = vmatpush1.bf16.msra.mxu0 %v8670_v47  ;;  %4718 = vmatpush1.bf16.msra.mxu1 %v8671_v55  ;;  %v8680_v47 = vld [vmem:[#allocation110_spill] sm:$0xff]  ;;  %v8681_v55 = vld [vmem:[#allocation108_spill] sm:$0xff] }
 0x5c6   :  { %4688 = vmatprep.subr.bf16.mxu0 %v8672_v63  ;;  %4720 = vmatprep.subr.bf16.mxu1 %v8673_v35  ;;  %v8682_v63 = vld [vmem:[#allocation112_spill] sm:$0xff]  ;;  %v8683_v35 = vld [vmem:[#allocation111_spill] sm:$0xff] }
 0x5c7   :  { %2827 = vmatprep.mubr.f32.mxu0 %v8674_v30  ;;  %2898 = vmatprep.mubr.f32.mxu1 %v8674_v30  ;;  %v8685_v30 = vld [vmem:[#allocation113_spill] sm:$0xff] }
 0x5c9   :  { %4690 = vmatpush1.bf16.msra.mxu0 %v8675_v45  ;;  %4722 = vmatpush1.bf16.msra.mxu1 %v8676_v59  ;;  %v8686_v45 = vld [vmem:[#allocation116_spill] sm:$0xff]  ;;  %v8687_v59 = vld [vmem:[#allocation115_spill] sm:$0xff] }
 0x5ca   :  { %4692 = vmatprep.subr.bf16.mxu0 %v8677_v54  ;;  %4724 = vmatprep.subr.bf16.mxu1 %v8678_v60  ;;  %v8688_v54 = vld [vmem:[#allocation118_spill] sm:$0xff]  ;;  %v8689_v60 = vld [vmem:[#allocation117_spill] sm:$0xff] }
 0x5cd   :  { %4694 = vmatpush1.bf16.msra.mxu0 %v8679_v52  ;;  %4726 = vmatpush1.bf16.msra.mxu1 %v8680_v47  ;;  %v8690_v52 = vld [vmem:[#allocation120_spill] sm:$0xff]  ;;  %v8691_v47 = vld [vmem:[#allocation119_spill] sm:$0xff] }
 0x5ce   :  { %4696 = vmatprep.subr.bf16.mxu0 %v8681_v55  ;;  %4728 = vmatprep.subr.bf16.mxu1 %v8682_v63  ;;  %v8692_v55 = vld [vmem:[#allocation122_spill] sm:$0xff]  ;;  %v8693_v63 = vld [vmem:[#allocation121_spill] sm:$0xff] }
 0x5d1   :  { %4698 = vmatpush1.bf16.msra.mxu0 %v8683_v35  ;;  %4730 = vmatpush1.bf16.msra.mxu1 %v8684_v50  ;;  %v8694_v35 = vld [vmem:[#allocation124_spill] sm:$0xff]  ;;  %v8695_v50 = vld [vmem:[#allocation123_spill] sm:$0xff] }
 0x5d2   :  { %4700 = vmatprep.subr.bf16.mxu0 %v8685_v30  ;;  %4732 = vmatprep.subr.bf16.mxu1 %v8686_v45  ;;  %v8696_v30 = vld [vmem:[#allocation126_spill] sm:$0xff]  ;;  %v8697_v45 = vld [vmem:[#allocation125_spill] sm:$0xff] }
 0x5d5   :  { %4702 = vmatpush1.bf16.msra.mxu0 %v8687_v59  ;;  %4734 = vmatpush1.bf16.msra.mxu1 %v8688_v54  ;;  %v8698_v59 = vld [vmem:[#allocation128_spill] sm:$0xff]  ;;  %v8699_v54 = vld [vmem:[#allocation127_spill] sm:$0xff] }
 0x5d6   :  { %4704 = vmatprep.subr.bf16.mxu0 %v8689_v60  ;;  %4736 = vmatprep.subr.bf16.mxu1 %v8690_v52  ;;  %v8700_v60 = vld [vmem:[#allocation130_spill] sm:$0xff]  ;;  %v8701_v52 = vld [vmem:[#allocation129_spill] sm:$0xff] }
 0x5d9   :  { %4706 = vmatpush1.bf16.msra.mxu0 %v8691_v47  ;;  %4738 = vmatpush1.bf16.msra.mxu1 %v8692_v55  ;;  %v8702_v47 = vld [vmem:[#allocation131_spill] sm:$0xff] }
 0x5da   :  { %4708 = vmatprep.subr.bf16.mxu0 %v8693_v63  ;;  %4740 = vmatprep.subr.bf16.mxu1 %v8694_v35 }
 0x5dd   :  { %4710 = vmatpush1.bf16.msra.mxu0 %v8695_v50  ;;  %4742 = vmatpush1.bf16.msra.mxu1 %v8696_v30 }
 0x5de   :  { %4712 = vmatprep.subr.bf16.mxu0 %v8697_v45  ;;  %4744 = vmatprep.subr.bf16.mxu1 %v8698_v59 }
 0x5e1   :  { %4714 = vmatpush1.bf16.msra.mxu0 %v8699_v54  ;;  %4746 = vmatpush1.bf16.msra.mxu1 %v8700_v60 }
 0x5e2   :  { %4748 = vmatprep.subr.bf16.mxu0 %v8701_v52  ;;  %4812 = vmatprep.subr.bf16.mxu1 %v8702_v47 }
 0x653   :  { %v2501_v55 = vpop.f32.mrb[10].mxu0  ;;  %v2572_v63 = vpop.f32.mrb[10].mxu1 }
 0x654   :  { %v5205_v35 = vadd.f32 %v2501_v55, %v8703_v38  ;;  %v2503_v32 = vpop.f32.mrb[11].mxu0  ;;  %v2574_v50 = vpop.f32.mrb[11].mxu1  ;;  %v5221_v59 = vadd.f32 %v2572_v63, %v8451_v61 }
 0x655   :  { %v5206_v30 = vadd.f32 %v2503_v32, %v8517_v39  ;;  %v5222_v60 = vadd.f32 %v2574_v50, %v8452_v42 }
 0x656   :  { %v2581_v36 = vmul.f32 0.5, %v5205_v35 }
 0x657   :  { %v2585_v45 = vmul.f32 0.5, %v5206_v30  ;;  %v2590_v52 = vmul.f32 0.5, %v5222_v60  ;;  %v8704_v60 = vld [vmem:[#allocation15_spill] sm:$0xff] }
 0x658   :  { %5350 = vtanh.f32 %v2581_v36 }
 0x659   :  { %5352 = vtanh.f32 %v2585_v45 }
 0x65a   :  { %5354 = vtanh.f32 %v5221_v59 }
 0x65b   :  { %5356 = vtanh.f32 %v2590_v52  ;;  %v8705_v52 = vld [vmem:[#allocation43_spill] sm:$0xff] }
 0x662   :  { %v5351_v54 = vpop.eup %5350 }
 0x663   :  { %v5353_v47 = vpop.eup %5352  ;;  %v2583_v20 = vadd.f32 1.0, %v5351_v54 }
 0x664   :  { %v2587_v27 = vadd.f32 1.0, %v5353_v47  ;;  %v5355_v38 = vpop.eup %5354 }
 0x665   :  { %v2584_v55 = vmul.f32 0.5, %v2583_v20  ;;  %v5357_v36 = vpop.eup %5356 }
 0x666   :  { %v2588_v41 = vmul.f32 0.5, %v2587_v27  ;;  %v2592_v32 = vadd.f32 1.0, %v5357_v36  ;;  %v8707_v36 = vld [vmem:[#allocation21_spill] sm:$0xff] }
 0x667   :  { %v2595_v58 = vmul.f32 %v5355_v38, %v2584_v55 }
 0x668   :  { %v2594_v35 = vmul.f32 %v2588_v41, %v7595_v51  ;;  %v2593_v63 = vmul.f32 0.5, %v2592_v32  ;;  %v8708_v32 = vld [vmem:[#allocation19_spill] sm:$0xff] }
 0x66a   :  { %v7715_v30 = vadd.f32 %v2595_v58, %v2594_v35  ;;  %v8706_v35 = vld [vmem:[#allocation16_spill] sm:$0xff] }
 0x66c   :  { %5358 = vtanh.f32 %v7715_v30 }
 0x676   :  { %v5359_v50 = vpop.eup %5358 }
 0x677   :  { %v7718_v45 = vmul.f32 %v5359_v50, %v2593_v63  ;;  %v8709_v63 = vld [vmem:[#allocation14_spill] sm:$0xff] }
 0x679   :  { %2828 = vmatmul.mubr.f32.vlgmr.msra.gmra.mrb[12].mxu0 %v7718_v45  ;;  %2899 = vmatmul.mubr.f32.vlgmr.msra.gmra.mrb[12].mxu1 %v7718_v45 }
 0x67a   :  { %4750 = vmatpush1.bf16.msra.mxu0 %v6854_v46  ;;  %4814 = vmatpush1.bf16.msra.mxu1 %v6870_v0 }
 0x67b   :  { %4752 = vmatprep.subr.bf16.mxu0 %v6864_v1  ;;  %4816 = vmatprep.subr.bf16.mxu1 %v6880_v4 }
 0x67e   :  { %4754 = vmatpush1.bf16.msra.mxu0 %v6875_v3  ;;  %4818 = vmatpush1.bf16.msra.mxu1 %v6892_v2 }
 0x67f   :  { %4756 = vmatprep.subr.bf16.mxu0 %v6885_v5  ;;  %4820 = vmatprep.subr.bf16.mxu1 %v6903_v7 }
 0x682   :  { %4758 = vmatpush1.bf16.msra.mxu0 %v6898_v6  ;;  %4822 = vmatpush1.bf16.msra.mxu1 %v6913_v9 }
 0x683   :  { %4760 = vmatprep.subr.bf16.mxu0 %v6908_v8  ;;  %4824 = vmatprep.subr.bf16.mxu1 %v6923_v11 }
 0x686   :  { %4762 = vmatpush1.bf16.msra.mxu0 %v6918_v10  ;;  %4826 = vmatpush1.bf16.msra.mxu1 %v6933_v13 }
 0x687   :  { %4764 = vmatprep.subr.bf16.mxu0 %v6928_v12  ;;  %4828 = vmatprep.subr.bf16.mxu1 %v6943_v15 }
 0x68a   :  { %4766 = vmatpush1.bf16.msra.mxu0 %v6938_v14  ;;  %4830 = vmatpush1.bf16.msra.mxu1 %v6953_v17 }
 0x68b   :  { %4768 = vmatprep.subr.bf16.mxu0 %v6948_v16  ;;  %4832 = vmatprep.subr.bf16.mxu1 %v6963_v22 }
 0x68e   :  { %4770 = vmatpush1.bf16.msra.mxu0 %v6958_v19  ;;  %4834 = vmatpush1.bf16.msra.mxu1 %v6973_v28 }
 0x68f   :  { %4772 = vmatprep.subr.bf16.mxu0 %v6968_v25  ;;  %4836 = vmatprep.subr.bf16.mxu1 %v6983_v34 }
 0x692   :  { %4774 = vmatpush1.bf16.msra.mxu0 %v6978_v31  ;;  %4838 = vmatpush1.bf16.msra.mxu1 %v6993_v40 }
 0x693   :  { %4776 = vmatprep.subr.bf16.mxu0 %v6988_v37  ;;  %4840 = vmatprep.subr.bf16.mxu1 %v7003_v49 }
 0x696   :  { %4778 = vmatpush1.bf16.msra.mxu0 %v6998_v48  ;;  %4842 = vmatpush1.bf16.msra.mxu1 %v7013_v26 }
 0x697   :  { %v2665_v51 = vpop.f32.mrb[24].mxu0  ;;  %v2736_v27 = vpop.f32.mrb[24].mxu1  ;;  %4780 = vmatprep.subr.bf16.mxu0 %v7008_v21  ;;  %4844 = vmatprep.subr.bf16.mxu1 %v8518_v53 }
 0x698   :  { %v2666_v20 = vadd.f32 %v2665_v51, %v7253_v57  ;;  %v2667_v38 = vpop.f32.mrb[25].mxu0  ;;  %v2738_v58 = vpop.f32.mrb[25].mxu1  ;;  %v2737_v54 = vadd.f32 %v2736_v27, %v8519_v56  ;;  %v8710_v27 = vld [vmem:[#allocation25_spill] sm:$0xff] }
 0x699   :  { %v2668_v41 = vadd.f32 %v2667_v38, %v7257_v23  ;;  %v2739_v55 = vadd.f32 %v2738_v58, %v8705_v52  ;;  %v8716_v52 = vld [vmem:[#allocation27_spill] sm:$0xff] }
 0x69a   :  { %v2741_v47 = vmul.f32 0.5, %v2666_v20  ;;  %4782 = vmatpush1.bf16.msra.mxu0 %v8520_v18  ;;  %4846 = vmatpush1.bf16.msra.mxu1 %v8580_v29  ;;  %v8711_v20 = vld [vmem:[#allocation20_spill] sm:$0xff] }
 0x69b   :  { %v2745_v59 = vmul.f32 0.5, %v2668_v41  ;;  %4784 = vmatprep.subr.bf16.mxu0 %v8581_v44  ;;  %4848 = vmatprep.subr.bf16.mxu1 %v8582_v24  ;;  %v2750_v50 = vmul.f32 0.5, %v2739_v55 }
 0x69c   :  { %5360 = vtanh.f32 %v2741_v47  ;;  %v8712_v47 = vld [vmem:[#allocation18_spill] sm:$0xff] }
 0x69d   :  { %5362 = vtanh.f32 %v2745_v59  ;;  %v8713_v59 = vld [vmem:[#allocation23_spill] sm:$0xff] }
 0x69e   :  { %4786 = vmatpush1.bf16.msra.mxu0 %v8584_v43  ;;  %4850 = vmatpush1.bf16.msra.mxu1 %v8526_v33  ;;  %5364 = vtanh.f32 %v2737_v54 }
 0x69f   :  { %4788 = vmatprep.subr.bf16.mxu0 %v8642_v62  ;;  %4852 = vmatprep.subr.bf16.mxu1 %v8704_v60  ;;  %5366 = vtanh.f32 %v2750_v50  ;;  %v8722_v50 = vld [vmem:[#allocation26_spill] sm:$0xff] }
 0x6a2   :  { %4790 = vmatpush1.bf16.msra.mxu0 %v8706_v35  ;;  %4854 = vmatpush1.bf16.msra.mxu1 %v8707_v36 }
 0x6a3   :  { %4792 = vmatprep.subr.bf16.mxu0 %v8708_v32  ;;  %4856 = vmatprep.subr.bf16.mxu1 %v8709_v63  ;;  %v8714_v32 = vld [vmem:[#allocation24_spill] sm:$0xff]  ;;  %v8715_v63 = vld [vmem:[#allocation29_spill] sm:$0xff] }
 0x6a6   :  { %v5361_v51 = vpop.eup %5360  ;;  %4794 = vmatpush1.bf16.msra.mxu0 %v8710_v27  ;;  %4858 = vmatpush1.bf16.msra.mxu1 %v8711_v20  ;;  %v8717_v27 = vld [vmem:[#allocation22_spill] sm:$0xff] }
 0x6a7   :  { %v5363_v38 = vpop.eup %5362  ;;  %v2743_v41 = vadd.f32 1.0, %v5361_v51  ;;  %4796 = vmatprep.subr.bf16.mxu0 %v8712_v47  ;;  %4860 = vmatprep.subr.bf16.mxu1 %v8713_v59  ;;  %v8718_v20 = vld [vmem:[#allocation38_spill] sm:$0xff]  ;;  %v8720_v47 = vld [vmem:[#allocation33_spill] sm:$0xff] }
 0x6a8   :  { %v2747_v58 = vadd.f32 1.0, %v5363_v38  ;;  %v5365_v36 = vpop.eup %5364  ;;  %v8721_v38 = vld [vmem:[#allocation28_spill] sm:$0xff] }
 0x6a9   :  { %v2744_v54 = vmul.f32 0.5, %v2743_v41  ;;  %v8723_v41 = vld [vmem:[#allocation31_spill] sm:$0xff] }
 0x6aa   :  { %v2748_v35 = vmul.f32 0.5, %v2747_v58  ;;  %4798 = vmatpush1.bf16.msra.mxu0 %v8714_v32  ;;  %4862 = vmatpush1.bf16.msra.mxu1 %v8715_v63  ;;  %v5367_v58 = vpop.eup %5366 }
 0x6ab   :  { %v2755_v55 = vmul.f32 %v5365_v36, %v2744_v54  ;;  %4800 = vmatprep.subr.bf16.mxu0 %v8716_v52  ;;  %4864 = vmatprep.subr.bf16.mxu1 %v8717_v27  ;;  %v8724_v36 = vld [vmem:[#allocation32_spill] sm:$0xff]  ;;  %v8725_v54 = vld [vmem:[#allocation37_spill] sm:$0xff]  ;;  %v8726_v27 = vld [vmem:[#allocation35_spill] sm:$0xff] }
 0x6ac   :  { %v2754_v51 = vmul.f32 %v2748_v35, %v8718_v20  ;;  %v8727_v35 = vld [vmem:[#allocation30_spill] sm:$0xff]  ;;  %v2752_v20 = vadd.f32 1.0, %v5367_v58  ;;  %v8733_v58 = vld [vmem:[#allocation103_spill] sm:$0xff] }
 0x6ae   :  { %v7779_v60 = vadd.f32 %v2755_v55, %v2754_v51  ;;  %4802 = vmatpush1.bf16.msra.mxu0 %v8720_v47  ;;  %4866 = vmatpush1.bf16.msra.mxu1 %v8721_v38  ;;  %v8728_v55 = vld [vmem:[#allocation41_spill] sm:$0xff]  ;;  %v8729_v51 = vld [vmem:[#allocation34_spill] sm:$0xff] }
 0x6af   :  { %4804 = vmatprep.subr.bf16.mxu0 %v8722_v50  ;;  %4868 = vmatprep.subr.bf16.mxu1 %v8723_v41  ;;  %v8730_v38 = vld [vmem:[#allocation98_spill] sm:$0xff]  ;;  %v2753_v41 = vmul.f32 0.5, %v2752_v20  ;;  %v8743_v20 = vld [vmem:[#allocation108_spill] sm:$0xff] }
 0x6b0   :  { %8719 = vst [vmem:[#allocation42_spill] sm:$0xff] %v7779_v60  ;;  %5368 = vtanh.f32 %v7779_v60  ;;  %v8731_v50 = vld [vmem:[#allocation102_spill] sm:$0xff] }
 0x6b2   :  { %4806 = vmatpush1.bf16.msra.mxu0 %v8724_v36  ;;  %4870 = vmatpush1.bf16.msra.mxu1 %v8725_v54 }
 0x6b3   :  { %4808 = vmatprep.subr.bf16.mxu0 %v8726_v27  ;;  %4872 = vmatprep.subr.bf16.mxu1 %v8727_v35  ;;  %v8732_v27 = vld [vmem:[#allocation99_spill] sm:$0xff]  ;;  %v8765_v35 = vld [vmem:[#allocation93_spill] sm:$0xff] }
 0x6b6   :  { %4810 = vmatpush1.bf16.msra.mxu0 %v8728_v55  ;;  %4874 = vmatpush1.bf16.msra.mxu1 %v8729_v51  ;;  %v8734_v55 = vld [vmem:[#allocation100_spill] sm:$0xff]  ;;  %v8735_v51 = vld [vmem:[#allocation105_spill] sm:$0xff] }
 0x6b7   :  { %4876 = vmatprep.subr.bf16.mxu0 %v8730_v38  ;;  %4908 = vmatprep.subr.bf16.mxu1 %v8731_v50  ;;  %v8736_v38 = vmov 0.0   ;;  %v8737_v50 = vld [vmem:[#allocation101_spill] sm:$0xff] }
 0x6ba   :  { %v5369_v47 = vpop.eup %5368 }
 0x6bb   :  { %v2758_v60 = vmul.f32 %v5369_v47, %v2753_v41  ;;  %v8738_v47 = vld [vmem:[#allocation106_spill] sm:$0xff]  ;;  %v8740_v41 = vld [vmem:[#allocation109_spill] sm:$0xff] }
 0x6bd   :  { %2991 = vmatprep.mubr.f32.mxu0 %v2758_v60  ;;  %3062 = vmatprep.mubr.f32.mxu1 %v2758_v60  ;;  %v8739_v60 = vld [vmem:[#allocation104_spill] sm:$0xff] }
 0x6be   :  { %2992 = vmatmul.mubr.f32.vlgmr.msra.gmra.mrb[26].mxu0 %v7718_v45  ;;  %3063 = vmatmul.mubr.f32.vlgmr.msra.gmra.mrb[26].mxu1 %v7718_v45  ;;  %v8741_v45 = vld [vmem:[#allocation107_spill] sm:$0xff] }
 0x6bf   :  { %4878 = vmatpush1.bf16.msra.mxu0 %v8732_v27  ;;  %4910 = vmatpush1.bf16.msra.mxu1 %v8733_v58  ;;  %v8742_v27 = vld [vmem:[#allocation110_spill] sm:$0xff] }
 0x6c0   :  { %4880 = vmatprep.subr.bf16.mxu0 %v8734_v55  ;;  %4912 = vmatprep.subr.bf16.mxu1 %v8735_v51  ;;  %v8744_v55 = vld [vmem:[#allocation112_spill] sm:$0xff]  ;;  %v8745_v51 = vld [vmem:[#allocation111_spill] sm:$0xff]  ;;  %v8746_v58 = vld [vmem:[#allocation114_spill] sm:$0xff] }
 0x6c1   :  { %3155 = vmatprep.mubr.f32.mxu0 %v8736_v38  ;;  %3226 = vmatprep.mubr.f32.mxu1 %v8736_v38  ;;  %v8747_v38 = vld [vmem:[#allocation113_spill] sm:$0xff] }
 0x6c3   :  { %4882 = vmatpush1.bf16.msra.mxu0 %v8737_v50  ;;  %4914 = vmatpush1.bf16.msra.mxu1 %v8738_v47  ;;  %v8748_v50 = vld [vmem:[#allocation116_spill] sm:$0xff]  ;;  %v8749_v47 = vld [vmem:[#allocation115_spill] sm:$0xff] }
 0x6c4   :  { %4884 = vmatprep.subr.bf16.mxu0 %v8739_v60  ;;  %4916 = vmatprep.subr.bf16.mxu1 %v8740_v41  ;;  %v8750_v60 = vld [vmem:[#allocation118_spill] sm:$0xff]  ;;  %v8751_v41 = vld [vmem:[#allocation117_spill] sm:$0xff] }
 0x6c7   :  { %4886 = vmatpush1.bf16.msra.mxu0 %v8741_v45  ;;  %4918 = vmatpush1.bf16.msra.mxu1 %v8742_v27  ;;  %v8752_v45 = vld [vmem:[#allocation120_spill] sm:$0xff]  ;;  %v8753_v27 = vld [vmem:[#allocation119_spill] sm:$0xff] }
 0x6c8   :  { %4888 = vmatprep.subr.bf16.mxu0 %v8743_v20  ;;  %4920 = vmatprep.subr.bf16.mxu1 %v8744_v55  ;;  %v8754_v20 = vld [vmem:[#allocation122_spill] sm:$0xff]  ;;  %v8755_v55 = vld [vmem:[#allocation121_spill] sm:$0xff] }
 0x6cb   :  { %4890 = vmatpush1.bf16.msra.mxu0 %v8745_v51  ;;  %4922 = vmatpush1.bf16.msra.mxu1 %v8746_v58  ;;  %v8756_v51 = vld [vmem:[#allocation124_spill] sm:$0xff]  ;;  %v8757_v58 = vld [vmem:[#allocation123_spill] sm:$0xff] }
 0x6cc   :  { %4892 = vmatprep.subr.bf16.mxu0 %v8747_v38  ;;  %4924 = vmatprep.subr.bf16.mxu1 %v8748_v50  ;;  %v8758_v38 = vld [vmem:[#allocation126_spill] sm:$0xff]  ;;  %v8759_v50 = vld [vmem:[#allocation125_spill] sm:$0xff] }
 0x6cf   :  { %4894 = vmatpush1.bf16.msra.mxu0 %v8749_v47  ;;  %4926 = vmatpush1.bf16.msra.mxu1 %v8750_v60  ;;  %v8760_v47 = vld [vmem:[#allocation128_spill] sm:$0xff]  ;;  %v8761_v60 = vld [vmem:[#allocation127_spill] sm:$0xff] }
 0x6d0   :  { %4896 = vmatprep.subr.bf16.mxu0 %v8751_v41  ;;  %4928 = vmatprep.subr.bf16.mxu1 %v8752_v45  ;;  %v8762_v41 = vld [vmem:[#allocation130_spill] sm:$0xff]  ;;  %v8763_v45 = vld [vmem:[#allocation129_spill] sm:$0xff] }
 0x6d3   :  { %4898 = vmatpush1.bf16.msra.mxu0 %v8753_v27  ;;  %4930 = vmatpush1.bf16.msra.mxu1 %v8754_v20  ;;  %v8764_v27 = vld [vmem:[#allocation131_spill] sm:$0xff] }
 0x6d4   :  { %4900 = vmatprep.subr.bf16.mxu0 %v8755_v55  ;;  %4932 = vmatprep.subr.bf16.mxu1 %v8756_v51 }
 0x6d7   :  { %4902 = vmatpush1.bf16.msra.mxu0 %v8757_v58  ;;  %4934 = vmatpush1.bf16.msra.mxu1 %v8758_v38 }
 0x6d8   :  { %4904 = vmatprep.subr.bf16.mxu0 %v8759_v50  ;;  %4936 = vmatprep.subr.bf16.mxu1 %v8760_v47 }
 0x6db   :  { %4906 = vmatpush1.bf16.msra.mxu0 %v8761_v60  ;;  %4938 = vmatpush1.bf16.msra.mxu1 %v8762_v41 }
 0x6dc   :  { %4940 = vmatprep.subr.bf16.mxu0 %v8763_v45  ;;  %5004 = vmatprep.subr.bf16.mxu1 %v8764_v27 }
 0x74c   :  { %v2829_v20 = vpop.f32.mrb[12].mxu0  ;;  %v2900_v55 = vpop.f32.mrb[12].mxu1 }
 0x74d   :  { %v5207_v51 = vadd.f32 %v2829_v20, %v8765_v35  ;;  %v2831_v54 = vpop.f32.mrb[13].mxu0  ;;  %v2902_v58 = vpop.f32.mrb[13].mxu1  ;;  %v5223_v47 = vadd.f32 %v2900_v55, %v8451_v61  ;;  %v8781_v61 = vld [vmem:[#allocation42_spill] sm:$0xff] }
 0x74e   :  { %v5208_v38 = vadd.f32 %v2831_v54, %v8517_v39  ;;  %v5224_v60 = vadd.f32 %v2902_v58, %v8452_v42 }
 0x74f   :  { %v2909_v36 = vmul.f32 0.5, %v5207_v51 }
 0x750   :  { %v2913_v50 = vmul.f32 0.5, %v5208_v38  ;;  %v2918_v41 = vmul.f32 0.5, %v5224_v60  ;;  %v8767_v60 = vld [vmem:[#allocation15_spill] sm:$0xff] }
 0x751   :  { %5370 = vtanh.f32 %v2909_v36 }
 0x752   :  { %5372 = vtanh.f32 %v2913_v50 }
 0x753   :  { %5374 = vtanh.f32 %v5223_v47 }
 0x754   :  { %5376 = vtanh.f32 %v2918_v41  ;;  %v8768_v41 = vld [vmem:[#allocation43_spill] sm:$0xff] }
 0x75b   :  { %v5371_v45 = vpop.eup %5370 }
 0x75c   :  { %v5373_v27 = vpop.eup %5372  ;;  %v2911_v52 = vadd.f32 1.0, %v5371_v45 }
 0x75d   :  { %v2915_v63 = vadd.f32 1.0, %v5373_v27  ;;  %v5375_v35 = vpop.eup %5374 }
 0x75e   :  { %v2912_v20 = vmul.f32 0.5, %v2911_v52  ;;  %v5377_v36 = vpop.eup %5376 }
 0x75f   :  { %v2916_v32 = vmul.f32 0.5, %v2915_v63  ;;  %v2920_v55 = vadd.f32 1.0, %v5377_v36  ;;  %v8770_v36 = vld [vmem:[#allocation21_spill] sm:$0xff] }
 0x760   :  { %v2923_v59 = vmul.f32 %v5375_v35, %v2912_v20 }
 0x761   :  { %v2922_v54 = vmul.f32 %v2916_v32, %v7715_v30  ;;  %v2921_v38 = vmul.f32 0.5, %v2920_v55  ;;  %v8771_v55 = vld [vmem:[#allocation19_spill] sm:$0xff] }
 0x763   :  { %v7835_v51 = vadd.f32 %v2923_v59, %v2922_v54  ;;  %v8769_v54 = vld [vmem:[#allocation16_spill] sm:$0xff] }
 0x765   :  { %8766 = vst [vmem:[#allocation44_spill] sm:$0xff] %v7835_v51  ;;  %5378 = vtanh.f32 %v7835_v51  ;;  %v8780_v51 = vld [vmem:[#allocation22_spill] sm:$0xff] }
 0x76f   :  { %v5379_v58 = vpop.eup %5378 }
 0x770   :  { %v7838_v50 = vmul.f32 %v5379_v58, %v2921_v38  ;;  %v8772_v38 = vld [vmem:[#allocation14_spill] sm:$0xff] }
 0x772   :  { %3156 = vmatmul.mubr.f32.vlgmr.msra.gmra.mrb[14].mxu0 %v7838_v50  ;;  %3227 = vmatmul.mubr.f32.vlgmr.msra.gmra.mrb[14].mxu1 %v7838_v50 }
 0x773   :  { %4942 = vmatpush1.bf16.msra.mxu0 %v6854_v46  ;;  %5006 = vmatpush1.bf16.msra.mxu1 %v6870_v0 }
 0x774   :  { %4944 = vmatprep.subr.bf16.mxu0 %v6864_v1  ;;  %5008 = vmatprep.subr.bf16.mxu1 %v6880_v4 }
 0x777   :  { %4946 = vmatpush1.bf16.msra.mxu0 %v6875_v3  ;;  %5010 = vmatpush1.bf16.msra.mxu1 %v6892_v2 }
 0x778   :  { %4948 = vmatprep.subr.bf16.mxu0 %v6885_v5  ;;  %5012 = vmatprep.subr.bf16.mxu1 %v6903_v7 }
 0x77b   :  { %4950 = vmatpush1.bf16.msra.mxu0 %v6898_v6  ;;  %5014 = vmatpush1.bf16.msra.mxu1 %v6913_v9 }
 0x77c   :  { %4952 = vmatprep.subr.bf16.mxu0 %v6908_v8  ;;  %5016 = vmatprep.subr.bf16.mxu1 %v6923_v11 }
 0x77f   :  { %4954 = vmatpush1.bf16.msra.mxu0 %v6918_v10  ;;  %5018 = vmatpush1.bf16.msra.mxu1 %v6933_v13 }
 0x780   :  { %4956 = vmatprep.subr.bf16.mxu0 %v6928_v12  ;;  %5020 = vmatprep.subr.bf16.mxu1 %v6943_v15 }
 0x783   :  { %4958 = vmatpush1.bf16.msra.mxu0 %v6938_v14  ;;  %5022 = vmatpush1.bf16.msra.mxu1 %v6953_v17 }
 0x784   :  { %4960 = vmatprep.subr.bf16.mxu0 %v6948_v16  ;;  %5024 = vmatprep.subr.bf16.mxu1 %v6963_v22 }
 0x787   :  { %4962 = vmatpush1.bf16.msra.mxu0 %v6958_v19  ;;  %5026 = vmatpush1.bf16.msra.mxu1 %v6973_v28 }
 0x788   :  { %4964 = vmatprep.subr.bf16.mxu0 %v6968_v25  ;;  %5028 = vmatprep.subr.bf16.mxu1 %v6983_v34 }
 0x78b   :  { %4966 = vmatpush1.bf16.msra.mxu0 %v6978_v31  ;;  %5030 = vmatpush1.bf16.msra.mxu1 %v6993_v40 }
 0x78c   :  { %4968 = vmatprep.subr.bf16.mxu0 %v6988_v37  ;;  %5032 = vmatprep.subr.bf16.mxu1 %v7003_v49 }
 0x78f   :  { %4970 = vmatpush1.bf16.msra.mxu0 %v6998_v48  ;;  %5034 = vmatpush1.bf16.msra.mxu1 %v7013_v26 }
 0x790   :  { %4972 = vmatprep.subr.bf16.mxu0 %v7008_v21  ;;  %5036 = vmatprep.subr.bf16.mxu1 %v8518_v53 }
 0x791   :  { %v2993_v30 = vpop.f32.mrb[26].mxu0  ;;  %v3064_v52 = vpop.f32.mrb[26].mxu1 }
 0x792   :  { %v2994_v32 = vadd.f32 %v2993_v30, %v7253_v57  ;;  %v2995_v63 = vpop.f32.mrb[27].mxu0  ;;  %v3066_v59 = vpop.f32.mrb[27].mxu1  ;;  %v3065_v47 = vadd.f32 %v3064_v52, %v8519_v56  ;;  %v8773_v30 = vld [vmem:[#allocation25_spill] sm:$0xff]  ;;  %v8774_v52 = vld [vmem:[#allocation20_spill] sm:$0xff]  ;;  %v8779_v57 = vld [vmem:[#allocation27_spill] sm:$0xff] }
 0x793   :  { %v2996_v35 = vadd.f32 %v2995_v63, %v7257_v23  ;;  %4974 = vmatpush1.bf16.msra.mxu0 %v8520_v18  ;;  %5038 = vmatpush1.bf16.msra.mxu1 %v8580_v29  ;;  %v3067_v20 = vadd.f32 %v3066_v59, %v8768_v41  ;;  %v8775_v63 = vld [vmem:[#allocation18_spill] sm:$0xff]  ;;  %v8777_v41 = vld [vmem:[#allocation24_spill] sm:$0xff]  ;;  %v8778_v56 = vld [vmem:[#allocation29_spill] sm:$0xff] }
 0x794   :  { %v3069_v45 = vmul.f32 0.5, %v2994_v32  ;;  %4976 = vmatprep.subr.bf16.mxu0 %v8581_v44  ;;  %5040 = vmatprep.subr.bf16.mxu1 %v8582_v24 }
 0x795   :  { %v3073_v27 = vmul.f32 0.5, %v2996_v35  ;;  %v3078_v58 = vmul.f32 0.5, %v3067_v20  ;;  %v8776_v35 = vld [vmem:[#allocation23_spill] sm:$0xff] }
 0x796   :  { %5380 = vtanh.f32 %v3069_v45 }
 0x797   :  { %5382 = vtanh.f32 %v3073_v27  ;;  %4978 = vmatpush1.bf16.msra.mxu0 %v8584_v43  ;;  %5042 = vmatpush1.bf16.msra.mxu1 %v8526_v33 }
 0x798   :  { %4980 = vmatprep.subr.bf16.mxu0 %v8642_v62  ;;  %5044 = vmatprep.subr.bf16.mxu1 %v8767_v60  ;;  %5384 = vtanh.f32 %v3065_v47 }
 0x799   :  { %5386 = vtanh.f32 %v3078_v58  ;;  %v8785_v58 = vld [vmem:[#allocation26_spill] sm:$0xff] }
 0x79b   :  { %4982 = vmatpush1.bf16.msra.mxu0 %v8769_v54  ;;  %5046 = vmatpush1.bf16.msra.mxu1 %v8770_v36 }
 0x79c   :  { %4984 = vmatprep.subr.bf16.mxu0 %v8771_v55  ;;  %5048 = vmatprep.subr.bf16.mxu1 %v8772_v38 }
 0x79f   :  { %4986 = vmatpush1.bf16.msra.mxu0 %v8773_v30  ;;  %5050 = vmatpush1.bf16.msra.mxu1 %v8774_v52 }
 0x7a0   :  { %v5381_v32 = vpop.eup %5380  ;;  %4988 = vmatprep.subr.bf16.mxu0 %v8775_v63  ;;  %5052 = vmatprep.subr.bf16.mxu1 %v8776_v35  ;;  %v8782_v63 = vld [vmem:[#allocation33_spill] sm:$0xff]  ;;  %v8783_v35 = vld [vmem:[#allocation28_spill] sm:$0xff] }
 0x7a1   :  { %v5383_v45 = vpop.eup %5382  ;;  %v3071_v59 = vadd.f32 1.0, %v5381_v32 }
 0x7a2   :  { %v3075_v27 = vadd.f32 1.0, %v5383_v45  ;;  %v5385_v23 = vpop.eup %5384  ;;  %v8786_v45 = vld [vmem:[#allocation31_spill] sm:$0xff] }
 0x7a3   :  { %v3072_v47 = vmul.f32 0.5, %v3071_v59  ;;  %4990 = vmatpush1.bf16.msra.mxu0 %v8777_v41  ;;  %5054 = vmatpush1.bf16.msra.mxu1 %v8778_v56  ;;  %v8787_v59 = vld [vmem:[#allocation32_spill] sm:$0xff] }
 0x7a4   :  { %v3076_v20 = vmul.f32 0.5, %v3075_v27  ;;  %4992 = vmatprep.subr.bf16.mxu0 %v8779_v57  ;;  %5056 = vmatprep.subr.bf16.mxu1 %v8780_v51  ;;  %v8788_v27 = vld [vmem:[#allocation37_spill] sm:$0xff]  ;;  %v5387_v51 = vpop.eup %5386 }
 0x7a5   :  { %v3083_v42 = vmul.f32 %v5385_v23, %v3072_v47  ;;  %v8789_v23 = vld [vmem:[#allocation35_spill] sm:$0xff]  ;;  %v3080_v47 = vadd.f32 1.0, %v5387_v51 }
 0x7a6   :  { %v3082_v39 = vmul.f32 %v3076_v20, %v8781_v61  ;;  %v8790_v61 = vld [vmem:[#allocation30_spill] sm:$0xff]  ;;  %v8791_v20 = vld [vmem:[#allocation41_spill] sm:$0xff] }
 0x7a7   :  { %4994 = vmatpush1.bf16.msra.mxu0 %v8782_v63  ;;  %5058 = vmatpush1.bf16.msra.mxu1 %v8783_v35 }
 0x7a8   :  { %v7901_v32 = vadd.f32 %v3083_v42, %v3082_v39  ;;  %4996 = vmatprep.subr.bf16.mxu0 %v8785_v58  ;;  %5060 = vmatprep.subr.bf16.mxu1 %v8786_v45  ;;  %v8792_v42 = vld [vmem:[#allocation34_spill] sm:$0xff]  ;;  %v8793_v39 = vld [vmem:[#allocation129_spill] sm:$0xff]  ;;  %v8794_v58 = vld [vmem:[#allocation131_spill] sm:$0xff]  ;;  %v3081_v45 = vmul.f32 0.5, %v3080_v47 }
 0x7aa   :  { %8784 = vst [vmem:[#allocation48_spill] sm:$0xff] %v7901_v32  ;;  %5388 = vtanh.f32 %v7901_v32 }
 0x7ab   :  { %4998 = vmatpush1.bf16.msra.mxu0 %v8787_v59  ;;  %5062 = vmatpush1.bf16.msra.mxu1 %v8788_v27 }
 0x7ac   :  { %5000 = vmatprep.subr.bf16.mxu0 %v8789_v23  ;;  %5064 = vmatprep.subr.bf16.mxu1 %v8790_v61 }
 0x7af   :  { %5002 = vmatpush1.bf16.msra.mxu0 %v8791_v20  ;;  %5066 = vmatpush1.bf16.msra.mxu1 %v8792_v42 }
 0x7b0   :  { %5068 = vmatprep.subr.bf16.mxu0 %v8793_v39  ;;  %5132 = vmatprep.subr.bf16.mxu1 %v8794_v58 }
 0x7b1   :  { %v8810_v47 = vld [vmem:[#allocation48_spill] sm:$0xff] }
 0x7b4   :  { %v5389_v32 = vpop.eup %5388 }
 0x7b5   :  { %v3086_v35 = vmul.f32 %v5389_v32, %v3081_v45 }
 0x7b7   :  { %3319 = vmatprep.mubr.f32.mxu0 %v3086_v35  ;;  %3390 = vmatprep.mubr.f32.mxu1 %v3086_v35 }
 0x7b8   :  { %3320 = vmatmul.mubr.f32.vlgmr.msra.gmra.mrb[28].mxu0 %v7838_v50  ;;  %3391 = vmatmul.mubr.f32.vlgmr.msra.gmra.mrb[28].mxu1 %v7838_v50 }
 0x7b9   :  { %5070 = vmatpush1.bf16.msra.mxu0 %v6854_v46  ;;  %5134 = vmatpush1.bf16.msra.mxu1 %v6870_v0  ;;  %v8795_v46 = vld [vmem:[#allocation18_spill] sm:$0xff] }
 0x7ba   :  { %5072 = vmatprep.subr.bf16.mxu0 %v6864_v1  ;;  %5136 = vmatprep.subr.bf16.mxu1 %v6880_v4  ;;  %v8796_v1 = vld [vmem:[#allocation23_spill] sm:$0xff]  ;;  %v8797_v0 = vld [vmem:[#allocation22_spill] sm:$0xff] }
 0x7bb   :  { %v8799_v4 = vld [vmem:[#allocation26_spill] sm:$0xff] }
 0x7bd   :  { %5074 = vmatpush1.bf16.msra.mxu0 %v6875_v3  ;;  %5138 = vmatpush1.bf16.msra.mxu1 %v6892_v2  ;;  %v8798_v3 = vld [vmem:[#allocation28_spill] sm:$0xff] }
 0x7be   :  { %5076 = vmatprep.subr.bf16.mxu0 %v6885_v5  ;;  %5140 = vmatprep.subr.bf16.mxu1 %v6903_v7  ;;  %v8800_v5 = vld [vmem:[#allocation31_spill] sm:$0xff]  ;;  %v8801_v7 = vld [vmem:[#allocation93_spill] sm:$0xff] }
 0x7c1   :  { %5078 = vmatpush1.bf16.msra.mxu0 %v6898_v6  ;;  %5142 = vmatpush1.bf16.msra.mxu1 %v6913_v9 }
 0x7c2   :  { %5080 = vmatprep.subr.bf16.mxu0 %v6908_v8  ;;  %5144 = vmatprep.subr.bf16.mxu1 %v6923_v11  ;;  %v8802_v11 = vld [vmem:[#allocation94_spill] sm:$0xff] }
 0x7c5   :  { %5082 = vmatpush1.bf16.msra.mxu0 %v6918_v10  ;;  %5146 = vmatpush1.bf16.msra.mxu1 %v6933_v13 }
 0x7c6   :  { %5084 = vmatprep.subr.bf16.mxu0 %v6928_v12  ;;  %5148 = vmatprep.subr.bf16.mxu1 %v6943_v15  ;;  %v8803_v15 = vld [vmem:[#allocation95_spill] sm:$0xff] }
 0x7c9   :  { %5086 = vmatpush1.bf16.msra.mxu0 %v6938_v14  ;;  %5150 = vmatpush1.bf16.msra.mxu1 %v6953_v17  ;;  %v8804_v17 = vld [vmem:[#allocation96_spill] sm:$0xff] }
 0x7ca   :  { %5088 = vmatprep.subr.bf16.mxu0 %v6948_v16  ;;  %5152 = vmatprep.subr.bf16.mxu1 %v6963_v22 }
 0x7cd   :  { %5090 = vmatpush1.bf16.msra.mxu0 %v6958_v19  ;;  %5154 = vmatpush1.bf16.msra.mxu1 %v6973_v28 }
 0x7ce   :  { %5092 = vmatprep.subr.bf16.mxu0 %v6968_v25  ;;  %5156 = vmatprep.subr.bf16.mxu1 %v6983_v34 }
 0x7d1   :  { %5094 = vmatpush1.bf16.msra.mxu0 %v6978_v31  ;;  %5158 = vmatpush1.bf16.msra.mxu1 %v6993_v40 }
 0x7d2   :  { %5096 = vmatprep.subr.bf16.mxu0 %v6988_v37  ;;  %5160 = vmatprep.subr.bf16.mxu1 %v7003_v49 }
 0x7d5   :  { %5098 = vmatpush1.bf16.msra.mxu0 %v6998_v48  ;;  %5162 = vmatpush1.bf16.msra.mxu1 %v7013_v26 }
 0x7d6   :  { %5100 = vmatprep.subr.bf16.mxu0 %v7008_v21  ;;  %5164 = vmatprep.subr.bf16.mxu1 %v8518_v53  ;;  %v8805_v21 = vld [vmem:[#allocation44_spill] sm:$0xff] }
 0x7d9   :  { %5102 = vmatpush1.bf16.msra.mxu0 %v8520_v18  ;;  %5166 = vmatpush1.bf16.msra.mxu1 %v8580_v29 }
 0x7da   :  { %5104 = vmatprep.subr.bf16.mxu0 %v8581_v44  ;;  %5168 = vmatprep.subr.bf16.mxu1 %v8582_v24 }
 0x7dd   :  { %5106 = vmatpush1.bf16.msra.mxu0 %v8584_v43  ;;  %5170 = vmatpush1.bf16.msra.mxu1 %v8526_v33  ;;  %v8806_v43 = vld [vmem:[#allocation36_spill] sm:$0xff] }
 0x7de   :  { %5108 = vmatprep.subr.bf16.mxu0 %v8642_v62  ;;  %5172 = vmatprep.subr.bf16.mxu1 %v8767_v60  ;;  %v8807_v60 = vld [vmem:[#allocation40_spill] sm:$0xff] }
 0x7e1   :  { %5110 = vmatpush1.bf16.msra.mxu0 %v8769_v54  ;;  %5174 = vmatpush1.bf16.msra.mxu1 %v8770_v36 }
 0x7e2   :  { %5112 = vmatprep.subr.bf16.mxu0 %v8771_v55  ;;  %5176 = vmatprep.subr.bf16.mxu1 %v8772_v38  ;;  %v8808_v55 = vld [vmem:[#allocation39_spill] sm:$0xff] }
 0x7e5   :  { %5114 = vmatpush1.bf16.msra.mxu0 %v8773_v30  ;;  %5178 = vmatpush1.bf16.msra.mxu1 %v8774_v52  ;;  %v8809_v30 = vld [vmem:[#allocation43_spill] sm:$0xff] }
 0x7e6   :  { %5116 = vmatprep.subr.bf16.mxu0 %v8795_v46  ;;  %5180 = vmatprep.subr.bf16.mxu1 %v8796_v1 }
 0x7e9   :  { %5118 = vmatpush1.bf16.msra.mxu0 %v8777_v41  ;;  %5182 = vmatpush1.bf16.msra.mxu1 %v8778_v56 }
 0x7ea   :  { %5120 = vmatprep.subr.bf16.mxu0 %v8779_v57  ;;  %5184 = vmatprep.subr.bf16.mxu1 %v8797_v0 }
 0x7ed   :  { %5122 = vmatpush1.bf16.msra.mxu0 %v8782_v63  ;;  %5186 = vmatpush1.bf16.msra.mxu1 %v8798_v3 }
 0x7ee   :  { %5124 = vmatprep.subr.bf16.mxu0 %v8799_v4  ;;  %5188 = vmatprep.subr.bf16.mxu1 %v8800_v5 }
 0x7f1   :  { %5126 = vmatpush1.bf16.msra.mxu0 %v8787_v59  ;;  %5190 = vmatpush1.bf16.msra.mxu1 %v8788_v27 }
 0x7f2   :  { %5128 = vmatprep.subr.bf16.mxu0 %v8789_v23  ;;  %5192 = vmatprep.subr.bf16.mxu1 %v8790_v61 }
 0x7f5   :  { %5130 = vmatpush1.bf16.msra.mxu0 %v8791_v20  ;;  %5194 = vmatpush1.bf16.msra.mxu1 %v8792_v42 }
 0x845   :  { %v3157_v2 = vpop.f32.mrb[14].mxu0  ;;  %v3228_v6 = vpop.f32.mrb[14].mxu1 }
 0x846   :  { %v5209_v8 = vadd.f32 %v3157_v2, %v8801_v7  ;;  %v3159_v9 = vpop.f32.mrb[15].mxu0  ;;  %v3230_v10 = vpop.f32.mrb[15].mxu1  ;;  %v5225_v16 = vadd.f32 %v3228_v6, %v8803_v15 }
 0x847   :  { %v5210_v12 = vadd.f32 %v3159_v9, %v8802_v11  ;;  %v5226_v19 = vadd.f32 %v3230_v10, %v8804_v17 }
 0x848   :  { %v3237_v13 = vmul.f32 0.5, %v5209_v8 }
 0x849   :  { %v3241_v14 = vmul.f32 0.5, %v5210_v12  ;;  %v3246_v22 = vmul.f32 0.5, %v5226_v19 }
 0x84a   :  { %5390 = vtanh.f32 %v3237_v13 }
 0x84b   :  { %5392 = vtanh.f32 %v3241_v14 }
 0x84c   :  { %5394 = vtanh.f32 %v5225_v16 }
 0x84d   :  { %5396 = vtanh.f32 %v3246_v22 }
 0x854   :  { %v5391_v25 = vpop.eup %5390 }
 0x855   :  { %v5393_v28 = vpop.eup %5392  ;;  %v3239_v31 = vadd.f32 1.0, %v5391_v25 }
 0x856   :  { %v3243_v34 = vadd.f32 1.0, %v5393_v28  ;;  %v5395_v40 = vpop.eup %5394 }
 0x857   :  { %v3240_v37 = vmul.f32 0.5, %v3239_v31  ;;  %v5397_v53 = vpop.eup %5396 }
 0x858   :  { %v3244_v48 = vmul.f32 0.5, %v3243_v34  ;;  %v3248_v56 = vadd.f32 1.0, %v5397_v53 }
 0x859   :  { %v3251_v49 = vmul.f32 %v5395_v40, %v3240_v37 }
 0x85a   :  { %v3250_v26 = vmul.f32 %v3244_v48, %v8805_v21  ;;  %v3249_v18 = vmul.f32 0.5, %v3248_v56 }
 0x85c   :  { %v3252_v57 = vadd.f32 %v3251_v49, %v3250_v26 }
 0x85e   :  { %5398 = vtanh.f32 %v3252_v57 }
 0x868   :  { %v5399_v33 = vpop.eup %5398 }
 0x869   :  { %v3254_v29 = vmul.f32 %v5399_v33, %v3249_v18 }
 0x88b   :  { %v3321_v44 = vpop.f32.mrb[28].mxu0  ;;  %v3392_v24 = vpop.f32.mrb[28].mxu1 }
 0x88c   :  { %v3322_v62 = vadd.f32 %v3321_v44, %v8806_v43  ;;  %v3323_v51 = vpop.f32.mrb[29].mxu0  ;;  %v3394_v50 = vpop.f32.mrb[29].mxu1  ;;  %v3393_v38 = vadd.f32 %v3392_v24, %v8808_v55 }
 0x88d   :  { %v3324_v41 = vadd.f32 %v3323_v51, %v8807_v60  ;;  %v3395_v52 = vadd.f32 %v3394_v50, %v8809_v30 }
 0x88e   :  { %v3397_v54 = vmul.f32 0.5, %v3322_v62 }
 0x88f   :  { %v3401_v36 = vmul.f32 0.5, %v3324_v41  ;;  %v3406_v63 = vmul.f32 0.5, %v3395_v52 }
 0x890   :  { %5400 = vtanh.f32 %v3397_v54 }
 0x891   :  { %5402 = vtanh.f32 %v3401_v36 }
 0x892   :  { %5404 = vtanh.f32 %v3393_v38 }
 0x893   :  { %5406 = vtanh.f32 %v3406_v63 }
 0x89a   :  { %v5401_v35 = vpop.eup %5400 }
 0x89b   :  { %v5403_v32 = vpop.eup %5402  ;;  %v3399_v58 = vadd.f32 1.0, %v5401_v35 }
 0x89c   :  { %v3403_v45 = vadd.f32 1.0, %v5403_v32  ;;  %v5405_v27 = vpop.eup %5404 }
 0x89d   :  { %v3400_v59 = vmul.f32 0.5, %v3399_v58  ;;  %v5407_v39 = vpop.eup %5406 }
 0x89e   :  { %v3404_v23 = vmul.f32 0.5, %v3403_v45  ;;  %v3408_v46 = vadd.f32 1.0, %v5407_v39 }
 0x89f   :  { %v3411_v61 = vmul.f32 %v5405_v27, %v3400_v59 }
 0x8a0   :  { %v3410_v20 = vmul.f32 %v3404_v23, %v8810_v47  ;;  %v3409_v1 = vmul.f32 0.5, %v3408_v46 }
 0x8a2   :  { %v3412_v42 = vadd.f32 %v3411_v61, %v3410_v20 }
 0x8a4   :  { %5408 = vtanh.f32 %v3412_v42 }
 0x8ae   :  { %v5409_v0 = vpop.eup %5408 }
 0x8af   :  { %v3414_v3 = vmul.f32 %v5409_v0, %v3409_v1 }
 0x8b1   :  { %3479 = vmatprep.mubr.f32.mxu0 %v3414_v3  ;;  %3550 = vmatprep.mubr.f32.mxu1 %v3414_v3 }
 0x8b2   :  { %3480 = vmatmul.mubr.f32.vlgmr.msra.gmra.mrb[30].mxu0 %v3254_v29  ;;  %3551 = vmatmul.mubr.f32.vlgmr.msra.gmra.mrb[30].mxu1 %v3254_v29 }
 0x985   :  { %v3481_v4 = vpop.f32.mrb[30].mxu0  ;;  %v3552_v5 = vpop.f32.mrb[30].mxu1 }
 0x986   :  { %v3482_v2 = vadd.f32 %v3481_v4, %v8806_v43  ;;  %v3483_v6 = vpop.f32.mrb[31].mxu0  ;;  %v3554_v7 = vpop.f32.mrb[31].mxu1  ;;  %v3553_v11 = vadd.f32 %v3552_v5, %v8808_v55 }
 0x987   :  { %v3484_v8 = vadd.f32 %v3483_v6, %v8807_v60  ;;  %v3555_v12 = vadd.f32 %v3554_v7, %v8809_v30 }
 0x988   :  { %v3557_v9 = vmul.f32 0.5, %v3482_v2 }
 0x989   :  { %v3561_v10 = vmul.f32 0.5, %v3484_v8  ;;  %v3566_v13 = vmul.f32 0.5, %v3555_v12 }
 0x98a   :  { %5410 = vtanh.f32 %v3557_v9 }
 0x98b   :  { %5412 = vtanh.f32 %v3561_v10 }
 0x98c   :  { %5414 = vtanh.f32 %v3553_v11 }
 0x98d   :  { %5416 = vtanh.f32 %v3566_v13 }
 0x994   :  { %v5411_v14 = vpop.eup %5410 }
 0x995   :  { %v5413_v15 = vpop.eup %5412  ;;  %v3559_v16 = vadd.f32 1.0, %v5411_v14 }
 0x996   :  { %v3563_v17 = vadd.f32 1.0, %v5413_v15  ;;  %v5415_v22 = vpop.eup %5414 }
 0x997   :  { %v3560_v19 = vmul.f32 0.5, %v3559_v16  ;;  %v5417_v37 = vpop.eup %5416 }
 0x998   :  { %v3564_v25 = vmul.f32 0.5, %v3563_v17  ;;  %v3568_v40 = vadd.f32 1.0, %v5417_v37 }
 0x999   :  { %v3571_v28 = vmul.f32 %v5415_v22, %v3560_v19 }
 0x99a   :  { %v3570_v31 = vmul.f32 %v3564_v25, %v3412_v42  ;;  %v3569_v48 = vmul.f32 0.5, %v3568_v40 }
 0x99c   :  { %v3572_v34 = vadd.f32 %v3571_v28, %v3570_v31 }
 0x99e   :  { %5418 = vtanh.f32 %v3572_v34 }
 0x9a8   :  { %v5419_v49 = vpop.eup %5418 }
 0x9a9   :  { %v3574_v21 = vmul.f32 %v5419_v49, %v3569_v48 }
 0x9ab   :  { %3575 = vst [vmem:[%s8001_s6] sm:$0xff] %v3574_v21 }
 0x9ac   :  { %3580 = vsyncmov [#allocation4] }
 0x9af   :  { %s3581_s21 = vpop.sfrf %3580 }
 0x9b0   :  { %p3594_p0 = scmp.ne.s32.totalorder %s3581_s21, 0 }
 0x9b2   :  { %3585 = shalt.err (%p3594_p0)  }

</bundles_post_ra>
